<compile_context>
chip_gen: v7x
topology: tpu7x:2x2x1
jax: 0.10.0
libtpu: 0.0.40
codegen_flags: <defaults>
</compile_context>

<pallas_src>
import functools

import numpy as np
import jax
import jax.numpy as jnp
from jax.experimental import pallas as pl
from jax.experimental.pallas import tpu as pltpu


# ----------------------------- in-kernel helpers -----------------------------

def _layer_norm_f32(z, gamma, beta, eps):
    mu = jnp.mean(z, axis=-1, keepdims=True)
    var = jnp.mean(jnp.square(z - mu), axis=-1, keepdims=True)
    return (z - mu) * jax.lax.rsqrt(var + eps) * gamma + beta


# ----------------------------- fused SMHA kernel -----------------------------

def _smha_fused_kernel(iq_ref, ik_ref, iv_ref, ie_sw_ref, ie_ref,
                       w5_ref, we_exp_ref, w2_ref, vp_ref,
                       ctx_out_ref, e_out_ref, *, T, N, C, d_k, eps):
    """One batch element per grid step.  Row domains:
       context branch rows : (t, n)          [T*N, C]
       edge    branch rows : (i=key m, j=query n)  [N*N, C]  (module's output order)
    Channel-expanded trick: per-head scalars (scores, gates, attention weights) are kept
    replicated over that head's d_k channels so every op stays a plain [rows, C] VPU/MXU op.
    """
    bf16 = jnp.bfloat16
    f32 = jnp.float32
    inv_sqrt_d = 1.0 / float(np.sqrt(d_k))
    NN = N * N

    # ---- packed small parameters --------------------------------------------
    vp = vp_ref[...].astype(f32)                       # [8, C]
    bo, beo = vp[0:1, :], vp[1:2, :]                   # fc_out_o / fc_out_e biases
    go, gob = vp[2:3, :], vp[3:4, :]                   # norm_o gamma / beta
    ge, geb = vp[4:5, :], vp[5:6, :]                   # norm_e gamma / beta

    wq = w5_ref[0].astype(bf16)                        # [C, C]  (already transposed: in x out)
    wk = w5_ref[1].astype(bf16)
    wv = w5_ref[2].astype(bf16)
    wo = w5_ref[3].astype(bf16)
    mh = w5_ref[4].astype(bf16)                        # head-group 0/1 indicator [C, C]

    # ---- fused Q/K/V projections (bf16 MXU, f32 accumulate) ------------------
    iq = iq_ref[0]                                     # [T*N, C] rows (t, n), f32
    q = jnp.dot(iq.astype(bf16), wq, preferred_element_type=f32) * inv_sqrt_d
    k = jnp.dot(ik_ref[0].astype(bf16), wk, preferred_element_type=f32)
    v = jnp.dot(iv_ref[0].astype(bf16), wv, preferred_element_type=f32)

    ie_sw = ie_sw_ref[0].astype(bf16)                  # [N*N, C] row (i,j) holds input_E[j,i,:]

    epre = jnp.zeros((NN, C), dtype=f32)               # fc_out_e pre-activation accumulator
    ctx_rows = []

    # Static unroll over time steps; every matmul below has >= 64 useful rows.
    # TODO(synk): for large N tile the key axis with an online softmax and re-derive the
    #             VMEM budget (v7x has only 64 MiB physical VMEM).
    for t in range(T):
        q_t = q[t * N:(t + 1) * N, :]                  # [N, C]
        k_t = k[t * N:(t + 1) * N, :]
        v_t = v[t * N:(t + 1) * N, :]

        # channel-expanded per-head scores; rows (i=key, j=query), lanes = channels
        p_t = (k_t[:, None, :] * q_t[None, :, :]).reshape(NN, C)            # q.k per channel
        s_t = jnp.dot(p_t.astype(bf16), mh, preferred_element_type=f32)     # per-head sum

        # channel-expanded edge gate for this t (W_E pre-expanded on the host)
        gate_t = jnp.dot(ie_sw, we_exp_ref[t].astype(bf16),
                         preferred_element_type=f32)                        # [N*N, C]
        e_t = s_t * gate_t                                                  # gated logits e_

        # contribution of this t to fc_out_e (weight pre-folded to the expanded domain)
        epre = epre + jnp.dot(e_t.astype(bf16), w2_ref[t].astype(bf16),
                              preferred_element_type=f32)

        # softmax over the key axis (i) and weighted sum with V   (all f32, VPU/EUP)
        er = e_t.reshape(N, N, C)                                           # [i, j, c]
        mx = jnp.max(er, axis=0, keepdims=True)
        pexp = jnp.exp(er - mx)
        denom = jnp.sum(pexp, axis=0, keepdims=True)
        attn = pexp * pl.reciprocal(denom)                                  # exact reciprocal
        ctx_rows.append(jnp.sum(attn * v_t[:, None, :], axis=0))            # [N, C]

    # ---- context branch: fc_out_o + residual + LayerNorm ---------------------
    ctx = jnp.concatenate(ctx_rows, axis=0)                                  # [T*N, C], rows (t,n)
    zo = jnp.dot(ctx.astype(bf16), wo, preferred_element_type=f32) + bo + iq
    ctx_out_ref[0] = _layer_norm_f32(zo, go, gob, eps).astype(ctx_out_ref.dtype)

    # ---- edge branch: fc_out_e + residual + LayerNorm -------------------------
    ze = epre + beo + ie_ref[0]
    e_out_ref[0] = _layer_norm_f32(ze, ge, geb, eps).astype(e_out_ref.dtype)


# ----------------------------- host-side weight packing ----------------------

def pack_smha_params(params, *, heads, seq_len):
    """Repack PyTorch-convention weights into the stacked / pre-expanded tensors the fused
    kernel consumes.  Runs once, outside the jitted hot path."""
    C = params["W_Q"].shape[0]
    T, H = seq_len, heads
    d_k = C // H
    f32 = jnp.float32

    head_of_c = jnp.arange(C) // d_k                                        # [C]

    w5 = jnp.stack(
        [params["W_Q"].T.astype(f32), params["W_K"].T.astype(f32),
         params["W_V"].T.astype(f32), params["fc_out_o_w"].T.astype(f32),
         (head_of_c[:, None] == head_of_c[None, :]).astype(f32)],
        axis=0)                                                             # [5, C, C]

    # we_exp[t, c_in, c] = W_E[head(c)*T + t, c_in]   -> channel-expanded gate per t
    k_e = head_of_c[None, :] * T + jnp.arange(T)[:, None]                   # [T, C]
    we_exp = params["W_E"][k_e.reshape(-1), :].reshape(T, C, C).transpose(0, 2, 1)

    # w2[t, c, c_out] = (1/d_k) * fc_out_e_w[c_out, t*H + head(c)]  -> fc_out_e in expanded domain
    w_eoT = params["fc_out_e_w"].T                                          # [H*T, C], k = t*H + h
    k_2 = jnp.arange(T)[:, None] * H + head_of_c[None, :]                   # [T, C]
    w2 = (w_eoT[k_2.reshape(-1), :] / d_k).reshape(T, C, C).astype(f32)

    vp = jnp.zeros((8, C), f32)
    vp = vp.at[0].set(params["fc_out_o_b"])
    vp = vp.at[1].set(params["fc_out_e_b"])
    vp = vp.at[2].set(params["norm_o_g"])
    vp = vp.at[3].set(params["norm_o_b"])
    vp = vp.at[4].set(params["norm_e_g"])
    vp = vp.at[5].set(params["norm_e_b"])

    return {"w5": w5, "we_exp": we_exp.astype(f32), "w2": w2, "vp": vp}


# ----------------------------- forward (glue + kernel) -----------------------

def smha_forward(packed, input_Q, input_K, input_V, input_E, *, heads, eps=1e-5):
    B, C, N, T = input_Q.shape
    d_k = C // heads

    # Layout plumbing stays in XLA: [B, C, N, T] -> [B, T*N, C]  (rows are (t, n)).
    iq = jnp.transpose(input_Q, (0, 3, 2, 1)).reshape(B, T * N, C)
    ik = jnp.transpose(input_K, (0, 3, 2, 1)).reshape(B, T * N, C)
    iv = jnp.transpose(input_V, (0, 3, 2, 1)).reshape(B, T * N, C)
    ie = input_E.reshape(B, N * N, C)                        # rows (i, j): residual / output order
    ie_sw = jnp.swapaxes(input_E, 1, 2).reshape(B, N * N, C)  # row (i, j) holds input_E[j, i, :]

    kernel = functools.partial(_smha_fused_kernel, T=T, N=N, C=C, d_k=d_k, eps=eps)
    row3 = lambda b: (b, 0, 0)
    full2 = lambda b: (0, 0)
    full3 = lambda b: (0, 0, 0)

    ctx_rows_out, e_rows_out = pl.pallas_call(
        kernel,
        out_shape=(jax.ShapeDtypeStruct((B, T * N, C), input_Q.dtype),
                   jax.ShapeDtypeStruct((B, N * N, C), input_E.dtype)),
        grid=(B,),
        in_specs=[
            pl.BlockSpec((1, T * N, C), row3),      # iq (also the ctx residual)
            pl.BlockSpec((1, T * N, C), row3),      # ik
            pl.BlockSpec((1, T * N, C), row3),      # iv
            pl.BlockSpec((1, N * N, C), row3),      # input_E, node-swapped (for W_E projection)
            pl.BlockSpec((1, N * N, C), row3),      # input_E, original (edge residual)
            pl.BlockSpec((5, C, C), full3),         # stacked W_Q^T/W_K^T/W_V^T/W_o^T/head-mask
            pl.BlockSpec((T, C, C), full3),         # channel-expanded W_E
            pl.BlockSpec((T, C, C), full3),         # channel-expanded fc_out_e weight
            pl.BlockSpec((8, C), full2),            # packed biases + LN gammas/betas
        ],
        out_specs=(pl.BlockSpec((1, T * N, C), row3),
                   pl.BlockSpec((1, N * N, C), row3)),
        compiler_params=pltpu.CompilerParams(
            dimension_semantics=("parallel",),
            vmem_limit_bytes=32 * 1024 * 1024),
    )(iq, ik, iv, ie_sw, ie, packed["w5"], packed["we_exp"], packed["w2"], packed["vp"])

    # dropout(p=0.0) is the identity; nothing to do.
    context = ctx_rows_out.reshape(B, T, N, C).transpose(0, 3, 2, 1)   # [B, C, N, T]
    E_out = e_rows_out.reshape(B, N, N, C)                              # already in module order
    return context, E_out


# ----------------------------- pure-JAX reference ----------------------------

def _ln_ref(x, g, b, eps=1e-5):
    m = jnp.mean(x, axis=-1, keepdims=True)
    v = jnp.mean(jnp.square(x - m), axis=-1, keepdims=True)
    return (x - m) * jax.lax.rsqrt(v + eps) * g + b


def smha_reference(params, input_Q, input_K, input_V, input_E, *, heads):
    B, C, N, T = input_Q.shape
    H = heads
    d_k = C // H
    hp = jax.lax.Precision.HIGHEST

    iq = jnp.transpose(input_Q, (0, 3, 2, 1))
    ik = jnp.transpose(input_K, (0, 3, 2, 1))
    iv = jnp.transpose(input_V, (0, 3, 2, 1))

    Q = jnp.einsum("btnc,dc->btnd", iq, params["W_Q"], precision=hp)
    K = jnp.einsum("btnc,dc->btnd", ik, params["W_K"], precision=hp)
    V = jnp.einsum("btnc,dc->btnd", iv, params["W_V"], precision=hp)
    Q = Q.reshape(B, T, N, H, d_k).transpose(0, 1, 3, 2, 4)
    K = K.reshape(B, T, N, H, d_k).transpose(0, 1, 3, 2, 4)
    V = V.reshape(B, T, N, H, d_k).transpose(0, 1, 3, 2, 4)
    E = jnp.einsum("bnmc,dc->bnmd", input_E, params["W_E"], precision=hp)
    E = E.reshape(B, N, N, H, T).transpose(0, 4, 3, 1, 2)

    s_ = jnp.einsum("bthnd,bthmd->bthnm", Q, K, precision=hp) / np.sqrt(d_k)
    e_ = s_ * E
    s = jax.nn.softmax(e_, axis=-1)
    ctx = jnp.einsum("bthnm,bthmd->bthnd", s, V, precision=hp)

    context = ctx.transpose(0, 1, 3, 2, 4).reshape(B, T, N, H * d_k)
    e_flat = e_.transpose(0, 4, 3, 1, 2).reshape(B, N, N, T * H)

    context = (jnp.einsum("btnk,ck->btnc", context, params["fc_out_o_w"], precision=hp)
               + params["fc_out_o_b"])
    E_out = (jnp.einsum("bnmk,ck->bnmc", e_flat, params["fc_out_e_w"], precision=hp)
             + params["fc_out_e_b"])
    context = _ln_ref(context + iq, params["norm_o_g"], params["norm_o_b"])
    E_out = _ln_ref(E_out + input_E, params["norm_e_g"], params["norm_e_b"])
    return context.transpose(0, 3, 2, 1), E_out


# ----------------------------- main ------------------------------------------

if __name__ == "__main__":
    B, C, N, T, H = 2, 32, 8, 8, 4   # embed_size=32, heads=4, head_dim=8, seq_length=T=8
    assert C % H == 0

    key = jax.random.PRNGKey(0)
    keys = jax.random.split(key, 16)
    scale = 0.1
    # Parameter shapes follow PyTorch nn.Linear convention: weight [out, in].
    params = {
        "W_Q": jax.random.normal(keys[0], (C, C), jnp.float32) * scale,
        "W_K": jax.random.normal(keys[1], (C, C), jnp.float32) * scale,
        "W_V": jax.random.normal(keys[2], (C, C), jnp.float32) * scale,
        "W_E": jax.random.normal(keys[3], (T * H, C), jnp.float32) * scale,
        "fc_out_o_w": jax.random.normal(keys[4], (C, C), jnp.float32) * scale,
        "fc_out_o_b": jax.random.normal(keys[5], (C,), jnp.float32) * scale,
        "fc_out_e_w": jax.random.normal(keys[6], (C, T * H), jnp.float32) * scale,
        "fc_out_e_b": jax.random.normal(keys[7], (C,), jnp.float32) * scale,
        "norm_o_g": jnp.ones((C,), jnp.float32),
        "norm_o_b": jnp.zeros((C,), jnp.float32),
        "norm_e_g": jnp.ones((C,), jnp.float32),
        "norm_e_b": jnp.zeros((C,), jnp.float32),
    }

    input_Q = jax.random.normal(keys[8], (B, C, N, T), jnp.float32)
    input_K = jax.random.normal(keys[9], (B, C, N, T), jnp.float32)
    input_V = jax.random.normal(keys[10], (B, C, N, T), jnp.float32)
    input_E = jax.random.normal(keys[11], (B, N, N, C), jnp.float32)

    packed = pack_smha_params(params, heads=H, seq_len=T)   # once, outside the hot path
    fwd = jax.jit(functools.partial(smha_forward, heads=H))
    context, E_out = fwd(packed, input_Q, input_K, input_V, input_E)
    jax.block_until_ready((context, E_out))

    assert context.shape == (B, C, N, T)
    assert E_out.shape == (B, N, N, C)
    assert bool(jnp.all(jnp.isfinite(context))) and bool(jnp.all(jnp.isfinite(E_out)))

    # Cross-check against a pure-JAX reference (tolerance absorbs bf16 MXU operands).
    ref_ctx, ref_E = jax.jit(functools.partial(smha_reference, heads=H))(
        params, input_Q, input_K, input_V, input_E)
    np.testing.assert_allclose(np.asarray(context), np.asarray(ref_ctx), rtol=2e-2, atol=2e-2)
    np.testing.assert_allclose(np.asarray(E_out), np.asarray(ref_E), rtol=2e-2, atol=2e-2)

    print("KERNEL_OK")
</pallas_src>

<mosaic_0001>
module attributes {stable_mosaic.version = 11 : i64} {
  func.func @_smha_fused_kernel(%arg0: i32, %arg1: memref<1x64x32xf32, #tpu.memory_space<vmem>>, %arg2: memref<1x64x32xf32, #tpu.memory_space<vmem>>, %arg3: memref<1x64x32xf32, #tpu.memory_space<vmem>>, %arg4: memref<1x64x32xf32, #tpu.memory_space<vmem>>, %arg5: memref<1x64x32xf32, #tpu.memory_space<vmem>>, %arg6: memref<5x32x32xf32, #tpu.memory_space<vmem>>, %arg7: memref<8x32x32xf32, #tpu.memory_space<vmem>>, %arg8: memref<8x32x32xf32, #tpu.memory_space<vmem>>, %arg9: memref<8x32xf32, #tpu.memory_space<vmem>>, %arg10: memref<1x64x32xf32, #tpu.memory_space<vmem>>, %arg11: memref<1x64x32xf32, #tpu.memory_space<vmem>>) attributes {dimension_semantics = [#tpu.dimension_semantics<parallel>], iteration_bounds = array<i64: 2>, scalar_prefetch = 0 : i64, scratch_operands = 0 : i64, tpu.core_type = #tpu.core_type<tc>, window_params = [{transform_indices = @transform_0, window_bounds = array<i64: 1, 64, 32>}, {transform_indices = @transform_1, window_bounds = array<i64: 1, 64, 32>}, {transform_indices = @transform_2, window_bounds = array<i64: 1, 64, 32>}, {transform_indices = @transform_3, window_bounds = array<i64: 1, 64, 32>}, {transform_indices = @transform_4, window_bounds = array<i64: 1, 64, 32>}, {pipeline_mode = #tpu.pipeline_mode<synchronous>, transform_indices = @transform_5, window_bounds = array<i64: 5, 32, 32>}, {pipeline_mode = #tpu.pipeline_mode<synchronous>, transform_indices = @transform_6, window_bounds = array<i64: 8, 32, 32>}, {pipeline_mode = #tpu.pipeline_mode<synchronous>, transform_indices = @transform_7, window_bounds = array<i64: 8, 32, 32>}, {pipeline_mode = #tpu.pipeline_mode<synchronous>, transform_indices = @transform_8, window_bounds = array<i64: 8, 32>}, {transform_indices = @transform_9, window_bounds = array<i64: 1, 64, 32>}, {transform_indices = @transform_10, window_bounds = array<i64: 1, 64, 32>}]} {
    %c0 = arith.constant 0 : index
    %c0_0 = arith.constant 0 : index
    %0 = vector.load %arg9[%c0, %c0_0] : memref<8x32xf32, #tpu.memory_space<vmem>>, vector<8x32xf32>
    %1 = vector.extract_strided_slice %0 {offsets = [0, 0], sizes = [1, 32], strides = [1, 1]} : vector<8x32xf32> to vector<1x32xf32>
    %2 = vector.extract_strided_slice %0 {offsets = [1, 0], sizes = [1, 32], strides = [1, 1]} : vector<8x32xf32> to vector<1x32xf32>
    %3 = vector.extract_strided_slice %0 {offsets = [2, 0], sizes = [1, 32], strides = [1, 1]} : vector<8x32xf32> to vector<1x32xf32>
    %4 = vector.extract_strided_slice %0 {offsets = [3, 0], sizes = [1, 32], strides = [1, 1]} : vector<8x32xf32> to vector<1x32xf32>
    %5 = vector.extract_strided_slice %0 {offsets = [4, 0], sizes = [1, 32], strides = [1, 1]} : vector<8x32xf32> to vector<1x32xf32>
    %6 = vector.extract_strided_slice %0 {offsets = [5, 0], sizes = [1, 32], strides = [1, 1]} : vector<8x32xf32> to vector<1x32xf32>
    %c0_1 = arith.constant 0 : index
    %c0_2 = arith.constant 0 : index
    %c0_3 = arith.constant 0 : index
    %7 = vector.load %arg6[%c0_1, %c0_2, %c0_3] : memref<5x32x32xf32, #tpu.memory_space<vmem>>, vector<1x32x32xf32>
    %8 = vector.shape_cast %7 : vector<1x32x32xf32> to vector<32x32xf32>
    %9 = arith.truncf %8 : vector<32x32xf32> to vector<32x32xbf16>
    %c1 = arith.constant 1 : index
    %c0_4 = arith.constant 0 : index
    %c0_5 = arith.constant 0 : index
    %10 = vector.load %arg6[%c1, %c0_4, %c0_5] : memref<5x32x32xf32, #tpu.memory_space<vmem>>, vector<1x32x32xf32>
    %11 = vector.shape_cast %10 : vector<1x32x32xf32> to vector<32x32xf32>
    %12 = arith.truncf %11 : vector<32x32xf32> to vector<32x32xbf16>
    %c2 = arith.constant 2 : index
    %c0_6 = arith.constant 0 : index
    %c0_7 = arith.constant 0 : index
    %13 = vector.load %arg6[%c2, %c0_6, %c0_7] : memref<5x32x32xf32, #tpu.memory_space<vmem>>, vector<1x32x32xf32>
    %14 = vector.shape_cast %13 : vector<1x32x32xf32> to vector<32x32xf32>
    %15 = arith.truncf %14 : vector<32x32xf32> to vector<32x32xbf16>
    %c3 = arith.constant 3 : index
    %c0_8 = arith.constant 0 : index
    %c0_9 = arith.constant 0 : index
    %16 = vector.load %arg6[%c3, %c0_8, %c0_9] : memref<5x32x32xf32, #tpu.memory_space<vmem>>, vector<1x32x32xf32>
    %17 = vector.shape_cast %16 : vector<1x32x32xf32> to vector<32x32xf32>
    %18 = arith.truncf %17 : vector<32x32xf32> to vector<32x32xbf16>
    %c4 = arith.constant 4 : index
    %c0_10 = arith.constant 0 : index
    %c0_11 = arith.constant 0 : index
    %19 = vector.load %arg6[%c4, %c0_10, %c0_11] : memref<5x32x32xf32, #tpu.memory_space<vmem>>, vector<1x32x32xf32>
    %20 = vector.shape_cast %19 : vector<1x32x32xf32> to vector<32x32xf32>
    %21 = arith.truncf %20 : vector<32x32xf32> to vector<32x32xbf16>
    %c0_12 = arith.constant 0 : index
    %c0_13 = arith.constant 0 : index
    %c0_14 = arith.constant 0 : index
    %22 = vector.load %arg1[%c0_12, %c0_13, %c0_14] : memref<1x64x32xf32, #tpu.memory_space<vmem>>, vector<1x64x32xf32>
    %23 = vector.shape_cast %22 : vector<1x64x32xf32> to vector<64x32xf32>
    %24 = arith.truncf %23 : vector<64x32xf32> to vector<64x32xbf16>
    %cst = arith.constant dense<0.000000e+00> : vector<64x32xf32>
    %25 = tpu.matmul %24, %9, %cst {dimension_numbers = #tpu.dot_dimension_numbers<[1], [0], [0], [1], [0, 0, 1, 1], [], []>} : vector<64x32xbf16>, vector<32x32xbf16>, vector<64x32xf32> -> vector<64x32xf32>
    %cst_15 = arith.constant 0.353553385 : f32
    %26 = vector.broadcast %cst_15 : f32 to vector<64x32xf32>
    %27 = arith.mulf %25, %26 : vector<64x32xf32>
    %c0_16 = arith.constant 0 : index
    %c0_17 = arith.constant 0 : index
    %c0_18 = arith.constant 0 : index
    %28 = vector.load %arg2[%c0_16, %c0_17, %c0_18] : memref<1x64x32xf32, #tpu.memory_space<vmem>>, vector<1x64x32xf32>
    %29 = vector.shape_cast %28 : vector<1x64x32xf32> to vector<64x32xf32>
    %30 = arith.truncf %29 : vector<64x32xf32> to vector<64x32xbf16>
    %cst_19 = arith.constant dense<0.000000e+00> : vector<64x32xf32>
    %31 = tpu.matmul %30, %12, %cst_19 {dimension_numbers = #tpu.dot_dimension_numbers<[1], [0], [0], [1], [0, 0, 1, 1], [], []>} : vector<64x32xbf16>, vector<32x32xbf16>, vector<64x32xf32> -> vector<64x32xf32>
    %c0_20 = arith.constant 0 : index
    %c0_21 = arith.constant 0 : index
    %c0_22 = arith.constant 0 : index
    %32 = vector.load %arg3[%c0_20, %c0_21, %c0_22] : memref<1x64x32xf32, #tpu.memory_space<vmem>>, vector<1x64x32xf32>
    %33 = vector.shape_cast %32 : vector<1x64x32xf32> to vector<64x32xf32>
    %34 = arith.truncf %33 : vector<64x32xf32> to vector<64x32xbf16>
    %cst_23 = arith.constant dense<0.000000e+00> : vector<64x32xf32>
    %35 = tpu.matmul %34, %15, %cst_23 {dimension_numbers = #tpu.dot_dimension_numbers<[1], [0], [0], [1], [0, 0, 1, 1], [], []>} : vector<64x32xbf16>, vector<32x32xbf16>, vector<64x32xf32> -> vector<64x32xf32>
    %c0_24 = arith.constant 0 : index
    %c0_25 = arith.constant 0 : index
    %c0_26 = arith.constant 0 : index
    %36 = vector.load %arg4[%c0_24, %c0_25, %c0_26] : memref<1x64x32xf32, #tpu.memory_space<vmem>>, vector<1x64x32xf32>
    %37 = vector.shape_cast %36 : vector<1x64x32xf32> to vector<64x32xf32>
    %38 = arith.truncf %37 : vector<64x32xf32> to vector<64x32xbf16>
    %cst_27 = arith.constant 0.000000e+00 : f32
    %39 = vector.broadcast %cst_27 : f32 to vector<64x32xf32>
    %40 = vector.extract_strided_slice %27 {offsets = [0, 0], sizes = [8, 32], strides = [1, 1]} : vector<64x32xf32> to vector<8x32xf32>
    %41 = vector.extract_strided_slice %31 {offsets = [0, 0], sizes = [8, 32], strides = [1, 1]} : vector<64x32xf32> to vector<8x32xf32>
    %42 = vector.extract_strided_slice %35 {offsets = [0, 0], sizes = [8, 32], strides = [1, 1]} : vector<64x32xf32> to vector<8x32xf32>
    %43 = vector.shape_cast %41 : vector<8x32xf32> to vector<8x1x32xf32>
    %44 = vector.shape_cast %40 : vector<8x32xf32> to vector<1x8x32xf32>
    %45 = vector.broadcast %43 : vector<8x1x32xf32> to vector<8x8x32xf32>
    %46 = vector.broadcast %44 : vector<1x8x32xf32> to vector<8x8x32xf32>
    %47 = arith.mulf %45, %46 : vector<8x8x32xf32>
    %48 = vector.shape_cast %47 : vector<8x8x32xf32> to vector<64x32xf32>
    %49 = arith.truncf %48 : vector<64x32xf32> to vector<64x32xbf16>
    %cst_28 = arith.constant dense<0.000000e+00> : vector<64x32xf32>
    %50 = tpu.matmul %49, %21, %cst_28 {dimension_numbers = #tpu.dot_dimension_numbers<[1], [0], [0], [1], [0, 0, 1, 1], [], []>} : vector<64x32xbf16>, vector<32x32xbf16>, vector<64x32xf32> -> vector<64x32xf32>
    %c0_29 = arith.constant 0 : index
    %c0_30 = arith.constant 0 : index
    %c0_31 = arith.constant 0 : index
    %51 = vector.load %arg7[%c0_29, %c0_30, %c0_31] : memref<8x32x32xf32, #tpu.memory_space<vmem>>, vector<1x32x32xf32>
    %52 = vector.shape_cast %51 : vector<1x32x32xf32> to vector<32x32xf32>
    %53 = arith.truncf %52 : vector<32x32xf32> to vector<32x32xbf16>
    %cst_32 = arith.constant dense<0.000000e+00> : vector<64x32xf32>
    %54 = tpu.matmul %38, %53, %cst_32 {dimension_numbers = #tpu.dot_dimension_numbers<[1], [0], [0], [1], [0, 0, 1, 1], [], []>} : vector<64x32xbf16>, vector<32x32xbf16>, vector<64x32xf32> -> vector<64x32xf32>
    %55 = arith.mulf %50, %54 : vector<64x32xf32>
    %56 = arith.truncf %55 : vector<64x32xf32> to vector<64x32xbf16>
    %c0_33 = arith.constant 0 : index
    %c0_34 = arith.constant 0 : index
    %c0_35 = arith.constant 0 : index
    %57 = vector.load %arg8[%c0_33, %c0_34, %c0_35] : memref<8x32x32xf32, #tpu.memory_space<vmem>>, vector<1x32x32xf32>
    %58 = vector.shape_cast %57 : vector<1x32x32xf32> to vector<32x32xf32>
    %59 = arith.truncf %58 : vector<32x32xf32> to vector<32x32xbf16>
    %cst_36 = arith.constant dense<0.000000e+00> : vector<64x32xf32>
    %60 = tpu.matmul %56, %59, %cst_36 {dimension_numbers = #tpu.dot_dimension_numbers<[1], [0], [0], [1], [0, 0, 1, 1], [], []>} : vector<64x32xbf16>, vector<32x32xbf16>, vector<64x32xf32> -> vector<64x32xf32>
    %61 = arith.addf %39, %60 : vector<64x32xf32>
    %62 = vector.shape_cast %55 : vector<64x32xf32> to vector<8x8x32xf32>
    %cst_37 = arith.constant dense<0xFF800000> : vector<8x32xf32>
    %63 = vector.multi_reduction <maximumf>, %62, %cst_37 [0] : vector<8x8x32xf32> to vector<8x32xf32>
    %64 = vector.shape_cast %63 : vector<8x32xf32> to vector<1x8x32xf32>
    %65 = vector.broadcast %64 : vector<1x8x32xf32> to vector<8x8x32xf32>
    %66 = arith.subf %62, %65 : vector<8x8x32xf32>
    %67 = math.exp %66 : vector<8x8x32xf32>
    %cst_38 = arith.constant dense<0.000000e+00> : vector<8x32xf32>
    %68 = vector.multi_reduction <add>, %67, %cst_38 [0] : vector<8x8x32xf32> to vector<8x32xf32>
    %69 = vector.shape_cast %68 : vector<8x32xf32> to vector<1x8x32xf32>
    %70 = tpu.reciprocal %69 : vector<1x8x32xf32> -> vector<1x8x32xf32>
    %71 = vector.broadcast %70 : vector<1x8x32xf32> to vector<8x8x32xf32>
    %72 = arith.mulf %67, %71 : vector<8x8x32xf32>
    %73 = vector.shape_cast %42 : vector<8x32xf32> to vector<8x1x32xf32>
    %74 = vector.broadcast %73 : vector<8x1x32xf32> to vector<8x8x32xf32>
    %75 = arith.mulf %72, %74 : vector<8x8x32xf32>
    %cst_39 = arith.constant dense<0.000000e+00> : vector<8x32xf32>
    %76 = vector.multi_reduction <add>, %75, %cst_39 [0] : vector<8x8x32xf32> to vector<8x32xf32>
    %77 = vector.extract_strided_slice %27 {offsets = [8, 0], sizes = [8, 32], strides = [1, 1]} : vector<64x32xf32> to vector<8x32xf32>
    %78 = vector.extract_strided_slice %31 {offsets = [8, 0], sizes = [8, 32], strides = [1, 1]} : vector<64x32xf32> to vector<8x32xf32>
    %79 = vector.extract_strided_slice %35 {offsets = [8, 0], sizes = [8, 32], strides = [1, 1]} : vector<64x32xf32> to vector<8x32xf32>
    %80 = vector.shape_cast %78 : vector<8x32xf32> to vector<8x1x32xf32>
    %81 = vector.shape_cast %77 : vector<8x32xf32> to vector<1x8x32xf32>
    %82 = vector.broadcast %80 : vector<8x1x32xf32> to vector<8x8x32xf32>
    %83 = vector.broadcast %81 : vector<1x8x32xf32> to vector<8x8x32xf32>
    %84 = arith.mulf %82, %83 : vector<8x8x32xf32>
    %85 = vector.shape_cast %84 : vector<8x8x32xf32> to vector<64x32xf32>
    %86 = arith.truncf %85 : vector<64x32xf32> to vector<64x32xbf16>
    %cst_40 = arith.constant dense<0.000000e+00> : vector<64x32xf32>
    %87 = tpu.matmul %86, %21, %cst_40 {dimension_numbers = #tpu.dot_dimension_numbers<[1], [0], [0], [1], [0, 0, 1, 1], [], []>} : vector<64x32xbf16>, vector<32x32xbf16>, vector<64x32xf32> -> vector<64x32xf32>
    %c1_41 = arith.constant 1 : index
    %c0_42 = arith.constant 0 : index
    %c0_43 = arith.constant 0 : index
    %88 = vector.load %arg7[%c1_41, %c0_42, %c0_43] : memref<8x32x32xf32, #tpu.memory_space<vmem>>, vector<1x32x32xf32>
    %89 = vector.shape_cast %88 : vector<1x32x32xf32> to vector<32x32xf32>
    %90 = arith.truncf %89 : vector<32x32xf32> to vector<32x32xbf16>
    %cst_44 = arith.constant dense<0.000000e+00> : vector<64x32xf32>
    %91 = tpu.matmul %38, %90, %cst_44 {dimension_numbers = #tpu.dot_dimension_numbers<[1], [0], [0], [1], [0, 0, 1, 1], [], []>} : vector<64x32xbf16>, vector<32x32xbf16>, vector<64x32xf32> -> vector<64x32xf32>
    %92 = arith.mulf %87, %91 : vector<64x32xf32>
    %93 = arith.truncf %92 : vector<64x32xf32> to vector<64x32xbf16>
    %c1_45 = arith.constant 1 : index
    %c0_46 = arith.constant 0 : index
    %c0_47 = arith.constant 0 : index
    %94 = vector.load %arg8[%c1_45, %c0_46, %c0_47] : memref<8x32x32xf32, #tpu.memory_space<vmem>>, vector<1x32x32xf32>
    %95 = vector.shape_cast %94 : vector<1x32x32xf32> to vector<32x32xf32>
    %96 = arith.truncf %95 : vector<32x32xf32> to vector<32x32xbf16>
    %cst_48 = arith.constant dense<0.000000e+00> : vector<64x32xf32>
    %97 = tpu.matmul %93, %96, %cst_48 {dimension_numbers = #tpu.dot_dimension_numbers<[1], [0], [0], [1], [0, 0, 1, 1], [], []>} : vector<64x32xbf16>, vector<32x32xbf16>, vector<64x32xf32> -> vector<64x32xf32>
    %98 = arith.addf %61, %97 : vector<64x32xf32>
    %99 = vector.shape_cast %92 : vector<64x32xf32> to vector<8x8x32xf32>
    %cst_49 = arith.constant dense<0xFF800000> : vector<8x32xf32>
    %100 = vector.multi_reduction <maximumf>, %99, %cst_49 [0] : vector<8x8x32xf32> to vector<8x32xf32>
    %101 = vector.shape_cast %100 : vector<8x32xf32> to vector<1x8x32xf32>
    %102 = vector.broadcast %101 : vector<1x8x32xf32> to vector<8x8x32xf32>
    %103 = arith.subf %99, %102 : vector<8x8x32xf32>
    %104 = math.exp %103 : vector<8x8x32xf32>
    %cst_50 = arith.constant dense<0.000000e+00> : vector<8x32xf32>
    %105 = vector.multi_reduction <add>, %104, %cst_50 [0] : vector<8x8x32xf32> to vector<8x32xf32>
    %106 = vector.shape_cast %105 : vector<8x32xf32> to vector<1x8x32xf32>
    %107 = tpu.reciprocal %106 : vector<1x8x32xf32> -> vector<1x8x32xf32>
    %108 = vector.broadcast %107 : vector<1x8x32xf32> to vector<8x8x32xf32>
    %109 = arith.mulf %104, %108 : vector<8x8x32xf32>
    %110 = vector.shape_cast %79 : vector<8x32xf32> to vector<8x1x32xf32>
    %111 = vector.broadcast %110 : vector<8x1x32xf32> to vector<8x8x32xf32>
    %112 = arith.mulf %109, %111 : vector<8x8x32xf32>
    %cst_51 = arith.constant dense<0.000000e+00> : vector<8x32xf32>
    %113 = vector.multi_reduction <add>, %112, %cst_51 [0] : vector<8x8x32xf32> to vector<8x32xf32>
    %114 = vector.extract_strided_slice %27 {offsets = [16, 0], sizes = [8, 32], strides = [1, 1]} : vector<64x32xf32> to vector<8x32xf32>
    %115 = vector.extract_strided_slice %31 {offsets = [16, 0], sizes = [8, 32], strides = [1, 1]} : vector<64x32xf32> to vector<8x32xf32>
    %116 = vector.extract_strided_slice %35 {offsets = [16, 0], sizes = [8, 32], strides = [1, 1]} : vector<64x32xf32> to vector<8x32xf32>
    %117 = vector.shape_cast %115 : vector<8x32xf32> to vector<8x1x32xf32>
    %118 = vector.shape_cast %114 : vector<8x32xf32> to vector<1x8x32xf32>
    %119 = vector.broadcast %117 : vector<8x1x32xf32> to vector<8x8x32xf32>
    %120 = vector.broadcast %118 : vector<1x8x32xf32> to vector<8x8x32xf32>
    %121 = arith.mulf %119, %120 : vector<8x8x32xf32>
    %122 = vector.shape_cast %121 : vector<8x8x32xf32> to vector<64x32xf32>
    %123 = arith.truncf %122 : vector<64x32xf32> to vector<64x32xbf16>
    %cst_52 = arith.constant dense<0.000000e+00> : vector<64x32xf32>
    %124 = tpu.matmul %123, %21, %cst_52 {dimension_numbers = #tpu.dot_dimension_numbers<[1], [0], [0], [1], [0, 0, 1, 1], [], []>} : vector<64x32xbf16>, vector<32x32xbf16>, vector<64x32xf32> -> vector<64x32xf32>
    %c2_53 = arith.constant 2 : index
    %c0_54 = arith.constant 0 : index
    %c0_55 = arith.constant 0 : index
    %125 = vector.load %arg7[%c2_53, %c0_54, %c0_55] : memref<8x32x32xf32, #tpu.memory_space<vmem>>, vector<1x32x32xf32>
    %126 = vector.shape_cast %125 : vector<1x32x32xf32> to vector<32x32xf32>
    %127 = arith.truncf %126 : vector<32x32xf32> to vector<32x32xbf16>
    %cst_56 = arith.constant dense<0.000000e+00> : vector<64x32xf32>
    %128 = tpu.matmul %38, %127, %cst_56 {dimension_numbers = #tpu.dot_dimension_numbers<[1], [0], [0], [1], [0, 0, 1, 1], [], []>} : vector<64x32xbf16>, vector<32x32xbf16>, vector<64x32xf32> -> vector<64x32xf32>
    %129 = arith.mulf %124, %128 : vector<64x32xf32>
    %130 = arith.truncf %129 : vector<64x32xf32> to vector<64x32xbf16>
    %c2_57 = arith.constant 2 : index
    %c0_58 = arith.constant 0 : index
    %c0_59 = arith.constant 0 : index
    %131 = vector.load %arg8[%c2_57, %c0_58, %c0_59] : memref<8x32x32xf32, #tpu.memory_space<vmem>>, vector<1x32x32xf32>
    %132 = vector.shape_cast %131 : vector<1x32x32xf32> to vector<32x32xf32>
    %133 = arith.truncf %132 : vector<32x32xf32> to vector<32x32xbf16>
    %cst_60 = arith.constant dense<0.000000e+00> : vector<64x32xf32>
    %134 = tpu.matmul %130, %133, %cst_60 {dimension_numbers = #tpu.dot_dimension_numbers<[1], [0], [0], [1], [0, 0, 1, 1], [], []>} : vector<64x32xbf16>, vector<32x32xbf16>, vector<64x32xf32> -> vector<64x32xf32>
    %135 = arith.addf %98, %134 : vector<64x32xf32>
    %136 = vector.shape_cast %129 : vector<64x32xf32> to vector<8x8x32xf32>
    %cst_61 = arith.constant dense<0xFF800000> : vector<8x32xf32>
    %137 = vector.multi_reduction <maximumf>, %136, %cst_61 [0] : vector<8x8x32xf32> to vector<8x32xf32>
    %138 = vector.shape_cast %137 : vector<8x32xf32> to vector<1x8x32xf32>
    %139 = vector.broadcast %138 : vector<1x8x32xf32> to vector<8x8x32xf32>
    %140 = arith.subf %136, %139 : vector<8x8x32xf32>
    %141 = math.exp %140 : vector<8x8x32xf32>
    %cst_62 = arith.constant dense<0.000000e+00> : vector<8x32xf32>
    %142 = vector.multi_reduction <add>, %141, %cst_62 [0] : vector<8x8x32xf32> to vector<8x32xf32>
    %143 = vector.shape_cast %142 : vector<8x32xf32> to vector<1x8x32xf32>
    %144 = tpu.reciprocal %143 : vector<1x8x32xf32> -> vector<1x8x32xf32>
    %145 = vector.broadcast %144 : vector<1x8x32xf32> to vector<8x8x32xf32>
    %146 = arith.mulf %141, %145 : vector<8x8x32xf32>
    %147 = vector.shape_cast %116 : vector<8x32xf32> to vector<8x1x32xf32>
    %148 = vector.broadcast %147 : vector<8x1x32xf32> to vector<8x8x32xf32>
    %149 = arith.mulf %146, %148 : vector<8x8x32xf32>
    %cst_63 = arith.constant dense<0.000000e+00> : vector<8x32xf32>
    %150 = vector.multi_reduction <add>, %149, %cst_63 [0] : vector<8x8x32xf32> to vector<8x32xf32>
    %151 = vector.extract_strided_slice %27 {offsets = [24, 0], sizes = [8, 32], strides = [1, 1]} : vector<64x32xf32> to vector<8x32xf32>
    %152 = vector.extract_strided_slice %31 {offsets = [24, 0], sizes = [8, 32], strides = [1, 1]} : vector<64x32xf32> to vector<8x32xf32>
    %153 = vector.extract_strided_slice %35 {offsets = [24, 0], sizes = [8, 32], strides = [1, 1]} : vector<64x32xf32> to vector<8x32xf32>
    %154 = vector.shape_cast %152 : vector<8x32xf32> to vector<8x1x32xf32>
    %155 = vector.shape_cast %151 : vector<8x32xf32> to vector<1x8x32xf32>
    %156 = vector.broadcast %154 : vector<8x1x32xf32> to vector<8x8x32xf32>
    %157 = vector.broadcast %155 : vector<1x8x32xf32> to vector<8x8x32xf32>
    %158 = arith.mulf %156, %157 : vector<8x8x32xf32>
    %159 = vector.shape_cast %158 : vector<8x8x32xf32> to vector<64x32xf32>
    %160 = arith.truncf %159 : vector<64x32xf32> to vector<64x32xbf16>
    %cst_64 = arith.constant dense<0.000000e+00> : vector<64x32xf32>
    %161 = tpu.matmul %160, %21, %cst_64 {dimension_numbers = #tpu.dot_dimension_numbers<[1], [0], [0], [1], [0, 0, 1, 1], [], []>} : vector<64x32xbf16>, vector<32x32xbf16>, vector<64x32xf32> -> vector<64x32xf32>
    %c3_65 = arith.constant 3 : index
    %c0_66 = arith.constant 0 : index
    %c0_67 = arith.constant 0 : index
    %162 = vector.load %arg7[%c3_65, %c0_66, %c0_67] : memref<8x32x32xf32, #tpu.memory_space<vmem>>, vector<1x32x32xf32>
    %163 = vector.shape_cast %162 : vector<1x32x32xf32> to vector<32x32xf32>
    %164 = arith.truncf %163 : vector<32x32xf32> to vector<32x32xbf16>
    %cst_68 = arith.constant dense<0.000000e+00> : vector<64x32xf32>
    %165 = tpu.matmul %38, %164, %cst_68 {dimension_numbers = #tpu.dot_dimension_numbers<[1], [0], [0], [1], [0, 0, 1, 1], [], []>} : vector<64x32xbf16>, vector<32x32xbf16>, vector<64x32xf32> -> vector<64x32xf32>
    %166 = arith.mulf %161, %165 : vector<64x32xf32>
    %167 = arith.truncf %166 : vector<64x32xf32> to vector<64x32xbf16>
    %c3_69 = arith.constant 3 : index
    %c0_70 = arith.constant 0 : index
    %c0_71 = arith.constant 0 : index
    %168 = vector.load %arg8[%c3_69, %c0_70, %c0_71] : memref<8x32x32xf32, #tpu.memory_space<vmem>>, vector<1x32x32xf32>
    %169 = vector.shape_cast %168 : vector<1x32x32xf32> to vector<32x32xf32>
    %170 = arith.truncf %169 : vector<32x32xf32> to vector<32x32xbf16>
    %cst_72 = arith.constant dense<0.000000e+00> : vector<64x32xf32>
    %171 = tpu.matmul %167, %170, %cst_72 {dimension_numbers = #tpu.dot_dimension_numbers<[1], [0], [0], [1], [0, 0, 1, 1], [], []>} : vector<64x32xbf16>, vector<32x32xbf16>, vector<64x32xf32> -> vector<64x32xf32>
    %172 = arith.addf %135, %171 : vector<64x32xf32>
    %173 = vector.shape_cast %166 : vector<64x32xf32> to vector<8x8x32xf32>
    %cst_73 = arith.constant dense<0xFF800000> : vector<8x32xf32>
    %174 = vector.multi_reduction <maximumf>, %173, %cst_73 [0] : vector<8x8x32xf32> to vector<8x32xf32>
    %175 = vector.shape_cast %174 : vector<8x32xf32> to vector<1x8x32xf32>
    %176 = vector.broadcast %175 : vector<1x8x32xf32> to vector<8x8x32xf32>
    %177 = arith.subf %173, %176 : vector<8x8x32xf32>
    %178 = math.exp %177 : vector<8x8x32xf32>
    %cst_74 = arith.constant dense<0.000000e+00> : vector<8x32xf32>
    %179 = vector.multi_reduction <add>, %178, %cst_74 [0] : vector<8x8x32xf32> to vector<8x32xf32>
    %180 = vector.shape_cast %179 : vector<8x32xf32> to vector<1x8x32xf32>
    %181 = tpu.reciprocal %180 : vector<1x8x32xf32> -> vector<1x8x32xf32>
    %182 = vector.broadcast %181 : vector<1x8x32xf32> to vector<8x8x32xf32>
    %183 = arith.mulf %178, %182 : vector<8x8x32xf32>
    %184 = vector.shape_cast %153 : vector<8x32xf32> to vector<8x1x32xf32>
    %185 = vector.broadcast %184 : vector<8x1x32xf32> to vector<8x8x32xf32>
    %186 = arith.mulf %183, %185 : vector<8x8x32xf32>
    %cst_75 = arith.constant dense<0.000000e+00> : vector<8x32xf32>
    %187 = vector.multi_reduction <add>, %186, %cst_75 [0] : vector<8x8x32xf32> to vector<8x32xf32>
    %188 = vector.extract_strided_slice %27 {offsets = [32, 0], sizes = [8, 32], strides = [1, 1]} : vector<64x32xf32> to vector<8x32xf32>
    %189 = vector.extract_strided_slice %31 {offsets = [32, 0], sizes = [8, 32], strides = [1, 1]} : vector<64x32xf32> to vector<8x32xf32>
    %190 = vector.extract_strided_slice %35 {offsets = [32, 0], sizes = [8, 32], strides = [1, 1]} : vector<64x32xf32> to vector<8x32xf32>
    %191 = vector.shape_cast %189 : vector<8x32xf32> to vector<8x1x32xf32>
    %192 = vector.shape_cast %188 : vector<8x32xf32> to vector<1x8x32xf32>
    %193 = vector.broadcast %191 : vector<8x1x32xf32> to vector<8x8x32xf32>
    %194 = vector.broadcast %192 : vector<1x8x32xf32> to vector<8x8x32xf32>
    %195 = arith.mulf %193, %194 : vector<8x8x32xf32>
    %196 = vector.shape_cast %195 : vector<8x8x32xf32> to vector<64x32xf32>
    %197 = arith.truncf %196 : vector<64x32xf32> to vector<64x32xbf16>
    %cst_76 = arith.constant dense<0.000000e+00> : vector<64x32xf32>
    %198 = tpu.matmul %197, %21, %cst_76 {dimension_numbers = #tpu.dot_dimension_numbers<[1], [0], [0], [1], [0, 0, 1, 1], [], []>} : vector<64x32xbf16>, vector<32x32xbf16>, vector<64x32xf32> -> vector<64x32xf32>
    %c4_77 = arith.constant 4 : index
    %c0_78 = arith.constant 0 : index
    %c0_79 = arith.constant 0 : index
    %199 = vector.load %arg7[%c4_77, %c0_78, %c0_79] : memref<8x32x32xf32, #tpu.memory_space<vmem>>, vector<1x32x32xf32>
    %200 = vector.shape_cast %199 : vector<1x32x32xf32> to vector<32x32xf32>
    %201 = arith.truncf %200 : vector<32x32xf32> to vector<32x32xbf16>
    %cst_80 = arith.constant dense<0.000000e+00> : vector<64x32xf32>
    %202 = tpu.matmul %38, %201, %cst_80 {dimension_numbers = #tpu.dot_dimension_numbers<[1], [0], [0], [1], [0, 0, 1, 1], [], []>} : vector<64x32xbf16>, vector<32x32xbf16>, vector<64x32xf32> -> vector<64x32xf32>
    %203 = arith.mulf %198, %202 : vector<64x32xf32>
    %204 = arith.truncf %203 : vector<64x32xf32> to vector<64x32xbf16>
    %c4_81 = arith.constant 4 : index
    %c0_82 = arith.constant 0 : index
    %c0_83 = arith.constant 0 : index
    %205 = vector.load %arg8[%c4_81, %c0_82, %c0_83] : memref<8x32x32xf32, #tpu.memory_space<vmem>>, vector<1x32x32xf32>
    %206 = vector.shape_cast %205 : vector<1x32x32xf32> to vector<32x32xf32>
    %207 = arith.truncf %206 : vector<32x32xf32> to vector<32x32xbf16>
    %cst_84 = arith.constant dense<0.000000e+00> : vector<64x32xf32>
    %208 = tpu.matmul %204, %207, %cst_84 {dimension_numbers = #tpu.dot_dimension_numbers<[1], [0], [0], [1], [0, 0, 1, 1], [], []>} : vector<64x32xbf16>, vector<32x32xbf16>, vector<64x32xf32> -> vector<64x32xf32>
    %209 = arith.addf %172, %208 : vector<64x32xf32>
    %210 = vector.shape_cast %203 : vector<64x32xf32> to vector<8x8x32xf32>
    %cst_85 = arith.constant dense<0xFF800000> : vector<8x32xf32>
    %211 = vector.multi_reduction <maximumf>, %210, %cst_85 [0] : vector<8x8x32xf32> to vector<8x32xf32>
    %212 = vector.shape_cast %211 : vector<8x32xf32> to vector<1x8x32xf32>
    %213 = vector.broadcast %212 : vector<1x8x32xf32> to vector<8x8x32xf32>
    %214 = arith.subf %210, %213 : vector<8x8x32xf32>
    %215 = math.exp %214 : vector<8x8x32xf32>
    %cst_86 = arith.constant dense<0.000000e+00> : vector<8x32xf32>
    %216 = vector.multi_reduction <add>, %215, %cst_86 [0] : vector<8x8x32xf32> to vector<8x32xf32>
    %217 = vector.shape_cast %216 : vector<8x32xf32> to vector<1x8x32xf32>
    %218 = tpu.reciprocal %217 : vector<1x8x32xf32> -> vector<1x8x32xf32>
    %219 = vector.broadcast %218 : vector<1x8x32xf32> to vector<8x8x32xf32>
    %220 = arith.mulf %215, %219 : vector<8x8x32xf32>
    %221 = vector.shape_cast %190 : vector<8x32xf32> to vector<8x1x32xf32>
    %222 = vector.broadcast %221 : vector<8x1x32xf32> to vector<8x8x32xf32>
    %223 = arith.mulf %220, %222 : vector<8x8x32xf32>
    %cst_87 = arith.constant dense<0.000000e+00> : vector<8x32xf32>
    %224 = vector.multi_reduction <add>, %223, %cst_87 [0] : vector<8x8x32xf32> to vector<8x32xf32>
    %225 = vector.extract_strided_slice %27 {offsets = [40, 0], sizes = [8, 32], strides = [1, 1]} : vector<64x32xf32> to vector<8x32xf32>
    %226 = vector.extract_strided_slice %31 {offsets = [40, 0], sizes = [8, 32], strides = [1, 1]} : vector<64x32xf32> to vector<8x32xf32>
    %227 = vector.extract_strided_slice %35 {offsets = [40, 0], sizes = [8, 32], strides = [1, 1]} : vector<64x32xf32> to vector<8x32xf32>
    %228 = vector.shape_cast %226 : vector<8x32xf32> to vector<8x1x32xf32>
    %229 = vector.shape_cast %225 : vector<8x32xf32> to vector<1x8x32xf32>
    %230 = vector.broadcast %228 : vector<8x1x32xf32> to vector<8x8x32xf32>
    %231 = vector.broadcast %229 : vector<1x8x32xf32> to vector<8x8x32xf32>
    %232 = arith.mulf %230, %231 : vector<8x8x32xf32>
    %233 = vector.shape_cast %232 : vector<8x8x32xf32> to vector<64x32xf32>
    %234 = arith.truncf %233 : vector<64x32xf32> to vector<64x32xbf16>
    %cst_88 = arith.constant dense<0.000000e+00> : vector<64x32xf32>
    %235 = tpu.matmul %234, %21, %cst_88 {dimension_numbers = #tpu.dot_dimension_numbers<[1], [0], [0], [1], [0, 0, 1, 1], [], []>} : vector<64x32xbf16>, vector<32x32xbf16>, vector<64x32xf32> -> vector<64x32xf32>
    %c5 = arith.constant 5 : index
    %c0_89 = arith.constant 0 : index
    %c0_90 = arith.constant 0 : index
    %236 = vector.load %arg7[%c5, %c0_89, %c0_90] : memref<8x32x32xf32, #tpu.memory_space<vmem>>, vector<1x32x32xf32>
    %237 = vector.shape_cast %236 : vector<1x32x32xf32> to vector<32x32xf32>
    %238 = arith.truncf %237 : vector<32x32xf32> to vector<32x32xbf16>
    %cst_91 = arith.constant dense<0.000000e+00> : vector<64x32xf32>
    %239 = tpu.matmul %38, %238, %cst_91 {dimension_numbers = #tpu.dot_dimension_numbers<[1], [0], [0], [1], [0, 0, 1, 1], [], []>} : vector<64x32xbf16>, vector<32x32xbf16>, vector<64x32xf32> -> vector<64x32xf32>
    %240 = arith.mulf %235, %239 : vector<64x32xf32>
    %241 = arith.truncf %240 : vector<64x32xf32> to vector<64x32xbf16>
    %c5_92 = arith.constant 5 : index
    %c0_93 = arith.constant 0 : index
    %c0_94 = arith.constant 0 : index
    %242 = vector.load %arg8[%c5_92, %c0_93, %c0_94] : memref<8x32x32xf32, #tpu.memory_space<vmem>>, vector<1x32x32xf32>
    %243 = vector.shape_cast %242 : vector<1x32x32xf32> to vector<32x32xf32>
    %244 = arith.truncf %243 : vector<32x32xf32> to vector<32x32xbf16>
    %cst_95 = arith.constant dense<0.000000e+00> : vector<64x32xf32>
    %245 = tpu.matmul %241, %244, %cst_95 {dimension_numbers = #tpu.dot_dimension_numbers<[1], [0], [0], [1], [0, 0, 1, 1], [], []>} : vector<64x32xbf16>, vector<32x32xbf16>, vector<64x32xf32> -> vector<64x32xf32>
    %246 = arith.addf %209, %245 : vector<64x32xf32>
    %247 = vector.shape_cast %240 : vector<64x32xf32> to vector<8x8x32xf32>
    %cst_96 = arith.constant dense<0xFF800000> : vector<8x32xf32>
    %248 = vector.multi_reduction <maximumf>, %247, %cst_96 [0] : vector<8x8x32xf32> to vector<8x32xf32>
    %249 = vector.shape_cast %248 : vector<8x32xf32> to vector<1x8x32xf32>
    %250 = vector.broadcast %249 : vector<1x8x32xf32> to vector<8x8x32xf32>
    %251 = arith.subf %247, %250 : vector<8x8x32xf32>
    %252 = math.exp %251 : vector<8x8x32xf32>
    %cst_97 = arith.constant dense<0.000000e+00> : vector<8x32xf32>
    %253 = vector.multi_reduction <add>, %252, %cst_97 [0] : vector<8x8x32xf32> to vector<8x32xf32>
    %254 = vector.shape_cast %253 : vector<8x32xf32> to vector<1x8x32xf32>
    %255 = tpu.reciprocal %254 : vector<1x8x32xf32> -> vector<1x8x32xf32>
    %256 = vector.broadcast %255 : vector<1x8x32xf32> to vector<8x8x32xf32>
    %257 = arith.mulf %252, %256 : vector<8x8x32xf32>
    %258 = vector.shape_cast %227 : vector<8x32xf32> to vector<8x1x32xf32>
    %259 = vector.broadcast %258 : vector<8x1x32xf32> to vector<8x8x32xf32>
    %260 = arith.mulf %257, %259 : vector<8x8x32xf32>
    %cst_98 = arith.constant dense<0.000000e+00> : vector<8x32xf32>
    %261 = vector.multi_reduction <add>, %260, %cst_98 [0] : vector<8x8x32xf32> to vector<8x32xf32>
    %262 = vector.extract_strided_slice %27 {offsets = [48, 0], sizes = [8, 32], strides = [1, 1]} : vector<64x32xf32> to vector<8x32xf32>
    %263 = vector.extract_strided_slice %31 {offsets = [48, 0], sizes = [8, 32], strides = [1, 1]} : vector<64x32xf32> to vector<8x32xf32>
    %264 = vector.extract_strided_slice %35 {offsets = [48, 0], sizes = [8, 32], strides = [1, 1]} : vector<64x32xf32> to vector<8x32xf32>
    %265 = vector.shape_cast %263 : vector<8x32xf32> to vector<8x1x32xf32>
    %266 = vector.shape_cast %262 : vector<8x32xf32> to vector<1x8x32xf32>
    %267 = vector.broadcast %265 : vector<8x1x32xf32> to vector<8x8x32xf32>
    %268 = vector.broadcast %266 : vector<1x8x32xf32> to vector<8x8x32xf32>
    %269 = arith.mulf %267, %268 : vector<8x8x32xf32>
    %270 = vector.shape_cast %269 : vector<8x8x32xf32> to vector<64x32xf32>
    %271 = arith.truncf %270 : vector<64x32xf32> to vector<64x32xbf16>
    %cst_99 = arith.constant dense<0.000000e+00> : vector<64x32xf32>
    %272 = tpu.matmul %271, %21, %cst_99 {dimension_numbers = #tpu.dot_dimension_numbers<[1], [0], [0], [1], [0, 0, 1, 1], [], []>} : vector<64x32xbf16>, vector<32x32xbf16>, vector<64x32xf32> -> vector<64x32xf32>
    %c6 = arith.constant 6 : index
    %c0_100 = arith.constant 0 : index
    %c0_101 = arith.constant 0 : index
    %273 = vector.load %arg7[%c6, %c0_100, %c0_101] : memref<8x32x32xf32, #tpu.memory_space<vmem>>, vector<1x32x32xf32>
    %274 = vector.shape_cast %273 : vector<1x32x32xf32> to vector<32x32xf32>
    %275 = arith.truncf %274 : vector<32x32xf32> to vector<32x32xbf16>
    %cst_102 = arith.constant dense<0.000000e+00> : vector<64x32xf32>
    %276 = tpu.matmul %38, %275, %cst_102 {dimension_numbers = #tpu.dot_dimension_numbers<[1], [0], [0], [1], [0, 0, 1, 1], [], []>} : vector<64x32xbf16>, vector<32x32xbf16>, vector<64x32xf32> -> vector<64x32xf32>
    %277 = arith.mulf %272, %276 : vector<64x32xf32>
    %278 = arith.truncf %277 : vector<64x32xf32> to vector<64x32xbf16>
    %c6_103 = arith.constant 6 : index
    %c0_104 = arith.constant 0 : index
    %c0_105 = arith.constant 0 : index
    %279 = vector.load %arg8[%c6_103, %c0_104, %c0_105] : memref<8x32x32xf32, #tpu.memory_space<vmem>>, vector<1x32x32xf32>
    %280 = vector.shape_cast %279 : vector<1x32x32xf32> to vector<32x32xf32>
    %281 = arith.truncf %280 : vector<32x32xf32> to vector<32x32xbf16>
    %cst_106 = arith.constant dense<0.000000e+00> : vector<64x32xf32>
    %282 = tpu.matmul %278, %281, %cst_106 {dimension_numbers = #tpu.dot_dimension_numbers<[1], [0], [0], [1], [0, 0, 1, 1], [], []>} : vector<64x32xbf16>, vector<32x32xbf16>, vector<64x32xf32> -> vector<64x32xf32>
    %283 = arith.addf %246, %282 : vector<64x32xf32>
    %284 = vector.shape_cast %277 : vector<64x32xf32> to vector<8x8x32xf32>
    %cst_107 = arith.constant dense<0xFF800000> : vector<8x32xf32>
    %285 = vector.multi_reduction <maximumf>, %284, %cst_107 [0] : vector<8x8x32xf32> to vector<8x32xf32>
    %286 = vector.shape_cast %285 : vector<8x32xf32> to vector<1x8x32xf32>
    %287 = vector.broadcast %286 : vector<1x8x32xf32> to vector<8x8x32xf32>
    %288 = arith.subf %284, %287 : vector<8x8x32xf32>
    %289 = math.exp %288 : vector<8x8x32xf32>
    %cst_108 = arith.constant dense<0.000000e+00> : vector<8x32xf32>
    %290 = vector.multi_reduction <add>, %289, %cst_108 [0] : vector<8x8x32xf32> to vector<8x32xf32>
    %291 = vector.shape_cast %290 : vector<8x32xf32> to vector<1x8x32xf32>
    %292 = tpu.reciprocal %291 : vector<1x8x32xf32> -> vector<1x8x32xf32>
    %293 = vector.broadcast %292 : vector<1x8x32xf32> to vector<8x8x32xf32>
    %294 = arith.mulf %289, %293 : vector<8x8x32xf32>
    %295 = vector.shape_cast %264 : vector<8x32xf32> to vector<8x1x32xf32>
    %296 = vector.broadcast %295 : vector<8x1x32xf32> to vector<8x8x32xf32>
    %297 = arith.mulf %294, %296 : vector<8x8x32xf32>
    %cst_109 = arith.constant dense<0.000000e+00> : vector<8x32xf32>
    %298 = vector.multi_reduction <add>, %297, %cst_109 [0] : vector<8x8x32xf32> to vector<8x32xf32>
    %299 = vector.extract_strided_slice %27 {offsets = [56, 0], sizes = [8, 32], strides = [1, 1]} : vector<64x32xf32> to vector<8x32xf32>
    %300 = vector.extract_strided_slice %31 {offsets = [56, 0], sizes = [8, 32], strides = [1, 1]} : vector<64x32xf32> to vector<8x32xf32>
    %301 = vector.extract_strided_slice %35 {offsets = [56, 0], sizes = [8, 32], strides = [1, 1]} : vector<64x32xf32> to vector<8x32xf32>
    %302 = vector.shape_cast %300 : vector<8x32xf32> to vector<8x1x32xf32>
    %303 = vector.shape_cast %299 : vector<8x32xf32> to vector<1x8x32xf32>
    %304 = vector.broadcast %302 : vector<8x1x32xf32> to vector<8x8x32xf32>
    %305 = vector.broadcast %303 : vector<1x8x32xf32> to vector<8x8x32xf32>
    %306 = arith.mulf %304, %305 : vector<8x8x32xf32>
    %307 = vector.shape_cast %306 : vector<8x8x32xf32> to vector<64x32xf32>
    %308 = arith.truncf %307 : vector<64x32xf32> to vector<64x32xbf16>
    %cst_110 = arith.constant dense<0.000000e+00> : vector<64x32xf32>
    %309 = tpu.matmul %308, %21, %cst_110 {dimension_numbers = #tpu.dot_dimension_numbers<[1], [0], [0], [1], [0, 0, 1, 1], [], []>} : vector<64x32xbf16>, vector<32x32xbf16>, vector<64x32xf32> -> vector<64x32xf32>
    %c7 = arith.constant 7 : index
    %c0_111 = arith.constant 0 : index
    %c0_112 = arith.constant 0 : index
    %310 = vector.load %arg7[%c7, %c0_111, %c0_112] : memref<8x32x32xf32, #tpu.memory_space<vmem>>, vector<1x32x32xf32>
    %311 = vector.shape_cast %310 : vector<1x32x32xf32> to vector<32x32xf32>
    %312 = arith.truncf %311 : vector<32x32xf32> to vector<32x32xbf16>
    %cst_113 = arith.constant dense<0.000000e+00> : vector<64x32xf32>
    %313 = tpu.matmul %38, %312, %cst_113 {dimension_numbers = #tpu.dot_dimension_numbers<[1], [0], [0], [1], [0, 0, 1, 1], [], []>} : vector<64x32xbf16>, vector<32x32xbf16>, vector<64x32xf32> -> vector<64x32xf32>
    %314 = arith.mulf %309, %313 : vector<64x32xf32>
    %315 = arith.truncf %314 : vector<64x32xf32> to vector<64x32xbf16>
    %c7_114 = arith.constant 7 : index
    %c0_115 = arith.constant 0 : index
    %c0_116 = arith.constant 0 : index
    %316 = vector.load %arg8[%c7_114, %c0_115, %c0_116] : memref<8x32x32xf32, #tpu.memory_space<vmem>>, vector<1x32x32xf32>
    %317 = vector.shape_cast %316 : vector<1x32x32xf32> to vector<32x32xf32>
    %318 = arith.truncf %317 : vector<32x32xf32> to vector<32x32xbf16>
    %cst_117 = arith.constant dense<0.000000e+00> : vector<64x32xf32>
    %319 = tpu.matmul %315, %318, %cst_117 {dimension_numbers = #tpu.dot_dimension_numbers<[1], [0], [0], [1], [0, 0, 1, 1], [], []>} : vector<64x32xbf16>, vector<32x32xbf16>, vector<64x32xf32> -> vector<64x32xf32>
    %320 = arith.addf %283, %319 : vector<64x32xf32>
    %321 = vector.shape_cast %314 : vector<64x32xf32> to vector<8x8x32xf32>
    %cst_118 = arith.constant dense<0xFF800000> : vector<8x32xf32>
    %322 = vector.multi_reduction <maximumf>, %321, %cst_118 [0] : vector<8x8x32xf32> to vector<8x32xf32>
    %323 = vector.shape_cast %322 : vector<8x32xf32> to vector<1x8x32xf32>
    %324 = vector.broadcast %323 : vector<1x8x32xf32> to vector<8x8x32xf32>
    %325 = arith.subf %321, %324 : vector<8x8x32xf32>
    %326 = math.exp %325 : vector<8x8x32xf32>
    %cst_119 = arith.constant dense<0.000000e+00> : vector<8x32xf32>
    %327 = vector.multi_reduction <add>, %326, %cst_119 [0] : vector<8x8x32xf32> to vector<8x32xf32>
    %328 = vector.shape_cast %327 : vector<8x32xf32> to vector<1x8x32xf32>
    %329 = tpu.reciprocal %328 : vector<1x8x32xf32> -> vector<1x8x32xf32>
    %330 = vector.broadcast %329 : vector<1x8x32xf32> to vector<8x8x32xf32>
    %331 = arith.mulf %326, %330 : vector<8x8x32xf32>
    %332 = vector.shape_cast %301 : vector<8x32xf32> to vector<8x1x32xf32>
    %333 = vector.broadcast %332 : vector<8x1x32xf32> to vector<8x8x32xf32>
    %334 = arith.mulf %331, %333 : vector<8x8x32xf32>
    %cst_120 = arith.constant dense<0.000000e+00> : vector<8x32xf32>
    %335 = vector.multi_reduction <add>, %334, %cst_120 [0] : vector<8x8x32xf32> to vector<8x32xf32>
    %336 = tpu.concatenate %76, %113, %150, %187, %224, %261, %298, %335 in 0 : vector<8x32xf32>, vector<8x32xf32>, vector<8x32xf32>, vector<8x32xf32>, vector<8x32xf32>, vector<8x32xf32>, vector<8x32xf32>, vector<8x32xf32> -> vector<64x32xf32>
    %337 = arith.truncf %336 : vector<64x32xf32> to vector<64x32xbf16>
    %cst_121 = arith.constant dense<0.000000e+00> : vector<64x32xf32>
    %338 = tpu.matmul %337, %18, %cst_121 {dimension_numbers = #tpu.dot_dimension_numbers<[1], [0], [0], [1], [0, 0, 1, 1], [], []>} : vector<64x32xbf16>, vector<32x32xbf16>, vector<64x32xf32> -> vector<64x32xf32>
    %339 = vector.broadcast %1 : vector<1x32xf32> to vector<64x32xf32>
    %340 = arith.addf %338, %339 : vector<64x32xf32>
    %341 = arith.addf %340, %23 : vector<64x32xf32>
    %cst_122 = arith.constant dense<0.000000e+00> : vector<64xf32>
    %342 = vector.multi_reduction <add>, %341, %cst_122 [1] : vector<64x32xf32> to vector<64xf32>
    %343 = vector.shape_cast %342 : vector<64xf32> to vector<64x1xf32>
    %cst_123 = arith.constant 3.200000e+01 : f32
    %344 = vector.broadcast %cst_123 : f32 to vector<64x1xf32>
    %345 = arith.divf %343, %344 : vector<64x1xf32>
    %346 = vector.broadcast %345 : vector<64x1xf32> to vector<64x32xf32>
    %347 = arith.subf %341, %346 : vector<64x32xf32>
    %348 = arith.mulf %347, %347 : vector<64x32xf32>
    %cst_124 = arith.constant dense<0.000000e+00> : vector<64xf32>
    %349 = vector.multi_reduction <add>, %348, %cst_124 [1] : vector<64x32xf32> to vector<64xf32>
    %350 = vector.shape_cast %349 : vector<64xf32> to vector<64x1xf32>
    %cst_125 = arith.constant 3.200000e+01 : f32
    %351 = vector.broadcast %cst_125 : f32 to vector<64x1xf32>
    %352 = arith.divf %350, %351 : vector<64x1xf32>
    %353 = vector.broadcast %345 : vector<64x1xf32> to vector<64x32xf32>
    %354 = arith.subf %341, %353 : vector<64x32xf32>
    %cst_126 = arith.constant 9.99999974E-6 : f32
    %355 = vector.broadcast %cst_126 : f32 to vector<64x1xf32>
    %356 = arith.addf %352, %355 : vector<64x1xf32>
    %357 = math.rsqrt %356 : vector<64x1xf32>
    %358 = vector.broadcast %357 : vector<64x1xf32> to vector<64x32xf32>
    %359 = arith.mulf %354, %358 : vector<64x32xf32>
    %360 = vector.broadcast %3 : vector<1x32xf32> to vector<64x32xf32>
    %361 = arith.mulf %359, %360 : vector<64x32xf32>
    %362 = vector.broadcast %4 : vector<1x32xf32> to vector<64x32xf32>
    %363 = arith.addf %361, %362 : vector<64x32xf32>
    %c0_127 = arith.constant 0 : index
    %c0_128 = arith.constant 0 : index
    %c0_129 = arith.constant 0 : index
    %364 = vector.load %arg10[%c0_127, %c0_128, %c0_129] : memref<1x64x32xf32, #tpu.memory_space<vmem>>, vector<1x64x32xf32>
    %365 = vector.shape_cast %364 : vector<1x64x32xf32> to vector<64x32xf32>
    %366 = vector.shape_cast %363 : vector<64x32xf32> to vector<1x64x32xf32>
    tpu.vector_store %arg10[%c0_127, %c0_128, %c0_129], %366 {strides = array<i32>} : memref<1x64x32xf32, #tpu.memory_space<vmem>>, vector<1x64x32xf32>,
    %367 = vector.broadcast %2 : vector<1x32xf32> to vector<64x32xf32>
    %368 = arith.addf %320, %367 : vector<64x32xf32>
    %c0_130 = arith.constant 0 : index
    %c0_131 = arith.constant 0 : index
    %c0_132 = arith.constant 0 : index
    %369 = vector.load %arg5[%c0_130, %c0_131, %c0_132] : memref<1x64x32xf32, #tpu.memory_space<vmem>>, vector<1x64x32xf32>
    %370 = vector.shape_cast %369 : vector<1x64x32xf32> to vector<64x32xf32>
    %371 = arith.addf %368, %370 : vector<64x32xf32>
    %cst_133 = arith.constant dense<0.000000e+00> : vector<64xf32>
    %372 = vector.multi_reduction <add>, %371, %cst_133 [1] : vector<64x32xf32> to vector<64xf32>
    %373 = vector.shape_cast %372 : vector<64xf32> to vector<64x1xf32>
    %cst_134 = arith.constant 3.200000e+01 : f32
    %374 = vector.broadcast %cst_134 : f32 to vector<64x1xf32>
    %375 = arith.divf %373, %374 : vector<64x1xf32>
    %376 = vector.broadcast %375 : vector<64x1xf32> to vector<64x32xf32>
    %377 = arith.subf %371, %376 : vector<64x32xf32>
    %378 = arith.mulf %377, %377 : vector<64x32xf32>
    %cst_135 = arith.constant dense<0.000000e+00> : vector<64xf32>
    %379 = vector.multi_reduction <add>, %378, %cst_135 [1] : vector<64x32xf32> to vector<64xf32>
    %380 = vector.shape_cast %379 : vector<64xf32> to vector<64x1xf32>
    %cst_136 = arith.constant 3.200000e+01 : f32
    %381 = vector.broadcast %cst_136 : f32 to vector<64x1xf32>
    %382 = arith.divf %380, %381 : vector<64x1xf32>
    %383 = vector.broadcast %375 : vector<64x1xf32> to vector<64x32xf32>
    %384 = arith.subf %371, %383 : vector<64x32xf32>
    %cst_137 = arith.constant 9.99999974E-6 : f32
    %385 = vector.broadcast %cst_137 : f32 to vector<64x1xf32>
    %386 = arith.addf %382, %385 : vector<64x1xf32>
    %387 = math.rsqrt %386 : vector<64x1xf32>
    %388 = vector.broadcast %387 : vector<64x1xf32> to vector<64x32xf32>
    %389 = arith.mulf %384, %388 : vector<64x32xf32>
    %390 = vector.broadcast %5 : vector<1x32xf32> to vector<64x32xf32>
    %391 = arith.mulf %389, %390 : vector<64x32xf32>
    %392 = vector.broadcast %6 : vector<1x32xf32> to vector<64x32xf32>
    %393 = arith.addf %391, %392 : vector<64x32xf32>
    %c0_138 = arith.constant 0 : index
    %c0_139 = arith.constant 0 : index
    %c0_140 = arith.constant 0 : index
    %394 = vector.load %arg11[%c0_138, %c0_139, %c0_140] : memref<1x64x32xf32, #tpu.memory_space<vmem>>, vector<1x64x32xf32>
    %395 = vector.shape_cast %394 : vector<1x64x32xf32> to vector<64x32xf32>
    %396 = vector.shape_cast %393 : vector<64x32xf32> to vector<1x64x32xf32>
    tpu.vector_store %arg11[%c0_138, %c0_139, %c0_140], %396 {strides = array<i32>} : memref<1x64x32xf32, #tpu.memory_space<vmem>>, vector<1x64x32xf32>,
    return
  }
  func.func @transform_0(%arg0: i32) -> (i32, i32, i32) {
    %c0_i32 = arith.constant 0 : i32
    %c0_i32_0 = arith.constant 0 : i32
    %c0_i32_1 = arith.constant 0 : i32
    return %arg0, %c0_i32, %c0_i32_0 : i32, i32, i32
  }
  func.func @transform_1(%arg0: i32) -> (i32, i32, i32) {
    %c0_i32 = arith.constant 0 : i32
    %c0_i32_0 = arith.constant 0 : i32
    %c0_i32_1 = arith.constant 0 : i32
    return %arg0, %c0_i32, %c0_i32_0 : i32, i32, i32
  }
  func.func @transform_2(%arg0: i32) -> (i32, i32, i32) {
    %c0_i32 = arith.constant 0 : i32
    %c0_i32_0 = arith.constant 0 : i32
    %c0_i32_1 = arith.constant 0 : i32
    return %arg0, %c0_i32, %c0_i32_0 : i32, i32, i32
  }
  func.func @transform_3(%arg0: i32) -> (i32, i32, i32) {
    %c0_i32 = arith.constant 0 : i32
    %c0_i32_0 = arith.constant 0 : i32
    %c0_i32_1 = arith.constant 0 : i32
    return %arg0, %c0_i32, %c0_i32_0 : i32, i32, i32
  }
  func.func @transform_4(%arg0: i32) -> (i32, i32, i32) {
    %c0_i32 = arith.constant 0 : i32
    %c0_i32_0 = arith.constant 0 : i32
    %c0_i32_1 = arith.constant 0 : i32
    return %arg0, %c0_i32, %c0_i32_0 : i32, i32, i32
  }
  func.func @transform_5(%arg0: i32) -> (i32, i32, i32) {
    %c0_i32 = arith.constant 0 : i32
    %c0_i32_0 = arith.constant 0 : i32
    %c0_i32_1 = arith.constant 0 : i32
    %c0_i32_2 = arith.constant 0 : i32
    return %c0_i32, %c0_i32_0, %c0_i32_1 : i32, i32, i32
  }
  func.func @transform_6(%arg0: i32) -> (i32, i32, i32) {
    %c0_i32 = arith.constant 0 : i32
    %c0_i32_0 = arith.constant 0 : i32
    %c0_i32_1 = arith.constant 0 : i32
    %c0_i32_2 = arith.constant 0 : i32
    return %c0_i32, %c0_i32_0, %c0_i32_1 : i32, i32, i32
  }
  func.func @transform_7(%arg0: i32) -> (i32, i32, i32) {
    %c0_i32 = arith.constant 0 : i32
    %c0_i32_0 = arith.constant 0 : i32
    %c0_i32_1 = arith.constant 0 : i32
    %c0_i32_2 = arith.constant 0 : i32
    return %c0_i32, %c0_i32_0, %c0_i32_1 : i32, i32, i32
  }
  func.func @transform_8(%arg0: i32) -> (i32, i32) {
    %c0_i32 = arith.constant 0 : i32
    %c0_i32_0 = arith.constant 0 : i32
    %c0_i32_1 = arith.constant 0 : i32
    return %c0_i32, %c0_i32_0 : i32, i32
  }
  func.func @transform_9(%arg0: i32) -> (i32, i32, i32) {
    %c0_i32 = arith.constant 0 : i32
    %c0_i32_0 = arith.constant 0 : i32
    %c0_i32_1 = arith.constant 0 : i32
    return %arg0, %c0_i32, %c0_i32_0 : i32, i32, i32
  }
  func.func @transform_10(%arg0: i32) -> (i32, i32, i32) {
    %c0_i32 = arith.constant 0 : i32
    %c0_i32_0 = arith.constant 0 : i32
    %c0_i32_1 = arith.constant 0 : i32
    return %arg0, %c0_i32, %c0_i32_0 : i32, i32, i32
  }
}

</mosaic_0001>

<bundles_post_ra>
// kernel: smha_forward.1
= control target key start
LH: loop header
LB: loop body
LE: loop exit
PB: predicated region body
PF: predicated region fallthrough
CT: control target
= control target key end

     0   :  { %s9278_s0 = inlined_call_operand.vmem [shape: f32[2,64,32], index: 0, kind: input, shape index: {}]   ;;  %s9279_s1 = inlined_call_operand.vmem [shape: f32[2,64,32], index: 1, kind: input, shape index: {}]   ;;  %s9280_s2 = inlined_call_operand.vmem [shape: f32[2,64,32], index: 2, kind: input, shape index: {}]   ;;  %s9281_s3 = inlined_call_operand.vmem [shape: f32[2,64,32], index: 3, kind: input, shape index: {}]   ;;  %s9282_s4 = inlined_call_operand.vmem [shape: f32[2,64,32], index: 4, kind: input, shape index: {}]   ;;  %s9283_s5 = inlined_call_operand.vmem [shape: f32[5,32,32], index: 5, kind: input, shape index: {}]   ;;  %s9284_s6 = inlined_call_operand.vmem [shape: f32[8,32,32], index: 6, kind: input, shape index: {}]   ;;  %s9285_s7 = inlined_call_operand.vmem [shape: f32[8,32,32], index: 7, kind: input, shape index: {}]   ;;  %s9286_s8 = inlined_call_operand.vmem [shape: f32[8,32], index: 8, kind: input, shape index: {}]   ;;  %s9287_s9 = inlined_call_operand.vmem [shape: f32[2,64,32], index: 9, kind: output, shape index: {0}]   ;;  %s9288_s10 = inlined_call_operand.hbm [shape: f32[2,64,32], index: 10, kind: output, shape index: {1}]  }
   0x1   :  { %9312 = sst [smem:[#allocation33_spill]] %s9278_s0 }
   0x2   :  { %9313 = sst [smem:[#allocation34_spill]] %s9279_s1 }
   0x3   :  { %9314 = sst [smem:[#allocation35_spill]] %s9280_s2 }
   0x4   :  { %16 = vsyncpa [#allocation3], 0 }
   0x5   :  { %18 = vsyncpa [#allocation3 + $0x1], 0  ;;  %s6690_s13 = smov 0   ;;  %s6692_s14 = smov 0  }
   0x6   :  { %s6694_s15 = smov 0   ;;  %s6696_s16 = smov 0  }
   0x7 LB: > { %s6711_s17 = sadd.s32 4294967295, %s6629_s16   ;;  %s5568_s18 = sadd.s32 4294967294, %s6629_s16   ;;  %s6629_s16 = sphi %s6696_s16, %s9460_s16   ;;  %s6625_s15 = sphi %s6694_s15, %s9459_s15   ;;  %s6621_s14 = sphi %s6692_s14, %s9458_s14   ;;  %s6617_s13 = sphi %s6690_s13, %s9457_s13  }
   0x8   : > { %s6715_s19 = sadd.s32 1, %s6629_s16   ;;  %s271_s20 = sadd.s32 1, %s6625_s15 }
   0x9   : > { %s268_s21 = ssub.s32 %s6629_s16, %s6715_s19  ;;  %p281_p0 = scmp.ne.s32.totalorder %s6625_s15, %s6621_s14 }
   0xa   : > { %p269_p1 = scmp.eq.s32.totalorder %s268_s21, 0  ;;  %p282_p2 = scmp.eq.s32.totalorder %s6711_s17, 1 }
   0xb   : > { %p287_p3 = scmp.ne.s32.totalorder %s6621_s14, %s6617_s13  ;;  %p288_p4 = scmp.eq.s32.totalorder %s5568_s18, 1 }
   0xc   : > { %s6726_s22 = scalar_select %p269_p1, %s6625_s15, %s271_s20  }
   0xd   : > { %p6728_p5 = por %p282_p2, %p281_p0  ;;  %p6732_p6 = por %p288_p4, %p287_p3 }
   0xe   : > { %p5571_p7 = scmp.ge.s32.totalorder %s6629_s16, 1  ;;  %p358_p8 = scmp.lt.s32.totalorder %s6629_s16, 3 }
  0x10   : > { %p359_p9 = pnand %p5571_p7, %p358_p8 }
  0x12   : > { %362 = sbr.rel (%p359_p9) target bundleno = 1903 (0x76f), region = 56 }
  0x19   : > { %v5585_v0 = vld [vmem:[%s9283_s5 + $0x20] sm:$0xff]  ;;  %v5586_v1 = vld [vmem:[%s9283_s5 + $0x28] sm:$0xff]  ;;  %p421_p10 = scmp.lt.s32.totalorder %s6711_s17, 1  ;;  %v5587_v5 = vld [vmem:[%s9283_s5 + $0x30] sm:$0xff]  ;;  %s9317_s1 = sld [smem:[#allocation34_spill]]  ;;  %vm499_vm0 = vcmask 261120  }
  0x1a   : > { %v453_v2 = vld [vmem:[%s9283_s5] sm:$0xff]  ;;  %v464_v3 = vpack.c.bf16 %v5586_v1, %v5585_v0  ;;  %v454_v4 = vld [vmem:[%s9283_s5 + $0x8] sm:$0xff]  ;;  %v5588_v6 = vld [vmem:[%s9283_s5 + $0x38] sm:$0xff]  ;;  %s9318_s0 = sld [smem:[#allocation33_spill]]  ;;  %s9319_s2 = sld [smem:[#allocation35_spill]] }
  0x1b   : > { %v457_v7 = vpack.c.bf16 %v454_v4, %v453_v2  ;;  %v465_v8 = vpack.c.bf16 %v5588_v6, %v5587_v5  ;;  %s422_s26 = scalar_select %p421_p10, %s6711_s17, 1  ;;  %v455_v9 = vld [vmem:[%s9283_s5 + $0x10] sm:$0xff]  ;;  %v456_v10 = vld [vmem:[%s9283_s5 + $0x18] sm:$0xff]  ;;  %v5589_v12 = vld [vmem:[%s9283_s5 + $0x40] sm:$0xff] }
  0x1c   : > { %5961 = vmatprep.subr.bf16.mxu1 %v464_v3  ;;  %v458_v11 = vpack.c.bf16 %v456_v10, %v455_v9  ;;  %v5590_v13 = vld [vmem:[%s9283_s5 + $0x48] sm:$0xff]  ;;  %v5591_v14 = vld [vmem:[%s9283_s5 + $0x50] sm:$0xff]  ;;  %v5592_v15 = vld [vmem:[%s9283_s5 + $0x58] sm:$0xff]  ;;  %s5780_s11 = sshll.u32 %s6711_s17, 10  ;;  %s6632_s27 = smov [#allocation2]  }
  0x1d   : > { %5962 = vmatpush3.bf16.msra.mxu1 %v464_v3  ;;  %5949 = vmatprep.subr.bf16.mxu0 %v457_v7  ;;  %s6770_s21 = sshll.u32 %s422_s26, 6  ;;  %v471_v19 = vpack.c.bf16 %v5590_v13, %v5589_v12  ;;  %v472_v34 = vpack.c.bf16 %v5592_v15, %v5591_v14  ;;  %v954_v36 = vld [vmem:[%s9284_s6] sm:$0xff]  ;;  %v955_v37 = vld [vmem:[%s9284_s6 + $0x8] sm:$0xff]  ;;  %v956_v55 = vld [vmem:[%s9284_s6 + $0x10] sm:$0xff]  ;;  %s9209_s25 = scalar_lea.hbm %s9288_s10, %s5780_s11 }
  0x1e   : > { %5963 = vmatprep.subr.bf16.mxu1 %v465_v8  ;;  %5950 = vmatpush3.bf16.msra.mxu0 %v457_v7  ;;  %v958_v44 = vpack.c.bf16 %v955_v37, %v954_v36  ;;  %v5597_v48 = vld [vmem:[%s9283_s5 + $0x80] sm:$0xff]  ;;  %v5598_v49 = vld [vmem:[%s9283_s5 + $0x88] sm:$0xff]  ;;  %v957_v56 = vld [vmem:[%s9284_s6 + $0x18] sm:$0xff] }
  0x1f   : > { %s6776_s28 = scalar_lea.vmem %s9317_s1, %s6770_s21  ;;  %5951 = vmatprep.subr.bf16.mxu0 %v458_v11  ;;  %v6832_v50 = vpack.c.bf16 %v5598_v49, %v5597_v48  ;;  %v959_v59 = vpack.c.bf16 %v957_v56, %v956_v55  ;;  %v5625_v60 = vld [vmem:[%s9284_s6 + $0x20] sm:$0xff]  ;;  %v5626_v61 = vld [vmem:[%s9284_s6 + $0x28] sm:$0xff]  ;;  %v5627_v9 = vld [vmem:[%s9284_s6 + $0x30] sm:$0xff] }
  0x20   : > { %v585_v16 = vld [vmem:[%s6776_s28] sm:$0xff]  ;;  %v586_v17 = vld [vmem:[%s6776_s28 + $0x8] sm:$0xff]  ;;  %v587_v18 = vld [vmem:[%s6776_s28 + $0x10] sm:$0xff]  ;;  %s6791_s20 = scalar_lea.vmem %s9318_s0, %s6770_s21  ;;  %s6809_s29 = scalar_lea.vmem %s9319_s2, %s6770_s21  ;;  %v1415_v2 = vpack.c.bf16 %v5626_v61, %v5625_v60 }
  0x21   : > { %v593_v20 = vpack.c.bf16 %v586_v17, %v585_v16  ;;  %v588_v21 = vld [vmem:[%s6776_s28 + $0x18] sm:$0xff]  ;;  %v487_v22 = vld [vmem:[%s6791_s20] sm:$0xff]  ;;  %v488_v23 = vld [vmem:[%s6791_s20 + $0x8] sm:$0xff]  ;;  %5964 = vmatpush3.bf16.msra.mxu1 %v465_v8  ;;  %s8977_s0 = scalar_lea.vmem %s9282_s4, %s6770_s21  ;;  %s9154_s2 = scalar_lea.vmem %s9287_s9, %s6770_s21 }
  0x22   : > { %v594_v24 = vpack.c.bf16 %v588_v21, %v587_v18  ;;  %v495_v25 = vpack.c.bf16 %v488_v23, %v487_v22  ;;  %v489_v26 = vld [vmem:[%s6791_s20 + $0x10] sm:$0xff]  ;;  %v490_v27 = vld [vmem:[%s6791_s20 + $0x18] sm:$0xff]  ;;  %v589_v28 = vld [vmem:[%s6776_s28 + $0x20] sm:$0xff]  ;;  %5952 = vmatpush3.bf16.msra.mxu0 %v458_v11  ;;  %5985 = vmatprep.subr.bf16.mxu1 %v6832_v50  ;;  %v6631_v23 = vmov 1966171168  }
  0x23   : > { %5965 = vmatprep.mubr.msk.bf16.mxu1 %vm499_vm0, %v593_v20  ;;  %v496_v29 = vpack.c.bf16 %v490_v27, %v489_v26  ;;  %v590_v30 = vld [vmem:[%s6776_s28 + $0x28] sm:$0xff]  ;;  %v491_v32 = vld [vmem:[%s6791_s20 + $0x20] sm:$0xff]  ;;  %5973 = vmatprep.subr.bf16.mxu0 %v471_v19  ;;  %v591_v38 = vld [vmem:[%s6776_s28 + $0x30] sm:$0xff] }
  0x24   : > { %5953 = vmatprep.mubr.msk.bf16.mxu0 %vm499_vm0, %v495_v25  ;;  %v595_v31 = vpack.c.bf16 %v590_v30, %v589_v28  ;;  %v492_v33 = vld [vmem:[%s6791_s20 + $0x28] sm:$0xff]  ;;  %5966 = vmatmul.mubr.msk.bf16.vlgmr.msra.gmra.mrb[0].mxu1 %vm499_vm0, %v594_v24  ;;  %v592_v39 = vld [vmem:[%s6776_s28 + $0x38] sm:$0xff]  ;;  %v493_v40 = vld [vmem:[%s6791_s20 + $0x30] sm:$0xff]  ;;  %s440_s28 = scalar_lea.vmem %s9281_s3, %s6770_s21  ;;  %v778_v24 = vunpack.c.l.s4 %v6631_v23  ;;  %v780_v25 = vlaneseq  ;;  %s418_s21 = sand.u32 1, %s6621_s14  }
  0x25   : > { %v497_v35 = vpack.c.bf16 %v492_v33, %v491_v32  ;;  %5954 = vmatmul.mubr.msk.bf16.vlgmr.msra.gmra.mrb[0].mxu0 %vm499_vm0, %v496_v29  ;;  %v494_v41 = vld [vmem:[%s6791_s20 + $0x38] sm:$0xff]  ;;  %v674_v42 = vld [vmem:[%s6809_s29] sm:$0xff]  ;;  %v675_v43 = vld [vmem:[%s6809_s29 + $0x8] sm:$0xff]  ;;  %v596_v45 = vpack.c.bf16 %v592_v39, %v591_v38  ;;  %5986 = vmatpush3.bf16.msra.mxu1 %v6832_v50  ;;  %s9217_s17 = scalar_lea.sflag [#allocation3], %s418_s21 }
  0x26   : > { %5969 = vmatprep.mubr.msk.bf16.mxu1 %vm499_vm0, %v595_v31  ;;  %5974 = vmatpush3.bf16.msra.mxu0 %v471_v19  ;;  %v498_v46 = vpack.c.bf16 %v494_v41, %v493_v40  ;;  %v682_v47 = vpack.c.bf16 %v675_v43, %v674_v42  ;;  %v676_v51 = vld [vmem:[%s6809_s29 + $0x10] sm:$0xff]  ;;  %v677_v52 = vld [vmem:[%s6809_s29 + $0x18] sm:$0xff]  ;;  %v678_v53 = vld [vmem:[%s6809_s29 + $0x20] sm:$0xff]  ;;  %v779_v26 = vunpack.c.0.s8 %v778_v24  ;;  %v6918_v27 = vshrl.u32 %v780_v25, 7 }
  0x27   : > { %5957 = vmatprep.mubr.msk.bf16.mxu0 %vm499_vm0, %v497_v35  ;;  %5975 = vmatprep.subr.bf16.mxu0 %v472_v34  ;;  %v679_v54 = vld [vmem:[%s6809_s29 + $0x28] sm:$0xff]  ;;  %v683_v57 = vpack.c.bf16 %v677_v52, %v676_v51  ;;  %v680_v62 = vld [vmem:[%s6809_s29 + $0x30] sm:$0xff]  ;;  %v681_v63 = vld [vmem:[%s6809_s29 + $0x38] sm:$0xff]  ;;  %s5572_s29 = sshll.u32 %s418_s21, 6 }
  0x28   : > { %v684_v58 = vpack.c.bf16 %v679_v54, %v678_v53  ;;  %v763_v0 = vld [vmem:[%s440_s28] sm:$0xff]  ;;  %v764_v1 = vld [vmem:[%s440_s28 + $0x8] sm:$0xff]  ;;  %v685_v3 = vpack.c.bf16 %v681_v63, %v680_v62  ;;  %v765_v5 = vld [vmem:[%s440_s28 + $0x10] sm:$0xff]  ;;  %9324 = vst [vmem:[#allocation9_spill] sm:$0xff] %v6918_v27  ;;  %v6921_v28 = vsub.s32 %v779_v26, %v6918_v27  ;;  %s9183_s30 = scalar_lea.vmem [#allocation2], %s5572_s29 }
  0x29   : > { %v6863_v4 = vpack.c.bf16 %v764_v1, %v763_v0  ;;  %v766_v6 = vld [vmem:[%s440_s28 + $0x18] sm:$0xff]  ;;  %v767_v7 = vld [vmem:[%s440_s28 + $0x20] sm:$0xff]  ;;  %v768_v8 = vld [vmem:[%s440_s28 + $0x28] sm:$0xff]  ;;  %s5433_s26 = sshll.u32 %s9183_s30, 4  ;;  %s9211_s26 = int_to_ptr.vmem [resolvable:$true] %s5433_s26 }
  0x2a   : > { %5976 = vmatpush3.bf16.msra.mxu0 %v472_v34  ;;  %v5628_v10 = vld [vmem:[%s9284_s6 + $0x38] sm:$0xff]  ;;  %v6874_v11 = vpack.c.bf16 %v766_v6, %v765_v5  ;;  %v6876_v12 = vpack.c.bf16 %v768_v8, %v767_v7  ;;  %v769_v14 = vld [vmem:[%s440_s28 + $0x30] sm:$0xff]  ;;  %v5649_v20 = vld [vmem:[%s9284_s6 + $0x40] sm:$0xff] }
  0x2b   : > { %5997 = vmatprep.subr.bf16.mxu0 %v958_v44  ;;  %9320 = vst [vmem:[#allocation5_spill] sm:$0xff] %v6863_v4  ;;  %v1416_v13 = vpack.c.bf16 %v5628_v10, %v5627_v9  ;;  %v770_v15 = vld [vmem:[%s440_s28 + $0x38] sm:$0xff]  ;;  %v5599_v17 = vld [vmem:[%s9283_s5 + $0x90] sm:$0xff]  ;;  %v5650_v21 = vld [vmem:[%s9284_s6 + $0x48] sm:$0xff]  ;;  %s6567_s28 = scalar_lea.vmem %s9211_s26, 1024 }
  0x2c   : > { %5970 = vmatmul.mubr.msk.bf16.gmra.mrb[4].mxu1 %vm499_vm0, %v596_v45  ;;  %9321 = vst [vmem:[#allocation6_spill] sm:$0xff] %v6874_v11  ;;  %9322 = vst [vmem:[#allocation7_spill] sm:$0xff] %v6876_v12  ;;  %v6882_v16 = vpack.c.bf16 %v770_v15, %v769_v14  ;;  %v5600_v18 = vld [vmem:[%s9283_s5 + $0x98] sm:$0xff]  ;;  %v6915_v22 = vpack.c.bf16 %v5650_v21, %v5649_v20  ;;  %v5651_v51 = vld [vmem:[%s9284_s6 + $0x50] sm:$0xff]  ;;  %p6568_p11 = scmp.ne.s32.totalorder %s9211_s26, %s6567_s28 }
  0x2d   : > { %5958 = vmatmul.mubr.msk.bf16.gmra.mrb[4].mxu0 %vm499_vm0, %v498_v46  ;;  %v6902_v19 = vpack.c.bf16 %v5600_v18, %v5599_v17  ;;  %v6937_v46 = vsub.s32 0, %v6918_v27  ;;  %v5652_v52 = vld [vmem:[%s9284_s6 + $0x58] sm:$0xff] }
  0x2e   : > { %5977 = vmatprep.mubr.msk.bf16.mxu0 %vm499_vm0, %v682_v47  ;;  %9323 = vst [vmem:[#allocation8_spill] sm:$0xff] %v6882_v16  ;;  %v6973_v63 = vpack.c.bf16 %v5652_v52, %v5651_v51  ;;  %p6569_p12 = pnand %p6568_p11, %p6728_p5 }
  0x2f   : > { %5987 = vmatprep.subr.bf16.mxu1 %v6902_v19 }
  0x30   : > { %5988 = vmatpush3.bf16.msra.mxu1 %v6902_v19  ;;  %p6570_p13 = pneg %p6569_p12 }
  0x31   : > { %6009 = vmatprep.subr.bf16.mxu1 %v6832_v50 }
  0x35   : > { %5978 = vmatmul.mubr.msk.bf16.vlgmr.msra.gmra.mrb[8].mxu0 %vm499_vm0, %v683_v57 }
  0x36   : > { %5981 = vmatprep.mubr.msk.bf16.mxu0 %vm499_vm0, %v684_v58  ;;  %5998 = vmatpush3.bf16.msra.mxu0 %v958_v44 }
  0x37   : > { %5999 = vmatprep.subr.bf16.mxu0 %v959_v59 }
  0x3a   : > { %6000 = vmatpush3.bf16.msra.mxu0 %v959_v59 }
  0x3b   : > { %6021 = vmatprep.subr.bf16.mxu0 %v1415_v2 }
  0x3d   : > { %5982 = vmatmul.mubr.msk.bf16.gmra.mrb[12].mxu0 %vm499_vm0, %v685_v3 }
  0x3e   : > { %6001 = vmatprep.mubr.msk.bf16.mxu0 %vm499_vm0, %v6863_v4 }
  0x45   : > { %6002 = vmatmul.mubr.msk.bf16.vlgmr.msra.gmra.mrb[16].mxu0 %vm499_vm0, %v6874_v11 }
  0x46   : > { %6005 = vmatprep.mubr.msk.bf16.mxu0 %vm499_vm0, %v6876_v12  ;;  %6022 = vmatpush3.bf16.msra.mxu0 %v1415_v2 }
  0x47   : > { %6023 = vmatprep.subr.bf16.mxu0 %v1416_v13 }
  0x4a   : > { %6024 = vmatpush3.bf16.msra.mxu0 %v1416_v13 }
  0x4b   : > { %6057 = vmatprep.subr.bf16.mxu0 %v6832_v50 }
  0x4d   : > { %6006 = vmatmul.mubr.msk.bf16.gmra.mrb[20].mxu0 %vm499_vm0, %v6882_v16 }
  0x4e   : > { %6025 = vmatprep.mubr.msk.bf16.mxu0 %vm499_vm0, %v6863_v4 }
  0x55   : > { %6026 = vmatmul.mubr.msk.bf16.vlgmr.msra.gmra.mrb[24].mxu0 %vm499_vm0, %v6874_v11 }
  0x56   : > { %6029 = vmatprep.mubr.msk.bf16.mxu0 %vm499_vm0, %v6876_v12  ;;  %6058 = vmatpush3.bf16.msra.mxu0 %v6832_v50 }
  0x57   : > { %6059 = vmatprep.subr.bf16.mxu0 %v6902_v19 }
  0x5a   : > { %6060 = vmatpush3.bf16.msra.mxu0 %v6902_v19 }
  0x5b   : > { %6069 = vmatprep.subr.bf16.mxu0 %v6915_v22 }
  0x5d   : > { %6030 = vmatmul.mubr.msk.bf16.gmra.mrb[28].mxu0 %vm499_vm0, %v6882_v16 }
  0xf7   : > { %v5967_v29 = vpop.f32.mrb[0].mxu1 }
  0xf8   : > { %v1832_v30 = vcombine.high %v5967_v29, %v5967_v29  ;;  %v1839_v31 = vrot.slane %v5967_v29, %v6921_v28  ;;  %v643_v32 = vpop.f32.mrb[1].mxu1  ;;  %v5955_v33 = vpop.f32.mrb[0].mxu0 }
  0xf9   : > { %v776_v34 = vcombine.high %v643_v32, %v643_v32  ;;  %v783_v35 = vrot.slane %v643_v32, %v6921_v28  ;;  %v5968_v36 = vpop.f32.mrb[2].mxu1  ;;  %v6925_v37 = vpop.f32.mrb[1].mxu0  ;;  %v6981_v5 = vmul.f32 0.35355338, %v5955_v33 }
  0xfa   : > { %v1846_v38 = vrot.slane %v1832_v30, %v6921_v28  ;;  %v1847_v39 = vcombine.high %v1839_v31, %v1839_v31  ;;  %v6929_v40 = vrot.slane %v1839_v31, %v6921_v28  ;;  %v646_v41 = vpop.f32.mrb[3].mxu1  ;;  %v6931_v42 = vpop.f32.mrb[2].mxu0  ;;  %v2370_v62 = vrot.slane %v5968_v36, %v6921_v28 }
  0xfb   : > { %v790_v43 = vrot.slane %v776_v34, %v6921_v28  ;;  %v791_v44 = vcombine.high %v783_v35, %v783_v35  ;;  %v6934_v45 = vpop.f32.mrb[3].mxu0  ;;  %v6954_v55 = vrot.slane %v783_v35, %v6921_v28  ;;  %v2363_v3 = vcombine.high %v5968_v36, %v5968_v36 }
  0xfc   : > { %v1848_v47 = vcombine.high %v1846_v38, %v1846_v38  ;;  %v6940_v48 = vrot.slane %v1846_v38, %v6921_v28  ;;  %v6943_v49 = vrot.slane %v1847_v39, %v6921_v28  ;;  %v1877_v53 = vcombine.high %v6929_v40, %v6929_v40 }
  0xfd   : > { %v792_v54 = vcombine.high %v790_v43, %v790_v43  ;;  %v6964_v59 = vrot.slane %v790_v43, %v6921_v28  ;;  %v6967_v60 = vrot.slane %v791_v44, %v6921_v28  ;;  %v1884_v1 = vrot.slane %v6929_v40, %v6937_v46 }
  0xfe   : > { %v6957_v56 = vrot.slane %v1848_v47, %v6921_v28  ;;  %v1878_v57 = vcombine.high %v6940_v48, %v6940_v48  ;;  %v1879_v58 = vcombine.high %v6943_v49, %v6943_v49  ;;  %v1888_v2 = vrot.slane %v6943_v49, %v6937_v46 }
  0xff   : > { %v6970_v61 = vrot.slane %v792_v54, %v6921_v28  ;;  %v6975_v0 = vpop.f32.mrb[4].mxu1  ;;  %v1892_v9 = vrot.slane %v1877_v53, %v6937_v46  ;;  %v821_v13 = vcombine.high %v6954_v55, %v6954_v55  ;;  %v822_v21 = vcombine.high %v6964_v59, %v6964_v59 }
 0x100   : > { %v6983_v6 = vpop.f32.mrb[5].mxu1  ;;  %v6985_v7 = vpop.f32.mrb[4].mxu0  ;;  %v1896_v17 = vrot.slane %v1879_v58, %v6937_v46  ;;  %v1904_v18 = vrot.slane %v6957_v56, %v6937_v46  ;;  %v7002_v20 = vrot.slane %v1878_v57, %v6937_v46  ;;  %v823_v25 = vcombine.high %v6967_v60, %v6967_v60 }
 0x101   : > { %v6994_v14 = vpop.f32.mrb[5].mxu0  ;;  %v6996_v15 = vpop.f32.mrb[6].mxu1  ;;  %v828_v29 = vrot.slane %v6954_v55, %v6937_v46  ;;  %v2378_v30 = vcombine.high %v2370_v62, %v2370_v62  ;;  %v7019_v32 = vrot.slane %v2363_v3, %v6921_v28  ;;  %v7022_v33 = vrot.slane %v2370_v62, %v6921_v28 }
 0x102   : > { %v7006_v23 = vpop.f32.mrb[7].mxu1  ;;  %v7008_v24 = vpop.f32.mrb[6].mxu0  ;;  %v1232_v34 = vcombine.high %v646_v41, %v646_v41  ;;  %v1239_v35 = vrot.slane %v646_v41, %v6921_v28  ;;  %v832_v36 = vrot.slane %v6967_v60, %v6937_v46  ;;  %v836_v38 = vrot.slane %v821_v13, %v6937_v46 }
 0x103   : > { %v7016_v31 = vpop.f32.mrb[7].mxu0  ;;  %v844_v39 = vrot.slane %v6964_v59, %v6937_v46  ;;  %v7031_v40 = vrot.slane %v2378_v30, %v6921_v28  ;;  %v848_v43 = vrot.slane %v6970_v61, %v6937_v46  ;;  %v2408_v44 = vcombine.high %v7022_v33, %v7022_v33 }
 0x104   : > { %v1246_v47 = vrot.slane %v1232_v34, %v6921_v28  ;;  %v1247_v41 = vcombine.high %v1239_v35, %v1239_v35  ;;  %v840_v49 = vrot.slane %v823_v25, %v6937_v46  ;;  %v852_v51 = vrot.slane %v822_v21, %v6937_v46 }
 0x105   : > { %v2410_v52 = vcombine.high %v7031_v40, %v7031_v40  ;;  %v577_v53 = vmul.f32 0.35355338, %v6925_v37  ;;  %v7047_v55 = vrot.slane %v7019_v32, %v6921_v28  ;;  %v1255_v58 = vrot.slane %v1239_v35, %v6921_v28 }
 0x106   : > { %v1248_v57 = vcombine.high %v1246_v47, %v1246_v47  ;;  %v7055_v62 = vrot.slane %v2408_v44, %v6937_v46  ;;  %v1262_v3 = vrot.slane %v1246_v47, %v6921_v28  ;;  %v1269_v13 = vrot.slane %v1247_v41, %v6921_v28 }
 0x107   : > { %v7058_v37 = vrot.slane %v2410_v52, %v6937_v46  ;;  %v1277_v25 = vcombine.high %v1255_v58, %v1255_v58  ;;  %v1284_v30 = vrot.slane %v1255_v58, %v6937_v46  ;;  %v7065_v34 = vmul.f32 0.35355338, %v6934_v45 }
 0x108   : > { %v1276_v21 = vrot.slane %v1248_v57, %v6921_v28  ;;  %v1921_v35 = vmul.f32 %v1884_v1, %v6981_v5  ;;  %v1922_v44 = vmul.f32 %v1888_v2, %v6981_v5  ;;  %v1278_v54 = vcombine.high %v1262_v3, %v1262_v3 }
 0x109   : > { %v1279_v60 = vcombine.high %v1269_v13, %v1269_v13  ;;  %v1288_v59 = vrot.slane %v1269_v13, %v6937_v46  ;;  %v1292_v47 = vrot.slane %v1277_v25, %v6937_v46  ;;  %v1300_v41 = vrot.slane %v1262_v3, %v6937_v46 }
 0x10a   : > { %v1280_v52 = vcombine.high %v1276_v21, %v1276_v21  ;;  %v1304_v57 = vrot.slane %v1276_v21, %v6937_v46  ;;  %v1929_v26 = vpack.c.bf16 %v1922_v44, %v1921_v35  ;;  %v1308_v45 = vrot.slane %v1278_v54, %v6937_v46 }
 0x10b   : > { %v1296_v58 = vrot.slane %v1279_v60, %v6937_v46  ;;  %v865_v8 = vmul.f32 %v828_v29, %v577_v53  ;;  %v866_v1 = vmul.f32 %v832_v36, %v577_v53  ;;  %v1923_v2 = vmul.f32 %v1892_v9, %v6981_v5 }
 0x10c   : > { %6061 = vmatprep.mubr.msk.bf16.mxu0 %vm499_vm0, %v1929_v26  ;;  %v1924_v10 = vmul.f32 %v1896_v17, %v6981_v5  ;;  %v867_v13 = vmul.f32 %v836_v38, %v577_v53  ;;  %v868_v27 = vmul.f32 %v840_v49, %v577_v53  ;;  %v9325_v3 = vrot.slane %v6940_v48, %v6937_v46 }
 0x10d   : > { %v873_v25 = vpack.c.bf16 %v866_v1, %v865_v8  ;;  %v1926_v60 = vmul.f32 %v1904_v18, %v6981_v5  ;;  %v869_v35 = vmul.f32 %v844_v39, %v577_v53  ;;  %v870_v36 = vmul.f32 %v848_v43, %v577_v53  ;;  %v7101_v43 = vpop.f32.mrb[8].mxu0 }
 0x10e   : > { %v1925_v21 = vmul.f32 %v9325_v3, %v6981_v5  ;;  %v1930_v54 = vpack.c.bf16 %v1924_v10, %v1923_v2  ;;  %v874_v29 = vpack.c.bf16 %v868_v27, %v867_v13  ;;  %v9326_v9 = vcombine.high %v6957_v56, %v6957_v56  ;;  %v7109_v49 = vpop.f32.mrb[9].mxu0 }
 0x10f   : > { %5989 = vmatprep.mubr.msk.bf16.mxu1 %vm499_vm0, %v873_v25  ;;  %v1927_v8 = vmul.f32 %v7002_v20, %v6981_v5  ;;  %v9327_v48 = vcombine.high %v6970_v61, %v6970_v61  ;;  %v871_v38 = vmul.f32 %v852_v51, %v577_v53  ;;  %v7095_v27 = vmul.f32 0.35355338, %v6931_v42  ;;  %v7119_v44 = vpop.f32.mrb[10].mxu0 }
 0x110   : > { %v1912_v26 = vrot.slane %v9326_v9, %v6937_v46  ;;  %v1931_v17 = vpack.c.bf16 %v1926_v60, %v1925_v21  ;;  %6062 = vmatmul.mubr.msk.bf16.vlgmr.msra.gmra.mrb[32].mxu0 %vm499_vm0, %v1930_v54  ;;  %5990 = vmatmul.mubr.msk.bf16.vlgmr.msra.gmra.mrb[8].mxu1 %vm499_vm0, %v874_v29  ;;  %v875_v56 = vpack.c.bf16 %v870_v36, %v869_v35  ;;  %v7126_v2 = vpop.f32.mrb[11].mxu0  ;;  %v5689_v9 = vld [vmem:[%s9284_s6 + $0x80] sm:$0xff] }
 0x111   : > { %v856_v18 = vrot.slane %v9327_v48, %v6937_v46  ;;  %v1321_v39 = vmul.f32 %v1284_v30, %v7065_v34  ;;  %6010 = vmatpush3.bf16.msra.mxu1 %v6832_v50  ;;  %v1322_v20 = vmul.f32 %v1288_v59, %v7065_v34  ;;  %v7107_v42 = vmul.f32 %v1292_v47, %v7065_v34  ;;  %v7146_v25 = vpop.f32.mrb[12].mxu0 }
 0x112   : > { %v1928_v10 = vmul.f32 %v1912_v26, %v6981_v5  ;;  %6065 = vmatprep.mubr.msk.bf16.mxu0 %vm499_vm0, %v1931_v17  ;;  %5993 = vmatprep.mubr.msk.bf16.mxu1 %vm499_vm0, %v875_v56  ;;  %v7114_v51 = vmul.f32 %v1296_v58, %v7065_v34  ;;  %v7117_v30 = vmul.f32 %v1300_v41, %v7065_v34  ;;  %v7158_v60 = vpop.f32.mrb[13].mxu0 }
 0x113   : > { %v872_v61 = vmul.f32 %v856_v18, %v577_v53  ;;  %6011 = vmatprep.subr.bf16.mxu1 %v6902_v19  ;;  %9328 = vst [vmem:[#allocation10_spill] sm:$0xff] %v7119_v44  ;;  %6070 = vmatpush3.bf16.msra.mxu0 %v6915_v22  ;;  %v1329_v59 = vpack.c.bf16 %v1322_v20, %v1321_v39  ;;  %9329 = vst [vmem:[#allocation11_spill] sm:$0xff] %v7126_v2 }
 0x114   : > { %v1932_v5 = vpack.c.bf16 %v1928_v10, %v1927_v8  ;;  %v7123_v47 = vmul.f32 %v1304_v57, %v7065_v34  ;;  %v1312_v1 = vrot.slane %v1280_v52, %v6937_v46  ;;  %6071 = vmatprep.subr.bf16.mxu0 %v6973_v63  ;;  %v1330_v58 = vpack.c.bf16 %v7114_v51, %v7107_v42  ;;  %v7197_v8 = vpop.f32.mrb[14].mxu0 }
 0x115   : > { %v876_v53 = vpack.c.bf16 %v872_v61, %v871_v38  ;;  %v7132_v41 = vmul.f32 %v1308_v45, %v7065_v34  ;;  %v9330_v22 = vrot.slane %v7022_v33, %v6937_v46  ;;  %v9331_v52 = vrot.slane %v7031_v40, %v6937_v46  ;;  %9332 = vst [vmem:[#allocation12_spill] sm:$0xff] %v7146_v25  ;;  %v7205_v56 = vpop.f32.mrb[15].mxu0 }
 0x116   : > { %6012 = vmatpush3.bf16.msra.mxu1 %v6902_v19  ;;  %v1331_v45 = vpack.c.bf16 %v7123_v47, %v7117_v30  ;;  %v7152_v3 = vmul.f32 %v1312_v1, %v7065_v34  ;;  %v3956_v33 = vcombine.high %v6975_v0, %v6975_v0  ;;  %v3963_v21 = vrot.slane %v6975_v0, %v6921_v28 }
 0x117   : > { %v7138_v13 = vmul.f32 %v9330_v22, %v7095_v27  ;;  %v7144_v57 = vmul.f32 %v9331_v52, %v7095_v27  ;;  %9333 = vst [vmem:[#allocation13_spill] sm:$0xff] %v7158_v60  ;;  %v7164_v35 = vmul.f32 %v7055_v62, %v7095_v27  ;;  %v7168_v54 = vmul.f32 %v7058_v37, %v7095_v27 }
 0x118   : > { %v2894_v34 = vcombine.high %v6983_v6, %v6983_v6  ;;  %v9334_v0 = vcombine.high %v7019_v32, %v7019_v32  ;;  %v2409_v36 = vcombine.high %v7047_v55, %v7047_v55  ;;  %6072 = vmatpush3.bf16.msra.mxu0 %v6973_v63  ;;  %v3970_v37 = vrot.slane %v3956_v33, %v6921_v28  ;;  %v5690_v32 = vld [vmem:[%s9284_s6 + $0x88] sm:$0xff]  ;;  %v7210_v61 = vpop.f32.mrb[16].mxu0 }
 0x119   : > { %6066 = vmatmul.mubr.msk.bf16.gmra.mrb[36].mxu0 %vm499_vm0, %v1932_v5  ;;  %5994 = vmatmul.mubr.msk.bf16.gmra.mrb[12].mxu1 %vm499_vm0, %v876_v53  ;;  %v2901_v26 = vrot.slane %v6983_v6, %v6921_v28  ;;  %9335 = vst [vmem:[#allocation14_spill] sm:$0xff] %v7197_v8  ;;  %v3971_v48 = vcombine.high %v3963_v21, %v3963_v21  ;;  %9336 = vst [vmem:[#allocation15_spill] sm:$0xff] %v7205_v56  ;;  %v7219_v1 = vpop.f32.mrb[17].mxu0 }
 0x11a   : > { %v7176_v29 = vrot.slane %v9334_v0, %v6921_v28  ;;  %v2908_v17 = vrot.slane %v2894_v34, %v6921_v28  ;;  %6013 = vmatprep.mubr.msk.bf16.mxu1 %vm499_vm0, %v1329_v59  ;;  %6073 = vmatprep.mubr.msk.bf16.mxu0 %vm499_vm0, %v6863_v4  ;;  %v3972_v18 = vcombine.high %v3970_v37, %v3970_v37  ;;  %v7227_v34 = vpop.f32.mrb[18].mxu0 }
 0x11b   : > { %v7203_v38 = vrot.slane %v3963_v21, %v6921_v28  ;;  %6093 = vmatprep.subr.bf16.mxu0 %v6832_v50  ;;  %v2909_v10 = vcombine.high %v2901_v26, %v2901_v26  ;;  %v7208_v39 = vpack.c.bf16 %v5690_v32, %v5689_v9  ;;  %v2431_v5 = vrot.slane %v7047_v55, %v6937_v46 }
 0x11c   : > { %v2910_v6 = vcombine.high %v2908_v17, %v2908_v17  ;;  %v2411_v20 = vcombine.high %v7176_v29, %v7176_v29  ;;  %v2435_v53 = vrot.slane %v7176_v29, %v6937_v46  ;;  %v2439_v59 = vrot.slane %v2409_v36, %v6937_v46 }
 0x11d   : > { %v7222_v22 = vrot.slane %v3970_v37, %v6921_v28  ;;  %v2917_v52 = vrot.slane %v2901_v26, %v6921_v28  ;;  %v2924_v33 = vrot.slane %v2908_v17, %v6921_v28  ;;  %v581_v21 = vmul.f32 0.35355338, %v6994_v14  ;;  %v7239_v37 = vpop.f32.mrb[19].mxu0 }
 0x11e   : > { %v7230_v55 = vrot.slane %v3971_v48, %v6921_v28  ;;  %v7233_v0 = vrot.slane %v3972_v18, %v6921_v28  ;;  %v4008_v36 = vrot.slane %v7203_v38, %v6937_v46  ;;  %v2931_v9 = vrot.slane %v2909_v10, %v6921_v28 }
 0x11f   : > { %v2938_v14 = vrot.slane %v2910_v6, %v6921_v28  ;;  %v2939_v32 = vcombine.high %v2917_v52, %v2917_v52  ;;  %v2940_v26 = vcombine.high %v2924_v33, %v2924_v33  ;;  %v2946_v48 = vrot.slane %v2917_v52, %v6937_v46 }
 0x120   : > { %v7243_v17 = vpop.f32.mrb[20].mxu0  ;;  %v2962_v18 = vrot.slane %v2924_v33, %v6937_v46  ;;  %v7248_v63 = vmul.f32 %v2431_v5, %v7095_v27  ;;  %v7251_v29 = vmul.f32 %v2435_v53, %v7095_v27  ;;  %v2941_v10 = vcombine.high %v2931_v9, %v2931_v9 }
 0x121   : > { %v7253_v40 = vpop.f32.mrb[21].mxu0  ;;  %6074 = vmatmul.mubr.msk.bf16.vlgmr.msra.gmra.mrb[40].mxu0 %vm499_vm0, %v6874_v11  ;;  %6014 = vmatmul.mubr.msk.bf16.vlgmr.msra.gmra.mrb[16].mxu1 %vm499_vm0, %v1330_v58  ;;  %v2942_v6 = vcombine.high %v2938_v14, %v2938_v14  ;;  %v2950_v52 = vrot.slane %v2931_v9, %v6937_v46  ;;  %v2954_v5 = vrot.slane %v2939_v32, %v6937_v46  ;;  %v7274_v58 = vmul.f32 0.35355338, %v6985_v7 }
 0x122   : > { %v7262_v33 = vpop.f32.mrb[22].mxu0  ;;  %6017 = vmatprep.mubr.msk.bf16.mxu1 %vm499_vm0, %v1331_v45  ;;  %6077 = vmatprep.mubr.msk.bf16.mxu0 %vm499_vm0, %v6876_v12  ;;  %v2966_v42 = vrot.slane %v2938_v14, %v6937_v46  ;;  %v2970_v51 = vrot.slane %v2940_v26, %v6937_v46  ;;  %v2958_v30 = vrot.slane %v2941_v10, %v6937_v46 }
 0x123   : > { %v7276_v53 = vpop.f32.mrb[23].mxu0  ;;  %6094 = vmatpush3.bf16.msra.mxu0 %v6832_v50  ;;  %v2443_v45 = vrot.slane %v2411_v20, %v6937_v46  ;;  %v7284_v9 = vmul.f32 %v2439_v59, %v7095_v27  ;;  %v7287_v14 = vmul.f32 %v2946_v48, %v581_v21  ;;  %v7289_v7 = vmul.f32 %v2950_v52, %v581_v21 }
 0x124   : > { %6095 = vmatprep.subr.bf16.mxu0 %v6902_v19  ;;  %v7291_v32 = vmul.f32 %v2954_v5, %v581_v21  ;;  %v7293_v26 = vmul.f32 %v2962_v18, %v581_v21  ;;  %v7298_v62 = vmul.f32 %v2958_v30, %v581_v21  ;;  %v7300_v47 = vmul.f32 %v2966_v42, %v581_v21 }
 0x125   : > { %v7296_v10 = vmul.f32 %v2443_v45, %v7095_v27  ;;  %v2974_v20 = vrot.slane %v2942_v6, %v6937_v46  ;;  %v4002_v59 = vcombine.high %v7222_v22, %v7222_v22  ;;  %v7307_v52 = vmul.f32 %v2970_v51, %v581_v21 }
 0x126   : > { %v4494_v18 = vrot.slane %v6996_v15, %v6921_v28  ;;  %v4003_v45 = vcombine.high %v7230_v55, %v7230_v55  ;;  %v3425_v27 = vcombine.high %v7006_v23, %v7006_v23  ;;  %v7345_v42 = vmul.f32 %v4008_v36, %v7274_v58 }
 0x127   : > { %6096 = vmatpush3.bf16.msra.mxu0 %v6902_v19  ;;  %v7320_v30 = vmul.f32 %v2974_v20, %v581_v21  ;;  %v9340_v21 = vpack.c.bf16 %v7152_v3, %v7132_v41  ;;  %v9342_v44 = vpack.c.bf16 %v7144_v57, %v7138_v13  ;;  %v4012_v41 = vrot.slane %v7230_v55, %v6937_v46 }
 0x128   : > { %v7311_v5 = vpop.f32.mrb[24].mxu0  ;;  %6129 = vmatprep.subr.bf16.mxu0 %v6832_v50  ;;  %v4502_v48 = vcombine.high %v4494_v18, %v4494_v18  ;;  %v7328_v8 = vrot.slane %v4494_v18, %v6921_v28  ;;  %v3432_v18 = vrot.slane %v7006_v23, %v6921_v28  ;;  %v582_v23 = vmul.f32 0.35355338, %v7016_v31 }
 0x129   : > { %9337 = vst [vmem:[#allocation16_spill] sm:$0xff] %v7311_v5  ;;  %v7322_v51 = vpop.f32.mrb[25].mxu0  ;;  %6078 = vmatmul.mubr.msk.bf16.gmra.mrb[44].mxu0 %vm499_vm0, %v6882_v16  ;;  %6018 = vmatmul.mubr.msk.bf16.gmra.mrb[20].mxu1 %vm499_vm0, %v9340_v21  ;;  %v9343_v36 = vcombine.high %v7203_v38, %v7203_v38  ;;  %v3439_v13 = vrot.slane %v3425_v27, %v6921_v28 }
 0x12a   : > { %9338 = vst [vmem:[#allocation17_spill] sm:$0xff] %v7322_v51  ;;  %v7332_v6 = vpop.f32.mrb[26].mxu0  ;;  %6097 = vmatprep.mubr.msk.bf16.mxu0 %vm499_vm0, %v9342_v44  ;;  %v7356_v3 = vrot.slane %v4502_v48, %v6921_v28  ;;  %v4532_v21 = vcombine.high %v7328_v8, %v7328_v8  ;;  %v3440_v57 = vcombine.high %v3432_v18, %v3432_v18 }
 0x12b   : > { %9339 = vst [vmem:[#allocation18_spill] sm:$0xff] %v7332_v6  ;;  %v7347_v56 = vpop.f32.mrb[27].mxu0  ;;  %v4016_v20 = vrot.slane %v9343_v36, %v6937_v46  ;;  %v3448_v44 = vrot.slane %v3432_v18, %v6921_v28  ;;  %v4004_v55 = vcombine.high %v7233_v0, %v7233_v0  ;;  %v4020_v48 = vrot.slane %v4003_v45, %v6937_v46 }
 0x12c   : > { %9341 = vst [vmem:[#allocation19_spill] sm:$0xff] %v7347_v56  ;;  %v4024_v25 = vrot.slane %v7222_v22, %v6937_v46  ;;  %v4534_v31 = vcombine.high %v7356_v3, %v7356_v3  ;;  %v4028_v38 = vrot.slane %v7233_v0, %v6937_v46  ;;  %v4032_v36 = vrot.slane %v4002_v59, %v6937_v46 }
 0x12d   : > { %v3441_v27 = vcombine.high %v3439_v13, %v3439_v13  ;;  %v3455_v60 = vrot.slane %v3439_v13, %v6921_v28  ;;  %v4539_v18 = vrot.slane %v7328_v8, %v6937_v46  ;;  %v4543_v45 = vrot.slane %v7356_v3, %v6937_v46 }
 0x12e   : > { %v4547_v2 = vrot.slane %v4532_v21, %v6937_v46  ;;  %v4551_v22 = vrot.slane %v4534_v31, %v6937_v46  ;;  %v3462_v6 = vrot.slane %v3440_v57, %v6921_v28  ;;  %v3470_v59 = vcombine.high %v3448_v44, %v3448_v44 }
 0x12f   : > { %v3469_v0 = vrot.slane %v3441_v27, %v6921_v28  ;;  %v3471_v51 = vcombine.high %v3455_v60, %v3455_v60  ;;  %v3477_v13 = vrot.slane %v3448_v44, %v6937_v46  ;;  %v3493_v8 = vrot.slane %v3455_v60, %v6937_v46 }
 0x130   : > { %v7384_v56 = vpop.f32.mrb[28].mxu0  ;;  %v7393_v3 = vmul.f32 %v4012_v41, %v7274_v58  ;;  %v7396_v21 = vmul.f32 %v4016_v20, %v7274_v58  ;;  %v9346_v57 = vpack.c.bf16 %v7168_v54, %v7164_v35  ;;  %v3472_v27 = vcombine.high %v3462_v6, %v3462_v6 }
 0x131   : > { %9344 = vst [vmem:[#allocation20_spill] sm:$0xff] %v7384_v56  ;;  %v7388_v5 = vpop.f32.mrb[29].mxu0  ;;  %v3473_v56 = vcombine.high %v3469_v0, %v3469_v0  ;;  %v3485_v44 = vrot.slane %v3470_v59, %v6937_v46  ;;  %v9348_v41 = vpack.c.bf16 %v7251_v29, %v7248_v63  ;;  %v3497_v20 = vrot.slane %v3469_v0, %v6937_v46 }
 0x132   : > { %9345 = vst [vmem:[#allocation21_spill] sm:$0xff] %v7388_v5  ;;  %v7398_v31 = vpop.f32.mrb[30].mxu0  ;;  %6098 = vmatmul.mubr.msk.bf16.vlgmr.msra.gmra.mrb[48].mxu0 %vm499_vm0, %v9346_v57  ;;  %v3481_v5 = vrot.slane %v3462_v6, %v6937_v46  ;;  %v3501_v35 = vrot.slane %v3471_v51, %v6937_v46  ;;  %v7416_v54 = vmul.f32 0.35355338, %v7008_v24  ;;  %v7418_v57 = vmul.f32 %v3477_v13, %v582_v23 }
 0x133   : > { %v7406_v60 = vpop.f32.mrb[31].mxu0  ;;  %6101 = vmatprep.mubr.msk.bf16.mxu0 %vm499_vm0, %v9348_v41  ;;  %6130 = vmatpush3.bf16.msra.mxu0 %v6832_v50  ;;  %v3489_v6 = vrot.slane %v3472_v27, %v6937_v46  ;;  %v7424_v63 = vmul.f32 %v3485_v44, %v582_v23  ;;  %v7426_v29 = vmul.f32 %v3493_v8, %v582_v23 }
 0x134   : > { %9347 = vst [vmem:[#allocation22_spill] sm:$0xff] %v7406_v60  ;;  %6131 = vmatprep.subr.bf16.mxu0 %v6902_v19  ;;  %v7422_v59 = vmul.f32 %v3481_v5, %v582_v23  ;;  %v7428_v41 = vmul.f32 %v3497_v20, %v582_v23  ;;  %v3505_v0 = vrot.slane %v3473_v56, %v6937_v46 }
 0x135   : > { %v7431_v51 = vmul.f32 %v3501_v35, %v582_v23  ;;  %v4053_v24 = vpack.c.bf16 %v7393_v3, %v7345_v42  ;;  %v7437_v60 = vmul.f32 %v3489_v6, %v582_v23  ;;  %v7440_v5 = vmul.f32 %v4020_v48, %v7274_v58  ;;  %v5635_v3 = vld [vmem:[%s9285_s7 + $0x30] sm:$0xff] }
 0x136   : > { %v3522_v13 = vpack.c.bf16 %v7422_v59, %v7418_v57  ;;  %v7443_v8 = vmul.f32 %v4024_v25, %v7274_v58  ;;  %v3524_v56 = vpack.c.bf16 %v7428_v41, %v7426_v29  ;;  %v7448_v27 = vmul.f32 %v3505_v0, %v582_v23 }
 0x137   : > { %6132 = vmatpush3.bf16.msra.mxu0 %v6902_v19  ;;  %v7451_v44 = vmul.f32 %v4028_v38, %v7274_v58  ;;  %v4036_v20 = vrot.slane %v4004_v55, %v6937_v46  ;;  %v3523_v48 = vpack.c.bf16 %v7437_v60, %v7424_v63  ;;  %v4054_v25 = vpack.c.bf16 %v7440_v5, %v7396_v21 }
 0x138   : > { %6141 = vmatprep.subr.bf16.mxu0 %v7208_v39  ;;  %v7460_v35 = vmul.f32 %v4032_v36, %v7274_v58  ;;  %v3525_v23 = vpack.c.bf16 %v7448_v27, %v7431_v51  ;;  %v9349_v55 = vpack.c.bf16 %v7296_v10, %v7284_v9  ;;  %v7474_v60 = vmul.f32 %v4539_v18, %v7416_v54 }
 0x139   : > { %v4055_v38 = vpack.c.bf16 %v7451_v44, %v7443_v8  ;;  %v7467_v57 = vmul.f32 %v4036_v20, %v7274_v58  ;;  %v7477_v36 = vmul.f32 %v4543_v45, %v7416_v54  ;;  %v7480_v6 = vmul.f32 %v4547_v2, %v7416_v54  ;;  %v5691_v2 = vld [vmem:[%s9284_s6 + $0x90] sm:$0xff]  ;;  %v5692_v45 = vld [vmem:[%s9284_s6 + $0x98] sm:$0xff] }
 0x13a   : > { %6102 = vmatmul.mubr.msk.bf16.gmra.mrb[52].mxu0 %vm499_vm0, %v9349_v55  ;;  %v7483_v59 = vmul.f32 %v4551_v22, %v7416_v54  ;;  %v9350_v58 = vpack.c.bf16 %v7289_v7, %v7287_v14  ;;  %v3078_v14 = vpack.c.bf16 %v5692_v45, %v5691_v2  ;;  %v4487_v7 = vcombine.high %v6996_v15, %v6996_v15  ;;  %v5729_v45 = vld [vmem:[%s9284_s6 + $0xc0] sm:$0xff] }
 0x13b   : > { %v4056_v9 = vpack.c.bf16 %v7467_v57, %v7460_v35  ;;  %v4584_v10 = vpack.c.bf16 %v7477_v36, %v7474_v60  ;;  %v9351_v22 = vpack.c.bf16 %v7298_v62, %v7291_v32  ;;  %v9352_v63 = vpack.c.bf16 %v7300_v47, %v7293_v26 }
 0x13c   : > { %6133 = vmatprep.mubr.msk.bf16.mxu0 %vm499_vm0, %v9350_v58  ;;  %v4585_v18 = vpack.c.bf16 %v7483_v59, %v7480_v6  ;;  %v4501_v29 = vrot.slane %v4487_v7, %v6921_v28  ;;  %v9353_v15 = vpack.c.bf16 %v7320_v30, %v7307_v52  ;;  %v5633_v7 = vld [vmem:[%s9285_s7 + $0x20] sm:$0xff]  ;;  %v2250_v8 = vcombine.high %v7101_v43, %v7101_v43 }
 0x13d   : > { %v2257_v44 = vrot.slane %v7101_v43, %v6921_v28  ;;  %v1126_v59 = vrot.slane %v7109_v49, %v6921_v28 }
 0x13e   : > { %v4503_v41 = vcombine.high %v4501_v29, %v4501_v29  ;;  %v4517_v62 = vrot.slane %v4501_v29, %v6921_v28  ;;  %v2264_v6 = vrot.slane %v2250_v8, %v6921_v28 }
 0x140   : > { %v4531_v47 = vrot.slane %v4503_v41, %v6921_v28  ;;  %v4533_v32 = vcombine.high %v4517_v62, %v4517_v62  ;;  %v7648_v41 = vrot.slane %v2257_v44, %v6921_v28 }
 0x142   : > { %6134 = vmatmul.mubr.msk.bf16.vlgmr.msra.gmra.mrb[56].mxu0 %vm499_vm0, %v9351_v22  ;;  %v4559_v26 = vrot.slane %v4531_v47, %v6937_v46  ;;  %v4535_v52 = vcombine.high %v4531_v47, %v4531_v47  ;;  %v4563_v30 = vrot.slane %v4533_v32, %v6937_v46  ;;  %9354 = vst [vmem:[#allocation23_spill] sm:$0xff] %v7648_v41 }
 0x143   : > { %6137 = vmatprep.mubr.msk.bf16.mxu0 %vm499_vm0, %v9352_v63  ;;  %6142 = vmatpush3.bf16.msra.mxu0 %v7208_v39  ;;  %v4555_v39 = vrot.slane %v4517_v62, %v6937_v46  ;;  %v1134_v62 = vcombine.high %v1126_v59, %v1126_v59 }
 0x144   : > { %6143 = vmatprep.subr.bf16.mxu0 %v3078_v14  ;;  %v4581_v51 = vmul.f32 %v4559_v26, %v7416_v54  ;;  %v4567_v20 = vrot.slane %v4535_v52, %v6937_v46  ;;  %v4582_v55 = vmul.f32 %v4563_v30, %v7416_v54 }
 0x145   : > { %v4580_v0 = vmul.f32 %v4555_v39, %v7416_v54  ;;  %v7659_v39 = vrot.slane %v2264_v6, %v6921_v28 }
 0x146   : > { %v4583_v58 = vmul.f32 %v4567_v20, %v7416_v54 }
 0x147   : > { %6144 = vmatpush3.bf16.msra.mxu0 %v3078_v14  ;;  %v4586_v27 = vpack.c.bf16 %v4581_v51, %v4580_v0  ;;  %v5730_v14 = vld [vmem:[%s9284_s6 + $0xc8] sm:$0xff]  ;;  %9356 = vst [vmem:[#allocation25_spill] sm:$0xff] %v7659_v39  ;;  %v2295_v0 = vcombine.high %v7648_v41, %v7648_v41 }
 0x148   : > { %6165 = vmatprep.subr.bf16.mxu0 %v6832_v50  ;;  %v4587_v2 = vpack.c.bf16 %v4583_v58, %v4582_v55  ;;  %v4139_v54 = vpack.c.bf16 %v5730_v14, %v5729_v45 }
 0x14a   : > { %6138 = vmatmul.mubr.msk.bf16.gmra.mrb[60].mxu0 %vm499_vm0, %v9353_v15  ;;  %v2266_v15 = vcombine.high %v2264_v6, %v2264_v6  ;;  %v7724_v6 = vrot.slane %v2295_v0, %v6937_v46 }
 0x14b   : > { %6145 = vmatprep.mubr.msk.bf16.mxu0 %vm499_vm0, %v6863_v4 }
 0x14c   : > { %v7676_v55 = vrot.slane %v2266_v15, %v6921_v28  ;;  %9358 = vst [vmem:[#allocation27_spill] sm:$0xff] %v7724_v6 }
 0x14e   : > { %9357 = vst [vmem:[#allocation26_spill] sm:$0xff] %v7676_v55 }
 0x152   : > { %6146 = vmatmul.mubr.msk.bf16.vlgmr.msra.gmra.mrb[64].mxu0 %vm499_vm0, %v6874_v11 }
 0x153   : > { %6149 = vmatprep.mubr.msk.bf16.mxu0 %vm499_vm0, %v6876_v12  ;;  %6166 = vmatpush3.bf16.msra.mxu0 %v6832_v50 }
 0x154   : > { %6167 = vmatprep.subr.bf16.mxu0 %v6902_v19 }
 0x157   : > { %6168 = vmatpush3.bf16.msra.mxu0 %v6902_v19 }
 0x158   : > { %6201 = vmatprep.subr.bf16.mxu0 %v6832_v50 }
 0x15a   : > { %6150 = vmatmul.mubr.msk.bf16.gmra.mrb[68].mxu0 %vm499_vm0, %v6882_v16 }
 0x15b   : > { %6169 = vmatprep.mubr.msk.bf16.mxu0 %vm499_vm0, %v3522_v13  ;;  %v5731_v13 = vld [vmem:[%s9284_s6 + $0xd0] sm:$0xff] }
 0x162   : > { %6170 = vmatmul.mubr.msk.bf16.vlgmr.msra.gmra.mrb[72].mxu0 %vm499_vm0, %v3523_v48 }
 0x163   : > { %6173 = vmatprep.mubr.msk.bf16.mxu0 %vm499_vm0, %v3524_v56  ;;  %6202 = vmatpush3.bf16.msra.mxu0 %v6832_v50  ;;  %v5732_v56 = vld [vmem:[%s9284_s6 + $0xd8] sm:$0xff] }
 0x164   : > { %6203 = vmatprep.subr.bf16.mxu0 %v6902_v19  ;;  %v4140_v48 = vpack.c.bf16 %v5732_v56, %v5731_v13 }
 0x167   : > { %6204 = vmatpush3.bf16.msra.mxu0 %v6902_v19 }
 0x168   : > { %6213 = vmatprep.subr.bf16.mxu0 %v4139_v54 }
 0x16a   : > { %6174 = vmatmul.mubr.msk.bf16.gmra.mrb[76].mxu0 %vm499_vm0, %v3525_v23  ;;  %v5634_v23 = vld [vmem:[%s9285_s7 + $0x28] sm:$0xff] }
 0x16b   : > { %6205 = vmatprep.mubr.msk.bf16.mxu0 %vm499_vm0, %v4053_v24  ;;  %v1499_v42 = vpack.c.bf16 %v5634_v23, %v5633_v7  ;;  %v1050_v24 = vld [vmem:[%s9285_s7 + $0x8] sm:$0xff] }
 0x16d   : > { %6033 = vmatprep.subr.bf16.mxu1 %v1499_v42 }
 0x16e   : > { %6034 = vmatpush3.bf16.msra.mxu1 %v1499_v42 }
 0x172   : > { %6206 = vmatmul.mubr.msk.bf16.vlgmr.msra.gmra.mrb[80].mxu0 %vm499_vm0, %v4054_v25 }
 0x173   : > { %6209 = vmatprep.mubr.msk.bf16.mxu0 %vm499_vm0, %v4055_v38  ;;  %6214 = vmatpush3.bf16.msra.mxu0 %v4139_v54  ;;  %v1119_v38 = vcombine.high %v7109_v49, %v7109_v49 }
 0x174   : > { %6215 = vmatprep.subr.bf16.mxu0 %v4140_v48 }
 0x175   : > { %v1133_v49 = vrot.slane %v1119_v38, %v6921_v28 }
 0x177   : > { %6216 = vmatpush3.bf16.msra.mxu0 %v4140_v48  ;;  %v1135_v30 = vcombine.high %v1133_v49, %v1133_v49  ;;  %v7679_v58 = vrot.slane %v1133_v49, %v6921_v28 }
 0x178   : > { %6237 = vmatprep.subr.bf16.mxu0 %v6832_v50 }
 0x17a   : > { %6210 = vmatmul.mubr.msk.bf16.gmra.mrb[84].mxu0 %vm499_vm0, %v4056_v9 }
 0x17b   : > { %6217 = vmatprep.mubr.msk.bf16.mxu0 %vm499_vm0, %v6863_v4 }
 0x182   : > { %6218 = vmatmul.mubr.msk.bf16.vlgmr.msra.gmra.mrb[88].mxu0 %vm499_vm0, %v6874_v11 }
 0x183   : > { %6221 = vmatprep.mubr.msk.bf16.mxu0 %vm499_vm0, %v6876_v12  ;;  %6238 = vmatpush3.bf16.msra.mxu0 %v6832_v50  ;;  %v5636_v50 = vld [vmem:[%s9285_s7 + $0x38] sm:$0xff] }
 0x184   : > { %6239 = vmatprep.subr.bf16.mxu0 %v6902_v19  ;;  %v1500_v21 = vpack.c.bf16 %v5636_v50, %v5635_v3 }
 0x186   : > { %6035 = vmatprep.subr.bf16.mxu1 %v1500_v21 }
 0x187   : > { %6240 = vmatpush3.bf16.msra.mxu0 %v6902_v19  ;;  %6036 = vmatpush3.bf16.msra.mxu1 %v1500_v21  ;;  %v1049_v19 = vld [vmem:[%s9285_s7] sm:$0xff] }
 0x188   : > { %v7614_v5 = vpack.c.bf16 %v1050_v24, %v1049_v19 }
 0x18a   : > { %6222 = vmatmul.mubr.msk.bf16.gmra.mrb[92].mxu0 %vm499_vm0, %v6882_v16  ;;  %6045 = vmatprep.subr.bf16.mxu1 %v7614_v5 }
 0x18b   : > { %6241 = vmatprep.mubr.msk.bf16.mxu0 %vm499_vm0, %v4584_v10 }
 0x192   : > { %6242 = vmatmul.mubr.msk.bf16.vlgmr.msra.gmra.mrb[96].mxu0 %vm499_vm0, %v4585_v18  ;;  %v2265_v18 = vcombine.high %v2257_v44, %v2257_v44 }
 0x193   : > { %6245 = vmatprep.mubr.msk.bf16.mxu0 %vm499_vm0, %v4586_v27 }
 0x194   : > { %v7656_v47 = vrot.slane %v2265_v18, %v6921_v28  ;;  %v7729_v18 = vrot.slane %v1135_v30, %v6921_v28  ;;  %v1051_v30 = vld [vmem:[%s9285_s7 + $0x10] sm:$0xff] }
 0x196   : > { %9355 = vst [vmem:[#allocation24_spill] sm:$0xff] %v7656_v47 }
 0x19a   : > { %6246 = vmatmul.mubr.msk.bf16.gmra.mrb[100].mxu0 %vm499_vm0, %v4587_v2  ;;  %v7682_v2 = vrot.slane %v1134_v62, %v6921_v28 }
 0x1e3   : > { %v7622_v25 = vpop.f32.mrb[32].mxu0  ;;  %v5991_v35 = vpop.f32.mrb[8].mxu1 }
 0x1e4   : > { %v7627_v57 = vmul.f32 %v7210_v61, %v5991_v35  ;;  %v7629_v60 = vpop.f32.mrb[33].mxu0  ;;  %v923_v36 = vpop.f32.mrb[9].mxu1 }
 0x1e5   : > { %v7635_v9 = vmul.f32 %v7219_v1, %v923_v36  ;;  %v7637_v43 = vpop.f32.mrb[34].mxu0  ;;  %v5992_v10 = vpop.f32.mrb[10].mxu1 }
 0x1e6   : > { %v7640_v22 = vmul.f32 %v7227_v34, %v5992_v10  ;;  %v7642_v61 = vpop.f32.mrb[35].mxu0  ;;  %v926_v63 = vpop.f32.mrb[11].mxu1  ;;  %v1057_v13 = vsel %vm499_vm0, %v7627_v57, -inf }
 0x1e7   : > { %v7645_v29 = vmul.f32 %v7239_v37, %v926_v63  ;;  %v7662_v37 = vrot.slane %v1126_v59, %v6921_v28  ;;  %v9363_v63 = vld [vmem:[#allocation19_spill] sm:$0xff] }
 0x1e8   : > { %v1058_v21 = vsel %vm499_vm0, %v7640_v22, -inf }
 0x1e9   : > { %v1056_v8 = vsel %vm499_vm0, %v7645_v29, -inf }
 0x1ec   : > { %v7664_v32 = vpop.f32.mrb[36].mxu0  ;;  %v5995_v26 = vpop.f32.mrb[12].mxu1 }
 0x1ed   : > { %v7671_v51 = vmul.f32 %v7243_v17, %v5995_v26  ;;  %v7673_v27 = vpop.f32.mrb[37].mxu0  ;;  %v939_v20 = vpop.f32.mrb[13].mxu1  ;;  %v2297_v17 = vcombine.high %v7656_v47, %v7656_v47  ;;  %v9374_v47 = vpack.c.bf16 %v7645_v29, %v7635_v9 }
 0x1ee   : > { %v7685_v45 = vmul.f32 %v7253_v40, %v939_v20  ;;  %v7687_v14 = vpop.f32.mrb[38].mxu0  ;;  %v5996_v54 = vpop.f32.mrb[14].mxu1  ;;  %v1055_v40 = vsel %vm499_vm0, %v7635_v9, -inf }
 0x1ef   : > { %v1063_v56 = vsel %vm499_vm0, %v7671_v51, -inf  ;;  %v7696_v48 = vmul.f32 %v7262_v33, %v5996_v54  ;;  %v7698_v7 = vpop.f32.mrb[39].mxu0  ;;  %v942_v23 = vpop.f32.mrb[15].mxu1  ;;  %v9359_v54 = vld [vmem:[#allocation16_spill] sm:$0xff] }
 0x1f0   : > { %v1064_v42 = vmax.f32 %v1057_v13, %v1063_v56  ;;  %v1059_v3 = vsel %vm499_vm0, %v7685_v45, -inf  ;;  %v7705_v50 = vmul.f32 %v7276_v53, %v942_v23 }
 0x1f1   : > { %v1060_v19 = vmax.f32 %v1055_v40, %v1059_v3  ;;  %v1065_v24 = vsel %vm499_vm0, %v7696_v48, -inf  ;;  %v1052_v40 = vld [vmem:[%s9285_s7 + $0x18] sm:$0xff] }
 0x1f2   : > { %v1066_v44 = vmax.f32 %v1058_v21, %v1065_v24  ;;  %v1061_v53 = vsel %vm499_vm0, %v7705_v50, -inf  ;;  %v9361_v21 = vld [vmem:[#allocation17_spill] sm:$0xff] }
 0x1f3   : > { %v1062_v59 = vmax.f32 %v1056_v8, %v1061_v53 }
 0x1f4   : > { %v1068_v49 = vmax.f32 %v1064_v42, %v1066_v44  ;;  %v6075_v15 = vpop.f32.mrb[40].mxu0  ;;  %v6015_v62 = vpop.f32.mrb[16].mxu1  ;;  %v7748_v42 = vrot.slane %v2297_v17, %v6937_v46 }
 0x1f5   : > { %v1067_v20 = vmax.f32 %v1060_v19, %v1062_v59  ;;  %v7736_v0 = vmul.f32 %v6075_v15, %v7622_v25  ;;  %v7739_v13 = vmul.f32 %v9359_v54, %v6015_v62  ;;  %v2051_v56 = vpop.f32.mrb[41].mxu0  ;;  %v1379_v23 = vpop.f32.mrb[17].mxu1  ;;  %v9362_v54 = vld [vmem:[#allocation18_spill] sm:$0xff] }
 0x1f6   : > { %9360 = vst [vmem:[#allocation16_spill] sm:$0xff] %v7748_v42  ;;  %v7753_v3 = vmul.f32 %v2051_v56, %v7629_v60  ;;  %v7756_v19 = vmul.f32 %v9361_v21, %v1379_v23  ;;  %v6076_v24 = vpop.f32.mrb[42].mxu0  ;;  %v6016_v8 = vpop.f32.mrb[18].mxu1  ;;  %v7775_v21 = vpack.c.bf16 %v1052_v40, %v1051_v30 }
 0x1f7   : > { %v1069_v59 = vmax.f32 %v1067_v20, %v1068_v49  ;;  %v7763_v17 = vmul.f32 %v6076_v24, %v7637_v43  ;;  %v2054_v15 = vpop.f32.mrb[43].mxu0  ;;  %v1382_v62 = vpop.f32.mrb[19].mxu1  ;;  %v7767_v60 = vsel %vm499_vm0, %v7736_v0, -inf  ;;  %v7770_v56 = vmul.f32 %v9362_v54, %v6016_v8 }
 0x1f8   : > { %v7773_v23 = vmul.f32 %v2054_v15, %v7642_v61  ;;  %v7789_v10 = vsel %vm499_vm0, %v7739_v13, -inf  ;;  %v7793_v36 = vsel %vm499_vm0, %v7753_v3, -inf  ;;  %v7804_v35 = vmul.f32 %v9363_v63, %v1382_v62 }
 0x1f9   : > { %v1070_v26 = vsub.f32 %v7635_v9, %v1069_v59  ;;  %v1071_v49 = vsub.f32 %v7645_v29, %v1069_v59  ;;  %v1072_v43 = vsub.f32 %v7627_v57, %v1069_v59  ;;  %v1073_v20 = vsub.f32 %v7640_v22, %v1069_v59 }
 0x1fa   : > { %v1074_v24 = vsub.f32 %v7685_v45, %v1069_v59  ;;  %v1075_v38 = vsub.f32 %v7705_v50, %v1069_v59  ;;  %v1076_v8 = vsub.f32 %v7671_v51, %v1069_v59  ;;  %v1077_v54 = vsub.f32 %v7696_v48, %v1069_v59 }
 0x1fb   : > { %v1078_v61 = vmul.f32 1.442695, %v1070_v26  ;;  %v1080_v15 = vmul.f32 1.442695, %v1071_v49  ;;  %v1082_v30 = vmul.f32 1.442695, %v1072_v43  ;;  %v1491_v52 = vpack.c.bf16 %v7770_v56, %v7739_v13 }
 0x1fc   : > { %v1084_v25 = vmul.f32 1.442695, %v1073_v20  ;;  %v1086_v59 = vmul.f32 1.442695, %v1074_v24  ;;  %v1088_v26 = vmul.f32 1.442695, %v1075_v38 }
 0x1fd   : > { %6383 = vpow2.f32 %v1078_v61  ;;  %v7799_v49 = vsel %vm499_vm0, %v7756_v19, -inf  ;;  %v6079_v43 = vpop.f32.mrb[44].mxu0  ;;  %v1090_v20 = vmul.f32 1.442695, %v1076_v8  ;;  %v1092_v40 = vmul.f32 1.442695, %v1077_v54 }
 0x1fe   : > { %6385 = vpow2.f32 %v1080_v15  ;;  %v6019_v44 = vpop.f32.mrb[20].mxu1  ;;  %v2067_v53 = vpop.f32.mrb[45].mxu0  ;;  %v7807_v24 = vmul.f32 %v6079_v43, %v7664_v32  ;;  %v9364_v38 = vld [vmem:[#allocation20_spill] sm:$0xff]  ;;  %v9365_v54 = vld [vmem:[#allocation21_spill] sm:$0xff]  ;;  %v2189_v32 = vsel %vm499_vm0, %v7763_v17, -inf }
 0x1ff   : > { %6387 = vpow2.f32 %v1082_v30  ;;  %v7810_v61 = vmul.f32 %v9364_v38, %v6019_v44  ;;  %v1395_v1 = vpop.f32.mrb[21].mxu1  ;;  %v6080_v34 = vpop.f32.mrb[46].mxu0  ;;  %v7813_v8 = vmul.f32 %v2067_v53, %v7673_v27  ;;  %v1490_v44 = vpack.c.bf16 %v7804_v35, %v7756_v19 }
 0x200   : > { %6389 = vpow2.f32 %v1084_v25  ;;  %v7816_v15 = vmul.f32 %v9365_v54, %v1395_v1  ;;  %v7819_v30 = vmul.f32 %v6080_v34, %v7687_v14  ;;  %v6020_v63 = vpop.f32.mrb[22].mxu1  ;;  %v2070_v62 = vpop.f32.mrb[47].mxu0  ;;  %v2194_v25 = vsel %vm499_vm0, %v7807_v24, -inf }
 0x201   : > { %6391 = vpow2.f32 %v1086_v59  ;;  %v1398_v27 = vpop.f32.mrb[23].mxu1  ;;  %v2195_v1 = vmax.f32 %v7767_v60, %v2194_v25  ;;  %v1663_v34 = vsel %vm499_vm0, %v7810_v61, -inf  ;;  %v2190_v14 = vsel %vm499_vm0, %v7813_v8, -inf  ;;  %6037 = vmatprep.mubr.msk.bf16.mxu1 %vm499_vm0, %v1490_v44  ;;  %v5657_v60 = vld [vmem:[%s9285_s7 + $0x40] sm:$0xff] }
 0x202   : > { %6393 = vpow2.f32 %v1088_v26  ;;  %v1664_v53 = vmax.f32 %v7789_v10, %v1663_v34  ;;  %v2191_v59 = vmax.f32 %v7793_v36, %v2190_v14  ;;  %v1659_v43 = vsel %vm499_vm0, %v7816_v15, -inf  ;;  %v5658_v26 = vld [vmem:[%s9285_s7 + $0x48] sm:$0xff]  ;;  %6038 = vmatmul.mubr.msk.bf16.vlgmr.msra.gmra.mrb[24].mxu1 %vm499_vm0, %v1491_v52  ;;  %v9369_v34 = vld [vmem:[#allocation11_spill] sm:$0xff] }
 0x203   : > { %6395 = vpow2.f32 %v1090_v20  ;;  %v1660_v20 = vmax.f32 %v7799_v49, %v1659_v43  ;;  %v2196_v36 = vsel %vm499_vm0, %v7819_v30, -inf  ;;  %6046 = vmatpush3.bf16.msra.mxu1 %v7614_v5  ;;  %v7853_v44 = vmul.f32 %v7398_v31, %v6020_v63  ;;  %v9367_v49 = vld [vmem:[#allocation22_spill] sm:$0xff] }
 0x204   : > { %6397 = vpow2.f32 %v1092_v40  ;;  %v2197_v54 = vmax.f32 %v2189_v32, %v2196_v36  ;;  %v7856_v40 = vmul.f32 %v2070_v62, %v7698_v7  ;;  %v7859_v25 = vmul.f32 %v9367_v49, %v1398_v27  ;;  %6047 = vmatprep.subr.bf16.mxu1 %v7775_v21 }
 0x205   : > { %v7849_v38 = vpop.f32.mrb[48].mxu0  ;;  %v1719_v14 = vcombine.high %v9369_v34, %v9369_v34  ;;  %v1658_v43 = vsel %vm499_vm0, %v7770_v56, -inf  ;;  %v2187_v5 = vsel %vm499_vm0, %v7773_v23, -inf  ;;  %v7872_v7 = vpack.c.bf16 %v5658_v26, %v5657_v60 }
 0x206   : > { %9366 = vst [vmem:[#allocation17_spill] sm:$0xff] %v7849_v38  ;;  %v7861_v52 = vpop.f32.mrb[49].mxu0  ;;  %v2199_v62 = vmax.f32 %v2195_v1, %v2197_v54  ;;  %v1493_v32 = vpack.c.bf16 %v7853_v44, %v7810_v61  ;;  %v1665_v27 = vsel %vm499_vm0, %v7853_v44, -inf  ;;  %v2192_v1 = vsel %vm499_vm0, %v7856_v40, -inf }
 0x207   : > { %9368 = vst [vmem:[#allocation18_spill] sm:$0xff] %v7861_v52  ;;  %v7870_v31 = vpop.f32.mrb[50].mxu0  ;;  %v7874_v63 = vpop.eup %6383  ;;  %v1666_v26 = vmax.f32 %v1658_v43, %v1665_v27  ;;  %v1492_v54 = vpack.c.bf16 %v7859_v25, %v7816_v15  ;;  %v1656_v36 = vsel %vm499_vm0, %v7804_v35, -inf  ;;  %v1661_v52 = vsel %vm499_vm0, %v7859_v25, -inf  ;;  %6048 = vmatpush3.bf16.msra.mxu1 %v7775_v21  ;;  %v5659_v43 = vld [vmem:[%s9285_s7 + $0x50] sm:$0xff]  ;;  %v5669_v21 = vld [vmem:[%s9284_s6 + $0x60] sm:$0xff] }
 0x208   : > { %9370 = vst [vmem:[#allocation19_spill] sm:$0xff] %v7870_v31  ;;  %v7882_v49 = vpop.f32.mrb[51].mxu0  ;;  %v7884_v10 = vpop.eup %6385  ;;  %v1094_v60 = vsel %vm499_vm0, %v7874_v63, 0.0  ;;  %v1662_v55 = vmax.f32 %v1656_v36, %v1661_v52  ;;  %6081 = vmatprep.subr.bf16.mxu1 %v7872_v7 }
 0x209   : > { %9371 = vst [vmem:[#allocation20_spill] sm:$0xff] %v7882_v49  ;;  %v7892_v33 = vpop.eup %6387  ;;  %v1095_v31 = vsel %vm499_vm0, %v7884_v10, 0.0  ;;  %v2193_v49 = vmax.f32 %v2187_v5, %v2192_v1  ;;  %v1668_v16 = vmax.f32 %v1664_v53, %v1666_v26  ;;  %6041 = vmatprep.mubr.msk.bf16.mxu1 %vm499_vm0, %v1492_v54  ;;  %v5660_v5 = vld [vmem:[%s9285_s7 + $0x58] sm:$0xff]  ;;  %v5670_v1 = vld [vmem:[%s9284_s6 + $0x68] sm:$0xff]  ;;  %v7929_v26 = vrot.slane %v9369_v34, %v6921_v28 }
 0x20a   : > { %v7904_v27 = vpop.eup %6389  ;;  %v1096_v38 = vadd.f32 %v1095_v31, %v1094_v60  ;;  %v1097_v31 = vsel %vm499_vm0, %v7892_v33, 0.0  ;;  %v7932_v54 = vrot.slane %v1719_v14, %v6921_v28  ;;  %v1667_v6 = vmax.f32 %v1660_v20, %v1662_v55  ;;  %6042 = vmatmul.mubr.msk.bf16.gmra.mrb[28].mxu1 %vm499_vm0, %v1493_v32 }
 0x20b   : > { %v7917_v39 = vpop.eup %6391  ;;  %v2198_v36 = vmax.f32 %v2191_v59, %v2193_v49  ;;  %v1099_v59 = vsel %vm499_vm0, %v7904_v27, 0.0  ;;  %6049 = vmatprep.mubr.msk.bf16.mxu1 %vm499_vm0, %v9374_v47  ;;  %v2100_v14 = vpack.c.bf16 %v5660_v5, %v5659_v43 }
 0x20c   : > { %v7925_v60 = vpop.eup %6393  ;;  %v1098_v42 = vadd.f32 %v1097_v31, %v1096_v38  ;;  %v7947_v38 = vpack.c.bf16 %v5670_v1, %v5669_v21  ;;  %v1101_v32 = vsel %vm499_vm0, %v7917_v39, 0.0 }
 0x20d   : > { %v7935_v53 = vpop.f32.mrb[52].mxu0  ;;  %v7937_v52 = vpop.eup %6395  ;;  %v2200_v49 = vmax.f32 %v2198_v36, %v2199_v62  ;;  %v1103_v31 = vsel %vm499_vm0, %v7925_v60, 0.0  ;;  %v7955_v62 = vmax.f32 %v1667_v6, %v1668_v16 }
 0x20e   : > { %9372 = vst [vmem:[#allocation21_spill] sm:$0xff] %v7935_v53  ;;  %9373 = vst [vmem:[#allocation22_spill] sm:$0xff] %v7937_v52  ;;  %v7945_v34 = vpop.f32.mrb[53].mxu0  ;;  %v7949_v55 = vpop.eup %6397  ;;  %v1100_v20 = vadd.f32 %v1099_v59, %v1098_v42  ;;  %v1105_v9 = vsel %vm499_vm0, %v7937_v52, 0.0 }
 0x20f   : > { %9375 = vst [vmem:[#allocation11_spill] sm:$0xff] %v7945_v34  ;;  %v7957_v36 = vpop.f32.mrb[54].mxu0  ;;  %v2201_v29 = vsub.f32 %v7753_v3, %v2200_v49  ;;  %v2202_v47 = vsub.f32 %v7773_v23, %v2200_v49  ;;  %v2203_v43 = vsub.f32 %v7736_v0, %v2200_v49  ;;  %v2204_v21 = vsub.f32 %v7763_v17, %v2200_v49 }
 0x210   : > { %9376 = vst [vmem:[#allocation28_spill] sm:$0xff] %v7957_v36  ;;  %v7964_v42 = vpop.f32.mrb[55].mxu0  ;;  %v1102_v5 = vadd.f32 %v1101_v32, %v1100_v20  ;;  %v2205_v1 = vsub.f32 %v7813_v8, %v2200_v49  ;;  %v2206_v16 = vsub.f32 %v7856_v40, %v2200_v49  ;;  %v2207_v6 = vsub.f32 %v7807_v24, %v2200_v49 }
 0x211   : > { %9377 = vst [vmem:[#allocation29_spill] sm:$0xff] %v7964_v42  ;;  %v2208_v59 = vsub.f32 %v7819_v30, %v2200_v49  ;;  %v2209_v36 = vmul.f32 1.442695, %v2201_v29  ;;  %v2211_v34 = vmul.f32 1.442695, %v2202_v47  ;;  %v1107_v41 = vsel %vm499_vm0, %v7949_v55, 0.0 }
 0x212   : > { %v1104_v53 = vadd.f32 %v1103_v31, %v1102_v5  ;;  %v2213_v12 = vmul.f32 1.442695, %v2203_v43  ;;  %v2215_v11 = vmul.f32 1.442695, %v2204_v21  ;;  %v2217_v20 = vmul.f32 1.442695, %v2205_v1 }
 0x213   : > { %6399 = vpow2.f32 %v2209_v36  ;;  %v2219_v32 = vmul.f32 1.442695, %v2206_v16  ;;  %v2221_v42 = vmul.f32 1.442695, %v2207_v6  ;;  %v1670_v52 = vsub.f32 %v7756_v19, %v7955_v62 }
 0x214   : > { %v1106_v4 = vadd.f32 %v1105_v9, %v1104_v53  ;;  %6401 = vpow2.f32 %v2211_v34  ;;  %v1671_v49 = vsub.f32 %v7804_v35, %v7955_v62  ;;  %v9378_v31 = vpack.c.bf16 %v7640_v22, %v7627_v57 }
 0x215   : > { %v7981_v29 = vpop.f32.mrb[56].mxu0  ;;  %6403 = vpow2.f32 %v2213_v12  ;;  %v1672_v36 = vsub.f32 %v7739_v13, %v7955_v62  ;;  %v1673_v53 = vsub.f32 %v7770_v56, %v7955_v62  ;;  %v1674_v19 = vsub.f32 %v7816_v15, %v7955_v62 }
 0x216   : > { %6050 = vmatmul.mubr.msk.bf16.vlgmr.msra.gmra.mrb[24].mxu1 %vm499_vm0, %v9378_v31  ;;  %v9379_v35 = vpack.c.bf16 %v7705_v50, %v7685_v45  ;;  %v7994_v57 = vpop.f32.mrb[57].mxu0  ;;  %v1108_v22 = vadd.f32 %v1107_v41, %v1106_v4  ;;  %6405 = vpow2.f32 %v2215_v11  ;;  %v1675_v12 = vsub.f32 %v7859_v25, %v7955_v62 }
 0x217   : > { %6082 = vmatpush3.bf16.msra.mxu1 %v7872_v7  ;;  %v1676_v13 = vsub.f32 %v7810_v61, %v7955_v62  ;;  %v8000_v56 = vpop.f32.mrb[58].mxu0  ;;  %v1175_v15 = vrot.slane %v7682_v2, %v6937_v46  ;;  %6407 = vpow2.f32 %v2217_v20  ;;  %v2223_v45 = vmul.f32 1.442695, %v2208_v59 }
 0x218   : > { %6053 = vmatprep.mubr.msk.bf16.mxu1 %vm499_vm0, %v9379_v35  ;;  %6083 = vmatprep.subr.bf16.mxu1 %v2100_v14  ;;  %v1677_v50 = vsub.f32 %v7853_v44, %v7955_v62  ;;  %v8006_v7 = vpop.f32.mrb[59].mxu0  ;;  %v9380_v4 = vcombine.high %v7662_v37, %v7662_v37  ;;  %v1734_v41 = vcombine.high %v7929_v26, %v7929_v26  ;;  %6409 = vrcp.f32 %v1108_v22  ;;  %v5671_v35 = vld [vmem:[%s9284_s6 + $0x70] sm:$0xff] }
 0x219   : > { %v1678_v61 = vmul.f32 1.442695, %v1670_v52  ;;  %v9381_v25 = vcombine.high %v7682_v2, %v7682_v2  ;;  %v1735_v44 = vcombine.high %v7932_v54, %v7932_v54  ;;  %6411 = vpow2.f32 %v2219_v32 }
 0x21a   : > { %v8012_v11 = vrot.slane %v9380_v4, %v6937_v46  ;;  %v1680_v62 = vmul.f32 1.442695, %v1671_v49  ;;  %v1187_v9 = vrot.slane %v7679_v58, %v6937_v46  ;;  %v8028_v47 = vrot.slane %v7929_v26, %v6921_v28 }
 0x21b   : > { %v8020_v34 = vrot.slane %v9381_v25, %v6937_v46  ;;  %6084 = vmatpush3.bf16.msra.mxu1 %v2100_v14  ;;  %6413 = vpow2.f32 %v2221_v42  ;;  %v1682_v52 = vmul.f32 1.442695, %v1672_v36  ;;  %v8035_v5 = vrot.slane %v7932_v54, %v6921_v28 }
 0x21c   : > { %6105 = vmatprep.subr.bf16.mxu1 %v7947_v38  ;;  %6415 = vpow2.f32 %v2223_v45  ;;  %v1684_v14 = vmul.f32 1.442695, %v1673_v53  ;;  %v9382_v21 = vcombine.high %v7679_v58, %v7679_v58  ;;  %v8044_v26 = vrot.slane %v1734_v41, %v6921_v28  ;;  %v5677_v41 = vld [vmem:[%s9285_s7 + $0x60] sm:$0xff] }
 0x21d   : > { %6417 = vpow2.f32 %v1678_v61  ;;  %v1686_v42 = vmul.f32 1.442695, %v1674_v19  ;;  %v9383_v16 = vpack.c.bf16 %v7696_v48, %v7671_v51  ;;  %v8050_v54 = vpop.f32.mrb[60].mxu0  ;;  %v8052_v6 = vpop.eup %6399  ;;  %v9384_v59 = vcombine.high %v7729_v18, %v7729_v18  ;;  %v5678_v61 = vld [vmem:[%s9285_s7 + $0x68] sm:$0xff] }
 0x21e   : > { %v8041_v1 = vrot.slane %v9382_v21, %v6937_v46  ;;  %v8061_v32 = vrot.slane %v1735_v44, %v6921_v28  ;;  %6419 = vpow2.f32 %v1680_v62  ;;  %v1688_v49 = vmul.f32 1.442695, %v1675_v12  ;;  %v8067_v48 = vpop.f32.mrb[61].mxu0  ;;  %v8069_v31 = vpop.eup %6401 }
 0x21f   : > { %6054 = vmatmul.mubr.msk.bf16.gmra.mrb[28].mxu1 %vm499_vm0, %v9383_v16  ;;  %v8058_v20 = vrot.slane %v9384_v59, %v6937_v46  ;;  %v9385_v51 = vpack.c.bf16 %v7773_v23, %v7753_v3  ;;  %v2225_v53 = vsel %vm499_vm0, %v8052_v6, 0.0  ;;  %6421 = vpow2.f32 %v1682_v52  ;;  %v5672_v3 = vld [vmem:[%s9284_s6 + $0x78] sm:$0xff]  ;;  %v8081_v23 = vpop.f32.mrb[62].mxu0  ;;  %v8083_v22 = vpop.eup %6403 }
 0x220   : > { %v1690_v19 = vmul.f32 1.442695, %v1676_v13  ;;  %v2226_v13 = vsel %vm499_vm0, %v8069_v31, 0.0  ;;  %6423 = vpow2.f32 %v1684_v14  ;;  %v8091_v4 = vpop.f32.mrb[63].mxu0  ;;  %v8099_v25 = vpop.eup %6405  ;;  %v1692_v52 = vmul.f32 1.442695, %v1677_v50 }
 0x221   : > { %6085 = vmatprep.mubr.msk.bf16.mxu1 %vm499_vm0, %v9385_v51  ;;  %v2227_v62 = vadd.f32 %v2226_v13, %v2225_v53  ;;  %6425 = vpow2.f32 %v1686_v42  ;;  %v8103_v21 = vpop.eup %6407  ;;  %v2228_v16 = vsel %vm499_vm0, %v8083_v22, 0.0  ;;  %v2547_v59 = vpack.c.bf16 %v5672_v3, %v5671_v35 }
 0x222   : > { %6427 = vpow2.f32 %v1688_v49  ;;  %v6410_v51 = vpop.eup %6409  ;;  %v2230_v12 = vsel %vm499_vm0, %v8099_v25, 0.0  ;;  %v8111_v44 = vpack.c.bf16 %v5678_v61, %v5677_v41  ;;  %v2232_v53 = vsel %vm499_vm0, %v8103_v21, 0.0 }
 0x223   : > { %v2229_v45 = vadd.f32 %v2228_v16, %v2227_v62  ;;  %6429 = vpow2.f32 %v1690_v19  ;;  %v8113_v42 = vpop.eup %6411  ;;  %v8116_v50 = vmul.f32 %v6410_v51, %v7925_v60  ;;  %v1110_v13 = vmul.f32 %v6410_v51, %v7874_v63 }
 0x224   : > { %v1111_v49 = vmul.f32 %v6410_v51, %v7884_v10  ;;  %6431 = vpow2.f32 %v1692_v52  ;;  %v9386_v19 = vpack.c.bf16 %v7763_v17, %v7736_v0  ;;  %v1112_v60 = vmul.f32 %v6410_v51, %v7892_v33 }
 0x225   : > { %v8122_v35 = vpop.eup %6413  ;;  %v2231_v3 = vadd.f32 %v2230_v12, %v2229_v45  ;;  %v6147_v41 = vpop.f32.mrb[64].mxu0  ;;  %v1113_v61 = vmul.f32 %v6410_v51, %v7904_v27  ;;  %v2234_v63 = vsel %vm499_vm0, %v8113_v42, 0.0  ;;  %v9387_v10 = vpack.c.bf16 %v7856_v40, %v7813_v8  ;;  %v9388_v12 = vld [vmem:[#allocation22_spill] sm:$0xff] }
 0x226   : > { %v8130_v62 = vpop.eup %6415  ;;  %v8140_v0 = vmul.f32 %v6147_v41, %v7981_v29  ;;  %v3113_v17 = vpop.f32.mrb[65].mxu0  ;;  %v1114_v33 = vmul.f32 %v6410_v51, %v7917_v39  ;;  %v1116_v27 = vmul.f32 %v6410_v51, %v9388_v12  ;;  %v2236_v16 = vsel %vm499_vm0, %v8122_v35, 0.0 }
 0x227   : > { %6086 = vmatmul.mubr.msk.bf16.vlgmr.msra.gmra.mrb[24].mxu1 %vm499_vm0, %v9386_v19  ;;  %v8144_v45 = vpop.eup %6417  ;;  %v2233_v52 = vadd.f32 %v2232_v53, %v2231_v3  ;;  %v6148_v8 = vpop.f32.mrb[66].mxu0  ;;  %v1117_v40 = vmul.f32 %v6410_v51, %v7949_v55  ;;  %v2238_v39 = vsel %vm499_vm0, %v8130_v62, 0.0  ;;  %v9389_v41 = vrot.slane %v7662_v37, %v6937_v46 }
 0x228   : > { %6106 = vmatpush3.bf16.msra.mxu1 %v7947_v38  ;;  %6089 = vmatprep.mubr.msk.bf16.mxu1 %vm499_vm0, %v9387_v10  ;;  %v8149_v38 = vmul.f32 %v3113_v17, %v7994_v57  ;;  %v8152_v29 = vpop.eup %6419  ;;  %v1694_v19 = vsel %vm499_vm0, %v8144_v45, 0.0  ;;  %v8159_v53 = vmul.f32 %v6148_v8, %v8000_v56  ;;  %v3116_v3 = vpop.f32.mrb[67].mxu0  ;;  %v8170_v51 = vsel %vm499_vm0, %v8140_v0, -inf }
 0x229   : > { %6107 = vmatprep.subr.bf16.mxu1 %v2547_v59  ;;  %v1208_v57 = vmul.f32 %v9389_v41, %v1110_v13  ;;  %v8164_v10 = vpop.eup %6421  ;;  %v2235_v17 = vadd.f32 %v2234_v63, %v2233_v52  ;;  %v1695_v55 = vsel %vm499_vm0, %v8152_v29, 0.0  ;;  %v8173_v12 = vmul.f32 %v3116_v3, %v8006_v7 }
 0x22a   : > { %v8175_v56 = vpop.eup %6423  ;;  %v1696_v8 = vadd.f32 %v1695_v55, %v1694_v19  ;;  %v1697_v37 = vsel %vm499_vm0, %v8164_v10, 0.0  ;;  %v3248_v13 = vsel %vm499_vm0, %v8149_v38, -inf  ;;  %v3251_v3 = vsel %vm499_vm0, %v8159_v53, -inf }
 0x22b   : > { %v8183_v52 = vpop.eup %6425  ;;  %v2237_v41 = vadd.f32 %v2236_v16, %v2235_v17  ;;  %v1699_v7 = vsel %vm499_vm0, %v8175_v56, 0.0  ;;  %v3249_v63 = vsel %vm499_vm0, %v8173_v12, -inf  ;;  %v1209_v16 = vmul.f32 %v1175_v15, %v1111_v49 }
 0x22c   : > { %6108 = vmatpush3.bf16.msra.mxu1 %v2547_v59  ;;  %v8192_v59 = vpop.eup %6427  ;;  %v1698_v55 = vadd.f32 %v1697_v37, %v1696_v8  ;;  %v1210_v17 = vmul.f32 %v8012_v11, %v1112_v60  ;;  %v1701_v19 = vsel %vm499_vm0, %v8183_v52, 0.0  ;;  %v9390_v43 = vpack.c.bf16 %v7819_v30, %v7807_v24  ;;  %v9391_v60 = vld [vmem:[#allocation5_spill] sm:$0xff] }
 0x22d   : > { %6117 = vmatprep.subr.bf16.mxu1 %v8111_v44  ;;  %v8200_v14 = vpop.eup %6429  ;;  %v2239_v36 = vadd.f32 %v2238_v39, %v2237_v41  ;;  %v6151_v8 = vpop.f32.mrb[68].mxu0  ;;  %v1211_v37 = vmul.f32 %v8020_v34, %v1113_v61  ;;  %v1212_v2 = vmul.f32 %v1187_v9, %v1114_v33  ;;  %v1703_v11 = vsel %vm499_vm0, %v8192_v59, 0.0 }
 0x22e   : > { %v1700_v15 = vadd.f32 %v1699_v7, %v1698_v55  ;;  %v8215_v49 = vmul.f32 %v6151_v8, %v8050_v54  ;;  %v3129_v24 = vpop.f32.mrb[69].mxu0  ;;  %v9392_v30 = vrot.slane %v7729_v18, %v6937_v46  ;;  %v1705_v58 = vsel %vm499_vm0, %v8200_v14, 0.0 }
 0x22f   : > { %6090 = vmatmul.mubr.msk.bf16.gmra.mrb[28].mxu1 %vm499_vm0, %v9390_v43  ;;  %v8223_v43 = vpop.eup %6431  ;;  %6433 = vrcp.f32 %v2239_v36  ;;  %v8228_v9 = vmul.f32 %v3129_v24, %v8067_v48  ;;  %v6152_v54 = vpop.f32.mrb[70].mxu0  ;;  %v1214_v61 = vmul.f32 %v8041_v1, %v1116_v27  ;;  %v1216_v1 = vsel %vm499_vm0, %v1208_v57, 0.0  ;;  %v9393_v24 = vld [vmem:[#allocation6_spill] sm:$0xff] }
 0x230   : > { %6109 = vmatprep.mubr.msk.bf16.mxu1 %vm499_vm0, %v9391_v60  ;;  %v1213_v34 = vmul.f32 %v9392_v30, %v8116_v50  ;;  %v1702_v33 = vadd.f32 %v1701_v19, %v1700_v15  ;;  %v3256_v39 = vsel %vm499_vm0, %v8215_v49, -inf  ;;  %v8234_v41 = vmul.f32 %v6152_v54, %v8081_v23  ;;  %v3132_v18 = vpop.f32.mrb[71].mxu0  ;;  %v9407_v23 = vld [vmem:[#allocation16_spill] sm:$0xff]  ;;  %v9410_v57 = vld [vmem:[#allocation26_spill] sm:$0xff] }
 0x231   : > { %v8237_v50 = vmul.f32 %v8058_v20, %v1117_v40  ;;  %v3257_v36 = vmax.f32 %v8170_v51, %v3256_v39  ;;  %v3252_v48 = vsel %vm499_vm0, %v8228_v9, -inf  ;;  %v8243_v7 = vmul.f32 %v3132_v18, %v8091_v4  ;;  %v9395_v18 = vld [vmem:[#allocation7_spill] sm:$0xff] }
 0x232   : > { %v1704_v27 = vadd.f32 %v1703_v11, %v1702_v33  ;;  %v3253_v19 = vmax.f32 %v3248_v13, %v3252_v48  ;;  %v3258_v55 = vsel %vm499_vm0, %v8234_v41, -inf  ;;  %v1217_v4 = vsel %vm499_vm0, %v1209_v16, 0.0 }
 0x233   : > { %v3259_v20 = vmax.f32 %v3251_v3, %v3258_v55  ;;  %v3254_v51 = vsel %vm499_vm0, %v8243_v7, -inf  ;;  %v1218_v15 = vadd.f32 %v1217_v4, %v1216_v1  ;;  %v1767_v11 = vcombine.high %v8061_v32, %v8061_v32 }
 0x234   : > { %v1706_v8 = vadd.f32 %v1705_v58, %v1704_v27  ;;  %v3255_v13 = vmax.f32 %v3249_v63, %v3254_v51  ;;  %v1707_v3 = vsel %vm499_vm0, %v8223_v43, 0.0  ;;  %v1219_v16 = vsel %vm499_vm0, %v1210_v17, 0.0 }
 0x235   : > { %v3261_v30 = vmax.f32 %v3257_v36, %v3259_v20  ;;  %v8263_v54 = vpop.f32.mrb[72].mxu0  ;;  %v1220_v63 = vadd.f32 %v1219_v16, %v1218_v15  ;;  %v9397_v48 = vcombine.high %v8028_v47, %v8028_v47  ;;  %v9398_v17 = vcombine.high %v8044_v26, %v8044_v26 }
 0x236   : > { %9394 = vst [vmem:[#allocation22_spill] sm:$0xff] %v8263_v54  ;;  %v1708_v33 = vadd.f32 %v1707_v3, %v1706_v8  ;;  %v3260_v39 = vmax.f32 %v3253_v19, %v3255_v13  ;;  %v8268_v58 = vpop.f32.mrb[73].mxu0  ;;  %v1221_v19 = vsel %vm499_vm0, %v1211_v37, 0.0  ;;  %v8299_v15 = vrot.slane %v1767_v11, %v6937_v46 }
 0x237   : > { %6110 = vmatmul.mubr.msk.bf16.vlgmr.msra.gmra.mrb[32].mxu1 %vm499_vm0, %v9393_v24  ;;  %9396 = vst [vmem:[#allocation30_spill] sm:$0xff] %v8268_v58  ;;  %v8275_v1 = vrot.slane %v9397_v48, %v6937_v46  ;;  %v8281_v36 = vrot.slane %v9398_v17, %v6937_v46  ;;  %v8286_v55 = vpop.f32.mrb[74].mxu0  ;;  %v1222_v4 = vadd.f32 %v1221_v19, %v1220_v63  ;;  %v1223_v37 = vsel %vm499_vm0, %v1212_v2, 0.0  ;;  %v9404_v17 = vld [vmem:[#allocation24_spill] sm:$0xff] }
 0x238   : > { %6113 = vmatprep.mubr.msk.bf16.mxu1 %vm499_vm0, %v9395_v18  ;;  %6118 = vmatpush3.bf16.msra.mxu1 %v8111_v44  ;;  %9399 = vst [vmem:[#allocation31_spill] sm:$0xff] %v8286_v55  ;;  %v9400_v44 = vcombine.high %v8035_v5, %v8035_v5  ;;  %6435 = vrcp.f32 %v1708_v33  ;;  %v3262_v51 = vmax.f32 %v3260_v39, %v3261_v30  ;;  %v8294_v8 = vpop.f32.mrb[75].mxu0  ;;  %v1225_v3 = vsel %vm499_vm0, %v1213_v34, 0.0 }
 0x239   : > { %9401 = vst [vmem:[#allocation32_spill] sm:$0xff] %v8294_v8  ;;  %v8296_v13 = vpop.eup %6433  ;;  %v8304_v16 = vsel %vm499_vm0, %v1214_v61, 0.0  ;;  %v9411_v8 = vrot.slane %v9410_v57, %v6937_v46  ;;  %v1224_v60 = vadd.f32 %v1223_v37, %v1222_v4 }
 0x23a   : > { %v8292_v20 = vrot.slane %v9400_v44, %v6937_v46  ;;  %v2241_v48 = vmul.f32 %v8296_v13, %v8052_v6  ;;  %v2242_v30 = vmul.f32 %v8296_v13, %v8069_v31  ;;  %v2243_v33 = vmul.f32 %v8296_v13, %v8083_v22  ;;  %v9402_v6 = vld [vmem:[#allocation23_spill] sm:$0xff] }
 0x23b   : > { %v2244_v11 = vmul.f32 %v8296_v13, %v8099_v25  ;;  %v2245_v2 = vmul.f32 %v8296_v13, %v8103_v21  ;;  %v2246_v34 = vmul.f32 %v8296_v13, %v8113_v42  ;;  %v3263_v61 = vsub.f32 %v8149_v38, %v3262_v51  ;;  %v9406_v44 = vld [vmem:[#allocation27_spill] sm:$0xff]  ;;  %v9408_v21 = vld [vmem:[#allocation25_spill] sm:$0xff] }
 0x23c   : > { %v3264_v39 = vsub.f32 %v8173_v12, %v3262_v51  ;;  %v9403_v63 = vrot.slane %v9402_v6, %v6937_v46  ;;  %v9405_v22 = vrot.slane %v9404_v17, %v6937_v46  ;;  %v2341_v25 = vmul.f32 %v9406_v44, %v2243_v33  ;;  %v9412_v6 = vld [vmem:[#allocation8_spill] sm:$0xff] }
 0x23d   : > { %v2342_v40 = vmul.f32 %v9407_v23, %v2244_v11  ;;  %v9409_v27 = vrot.slane %v9408_v21, %v6937_v46  ;;  %v2344_v55 = vmul.f32 %v9411_v8, %v2246_v34  ;;  %v3265_v58 = vsub.f32 %v8140_v0, %v3262_v51 }
 0x23e   : > { %v2339_v31 = vmul.f32 %v9403_v63, %v2241_v48  ;;  %v2340_v19 = vmul.f32 %v9405_v22, %v2242_v30  ;;  %v3266_v48 = vsub.f32 %v8159_v53, %v3262_v51  ;;  %v8338_v30 = vpop.f32.mrb[76].mxu0  ;;  %v2350_v11 = vsel %vm499_vm0, %v2341_v25, 0.0 }
 0x23f   : > { %v2343_v42 = vmul.f32 %v9409_v27, %v2245_v2  ;;  %6114 = vmatmul.mubr.msk.bf16.gmra.mrb[36].mxu1 %vm499_vm0, %v9412_v6  ;;  %9413 = vst [vmem:[#allocation23_spill] sm:$0xff] %v8338_v30  ;;  %v2352_v27 = vsel %vm499_vm0, %v2342_v40, 0.0  ;;  %v8344_v2 = vpop.f32.mrb[77].mxu0  ;;  %v2356_v63 = vsel %vm499_vm0, %v2344_v55, 0.0  ;;  %v3267_v17 = vsub.f32 %v8228_v9, %v3262_v51 }
 0x240   : > { %v2347_v33 = vsel %vm499_vm0, %v2339_v31, 0.0  ;;  %v2348_v23 = vsel %vm499_vm0, %v2340_v19, 0.0  ;;  %9414 = vst [vmem:[#allocation24_spill] sm:$0xff] %v8344_v2  ;;  %v8349_v22 = vpop.f32.mrb[78].mxu0  ;;  %v3268_v44 = vsub.f32 %v8243_v7, %v3262_v51  ;;  %v3269_v31 = vsub.f32 %v8215_v49, %v3262_v51 }
 0x241   : > { %v2349_v8 = vadd.f32 %v2348_v23, %v2347_v33  ;;  %v2354_v34 = vsel %vm499_vm0, %v2343_v42, 0.0  ;;  %9415 = vst [vmem:[#allocation27_spill] sm:$0xff] %v8349_v22  ;;  %v3270_v19 = vsub.f32 %v8234_v41, %v3262_v51  ;;  %v3271_v25 = vmul.f32 1.442695, %v3263_v61  ;;  %v8354_v30 = vpop.f32.mrb[79].mxu0 }
 0x242   : > { %v3273_v2 = vmul.f32 1.442695, %v3264_v39  ;;  %v3275_v33 = vmul.f32 1.442695, %v3265_v58  ;;  %v3277_v23 = vmul.f32 1.442695, %v3266_v48  ;;  %v6436_v42 = vpop.eup %6435 }
 0x243   : > { %v2351_v40 = vadd.f32 %v2350_v11, %v2349_v8  ;;  %6437 = vpow2.f32 %v3271_v25  ;;  %v3279_v55 = vmul.f32 1.442695, %v3267_v17  ;;  %v3281_v54 = vmul.f32 1.442695, %v3268_v44 }
 0x244   : > { %v3283_v6 = vmul.f32 1.442695, %v3269_v31  ;;  %v1715_v22 = vmul.f32 %v6436_v42, %v8192_v59  ;;  %6439 = vpow2.f32 %v3273_v2  ;;  %v3285_v24 = vmul.f32 1.442695, %v3270_v19 }
 0x245   : > { %v2353_v18 = vadd.f32 %v2352_v27, %v2351_v40  ;;  %6441 = vpow2.f32 %v3275_v33  ;;  %v1710_v51 = vmul.f32 %v6436_v42, %v8144_v45  ;;  %v1711_v61 = vmul.f32 %v6436_v42, %v8152_v29  ;;  %v8361_v48 = vpop.f32.mrb[80].mxu0 }
 0x246   : > { %6443 = vpow2.f32 %v3277_v23  ;;  %v1712_v58 = vmul.f32 %v6436_v42, %v8164_v10  ;;  %v1713_v39 = vmul.f32 %v6436_v42, %v8175_v56  ;;  %v1226_v27 = vadd.f32 %v1225_v3, %v1224_v60  ;;  %v8365_v8 = vpop.f32.mrb[81].mxu0 }
 0x247   : > { %v2355_v11 = vadd.f32 %v2354_v34, %v2353_v18  ;;  %6445 = vpow2.f32 %v3279_v55  ;;  %v1714_v59 = vmul.f32 %v6436_v42, %v8183_v52  ;;  %v1716_v2 = vmul.f32 %v6436_v42, %v8200_v14  ;;  %v8371_v18 = vpop.f32.mrb[82].mxu0 }
 0x248   : > { %6447 = vpow2.f32 %v3281_v54  ;;  %v1717_v45 = vmul.f32 %v6436_v42, %v8223_v43  ;;  %v9416_v29 = vrot.slane %v8028_v47, %v6937_v46  ;;  %v1228_v56 = vadd.f32 %v8304_v16, %v1226_v27  ;;  %v8380_v54 = vpop.f32.mrb[83].mxu0 }
 0x249   : > { %v2357_v4 = vadd.f32 %v2356_v63, %v2355_v11  ;;  %v1229_v60 = vsel %vm499_vm0, %v8237_v50, 0.0  ;;  %v9417_v14 = vrot.slane %v8044_v26, %v6937_v46  ;;  %v1810_v37 = vmul.f32 %v8275_v1, %v1712_v58 }
 0x24a   : > { %v1808_v10 = vmul.f32 %v9416_v29, %v1710_v51  ;;  %6449 = vpow2.f32 %v3283_v6  ;;  %v1811_v43 = vmul.f32 %v8281_v36, %v1713_v39  ;;  %v9418_v47 = vrot.slane %v8035_v5, %v6937_v46 }
 0x24b   : > { %v1809_v52 = vmul.f32 %v9417_v14, %v1711_v61  ;;  %v9419_v16 = vrot.slane %v8061_v32, %v6937_v46  ;;  %v8389_v50 = vadd.f32 %v1229_v60, %v1228_v56  ;;  %v1814_v26 = vmul.f32 %v8292_v20, %v1716_v2 }
 0x24c   : > { %v1812_v3 = vmul.f32 %v9418_v47, %v1714_v59  ;;  %v1815_v63 = vmul.f32 %v8299_v15, %v1717_v45  ;;  %v1816_v1 = vsel %vm499_vm0, %v1808_v10, 0.0  ;;  %6451 = vpow2.f32 %v3285_v24 }
 0x24d   : > { %v1813_v34 = vmul.f32 %v9419_v16, %v1715_v22  ;;  %v1817_v6 = vsel %vm499_vm0, %v1809_v52, 0.0  ;;  %v8395_v36 = vpop.eup %6437  ;;  %v9420_v5 = vcombine.high %v9408_v21, %v9408_v21  ;;  %v9421_v32 = vcombine.high %v9410_v57, %v9410_v57  ;;  %v8410_v31 = vpop.f32.mrb[84].mxu0 }
 0x24e   : > { %v1818_v20 = vadd.f32 %v1817_v6, %v1816_v1  ;;  %v8405_v44 = vpop.eup %6439  ;;  %v3287_v24 = vsel %vm499_vm0, %v8395_v36, 0.0  ;;  %v1819_v15 = vsel %vm499_vm0, %v1810_v37, 0.0  ;;  %v2247_v19 = vmul.f32 %v8296_v13, %v8122_v35  ;;  %v4119_v23 = vpop.f32.mrb[85].mxu0 }
 0x24f   : > { %v2326_v17 = vrot.slane %v9420_v5, %v6937_v46  ;;  %v2330_v22 = vrot.slane %v9421_v32, %v6937_v46  ;;  %v2248_v21 = vmul.f32 %v8296_v13, %v8130_v62  ;;  %v8416_v25 = vpop.eup %6441  ;;  %v3288_v57 = vsel %vm499_vm0, %v8405_v44, 0.0  ;;  %v8425_v61 = vpop.f32.mrb[86].mxu0 }
 0x250   : > { %v1820_v40 = vadd.f32 %v1819_v15, %v1818_v20  ;;  %v1821_v33 = vsel %vm499_vm0, %v1811_v43, 0.0  ;;  %v8421_v42 = vpop.eup %6443  ;;  %v3289_v55 = vadd.f32 %v3288_v57, %v3287_v24  ;;  %v3290_v51 = vsel %vm499_vm0, %v8416_v25, 0.0  ;;  %v4122_v39 = vpop.f32.mrb[87].mxu0  ;;  %v9422_v43 = vld [vmem:[#allocation13_spill] sm:$0xff] }
 0x251   : > { %v2345_v35 = vmul.f32 %v2326_v17, %v2247_v19  ;;  %v2346_v11 = vmul.f32 %v2330_v22, %v2248_v21  ;;  %v8427_v62 = vpop.eup %6445  ;;  %v3292_v13 = vsel %vm499_vm0, %v8421_v42, 0.0  ;;  %v1823_v2 = vsel %vm499_vm0, %v1812_v3, 0.0 }
 0x252   : > { %v1822_v58 = vadd.f32 %v1821_v33, %v1820_v40  ;;  %v8431_v27 = vpop.eup %6447  ;;  %v3291_v59 = vadd.f32 %v3290_v51, %v3289_v55  ;;  %v3294_v29 = vsel %vm499_vm0, %v8427_v62, 0.0  ;;  %v1825_v52 = vsel %vm499_vm0, %v1813_v34, 0.0 }
 0x253   : > { %v2358_v45 = vsel %vm499_vm0, %v2345_v35, 0.0  ;;  %v2360_v37 = vsel %vm499_vm0, %v2346_v11, 0.0  ;;  %v3312_v47 = vcombine.high %v9422_v43, %v9422_v43  ;;  %v3296_v3 = vsel %vm499_vm0, %v8431_v27, 0.0 }
 0x254   : > { %v1824_v10 = vadd.f32 %v1823_v2, %v1822_v58  ;;  %v2359_v56 = vadd.f32 %v2358_v45, %v2357_v4  ;;  %v8437_v60 = vpop.eup %6449  ;;  %v3293_v14 = vadd.f32 %v3292_v13, %v3291_v59  ;;  %v1827_v4 = vsel %vm499_vm0, %v1814_v26, 0.0 }
 0x255   : > { %v6219_v17 = vpop.f32.mrb[88].mxu0  ;;  %v3298_v34 = vsel %vm499_vm0, %v8437_v60, 0.0  ;;  %v3319_v24 = vrot.slane %v9422_v43, %v6921_v28  ;;  %v1829_v19 = vsel %vm499_vm0, %v1815_v63, 0.0  ;;  %v3326_v26 = vrot.slane %v3312_v47, %v6921_v28 }
 0x256   : > { %v1826_v16 = vadd.f32 %v1825_v52, %v1824_v10  ;;  %v8445_v1 = vadd.f32 %v2360_v37, %v2359_v56  ;;  %v8447_v6 = vpop.eup %6451  ;;  %v3295_v5 = vadd.f32 %v3294_v29, %v3293_v14  ;;  %v8453_v22 = vmul.f32 %v6219_v17, %v8361_v48  ;;  %v4175_v20 = vpop.f32.mrb[89].mxu0 }
 0x257   : > { %v8459_v21 = vmul.f32 %v4175_v20, %v8365_v8  ;;  %v6220_v57 = vpop.f32.mrb[90].mxu0  ;;  %v3300_v40 = vsel %vm499_vm0, %v8447_v6, 0.0  ;;  %v3327_v11 = vcombine.high %v3319_v24, %v3319_v24  ;;  %v3328_v59 = vcombine.high %v3326_v26, %v3326_v26 }
 0x258   : > { %v1828_v32 = vadd.f32 %v1827_v4, %v1826_v16  ;;  %v3297_v15 = vadd.f32 %v3296_v3, %v3295_v5  ;;  %v8465_v48 = vmul.f32 %v6220_v57, %v8371_v18  ;;  %v4178_v55 = vpop.f32.mrb[91].mxu0  ;;  %v8477_v2 = vrot.slane %v3319_v24, %v6921_v28 }
 0x259   : > { %v8468_v35 = vmul.f32 %v4178_v55, %v8380_v54  ;;  %v4312_v54 = vsel %vm499_vm0, %v8453_v22, -inf  ;;  %v8485_v29 = vrot.slane %v3326_v26, %v6921_v28  ;;  %v8488_v10 = vrot.slane %v3327_v11, %v6921_v28 }
 0x25a   : > { %v1830_v33 = vadd.f32 %v1829_v19, %v1828_v32  ;;  %v3299_v51 = vadd.f32 %v3298_v34, %v3297_v15  ;;  %v4310_v56 = vsel %vm499_vm0, %v8459_v21, -inf  ;;  %v8495_v37 = vrot.slane %v3328_v59, %v6921_v28 }
 0x25b   : > { %v4311_v16 = vsel %vm499_vm0, %v8468_v35, -inf  ;;  %v3357_v17 = vcombine.high %v8477_v2, %v8477_v2  ;;  %v3358_v20 = vcombine.high %v8485_v29, %v8485_v29  ;;  %v3364_v57 = vrot.slane %v8477_v2, %v6937_v46 }
 0x25c   : > { %v5017_v63 = vpack.c.bf16 %v1830_v33, %v8389_v50  ;;  %v3301_v13 = vadd.f32 %v3300_v40, %v3299_v51  ;;  %v3359_v33 = vcombine.high %v8488_v10, %v8488_v10  ;;  %v3360_v55 = vcombine.high %v8495_v37, %v8495_v37 }
 0x25d   : > { %v6223_v18 = vpop.f32.mrb[92].mxu0  ;;  %v3380_v51 = vrot.slane %v8485_v29, %v6937_v46  ;;  %v3368_v59 = vrot.slane %v8488_v10, %v6937_v46  ;;  %v3384_v2 = vrot.slane %v8495_v37, %v6937_v46 }
 0x25e   : > { %6277 = vmatprep.mubr.msk.bf16.mxu0 %vm499_vm0, %v5017_v63  ;;  %6453 = vrcp.f32 %v3301_v13  ;;  %v8482_v50 = vmul.f32 %v6223_v18, %v8410_v31  ;;  %v4191_v45 = vpop.f32.mrb[93].mxu0  ;;  %v4313_v31 = vsel %vm499_vm0, %v8465_v48, -inf  ;;  %v3372_v18 = vrot.slane %v3357_v17, %v6937_v46 }
 0x25f   : > { %v8492_v14 = vmul.f32 %v4191_v45, %v4119_v23  ;;  %v6224_v52 = vpop.f32.mrb[94].mxu0 }
 0x260   : > { %v4318_v43 = vsel %vm499_vm0, %v8482_v50, -inf  ;;  %v8502_v47 = vmul.f32 %v6224_v52, %v8425_v61  ;;  %v4194_v3 = vpop.f32.mrb[95].mxu0 }
 0x261   : > { %v4319_v5 = vmax.f32 %v4312_v54, %v4318_v43  ;;  %v4314_v23 = vsel %vm499_vm0, %v8492_v14, -inf  ;;  %v8508_v4 = vmul.f32 %v4194_v3, %v4122_v39  ;;  %v3388_v54 = vrot.slane %v3358_v20, %v6937_v46 }
 0x262   : > { %v4315_v34 = vmax.f32 %v4310_v56, %v4314_v23  ;;  %v4320_v61 = vsel %vm499_vm0, %v8502_v47, -inf  ;;  %v3376_v20 = vrot.slane %v3359_v33, %v6937_v46 }
 0x263   : > { %v4321_v24 = vmax.f32 %v4313_v31, %v4320_v61  ;;  %v4316_v39 = vsel %vm499_vm0, %v8508_v4, -inf }
 0x264   : > { %v4317_v19 = vmax.f32 %v4311_v16, %v4316_v39 }
 0x265   : > { %v4323_v26 = vmax.f32 %v4319_v5, %v4321_v24  ;;  %v8524_v40 = vpop.f32.mrb[96].mxu0  ;;  %v3392_v24 = vrot.slane %v3360_v55, %v6937_v46 }
 0x266   : > { %v4322_v63 = vmax.f32 %v4315_v34, %v4317_v19  ;;  %v8532_v11 = vpop.f32.mrb[97].mxu0 }
 0x267   : > { %v8540_v45 = vpop.f32.mrb[98].mxu0 }
 0x268   : > { %v6454_v13 = vpop.eup %6453  ;;  %v4324_v52 = vmax.f32 %v4322_v63, %v4323_v26  ;;  %v8543_v29 = vpop.f32.mrb[99].mxu0 }
 0x269   : > { %v3308_v56 = vmul.f32 %v6454_v13, %v8431_v27  ;;  %v3303_v31 = vmul.f32 %v6454_v13, %v8395_v36  ;;  %v3304_v43 = vmul.f32 %v6454_v13, %v8405_v44  ;;  %v3305_v10 = vmul.f32 %v6454_v13, %v8416_v25 }
 0x26a   : > { %v3306_v3 = vmul.f32 %v6454_v13, %v8421_v42  ;;  %v3307_v16 = vmul.f32 %v6454_v13, %v8427_v62  ;;  %v3309_v37 = vmul.f32 %v6454_v13, %v8437_v60  ;;  %v4325_v5 = vsub.f32 %v8459_v21, %v4324_v52 }
 0x26b   : > { %v4326_v23 = vsub.f32 %v8468_v35, %v4324_v52  ;;  %v4327_v27 = vsub.f32 %v8453_v22, %v4324_v52  ;;  %v4328_v17 = vsub.f32 %v8465_v48, %v4324_v52  ;;  %v4329_v36 = vsub.f32 %v8492_v14, %v4324_v52 }
 0x26c   : > { %v4330_v44 = vsub.f32 %v8508_v4, %v4324_v52  ;;  %v4331_v25 = vsub.f32 %v8482_v50, %v4324_v52  ;;  %v4332_v42 = vsub.f32 %v8502_v47, %v4324_v52  ;;  %v4333_v34 = vmul.f32 1.442695, %v4325_v5 }
 0x26d   : > { %v4335_v62 = vmul.f32 1.442695, %v4326_v23  ;;  %v4337_v61 = vmul.f32 1.442695, %v4327_v27  ;;  %v3310_v60 = vmul.f32 %v6454_v13, %v8447_v6  ;;  %v4339_v39 = vmul.f32 1.442695, %v4328_v17 }
 0x26e   : > { %v3401_v19 = vmul.f32 %v3364_v57, %v3303_v31  ;;  %6455 = vpow2.f32 %v4333_v34  ;;  %v4341_v26 = vmul.f32 1.442695, %v4329_v36  ;;  %v4343_v63 = vmul.f32 1.442695, %v4330_v44  ;;  %v8562_v32 = vpop.f32.mrb[100].mxu0 }
 0x26f   : > { %v3402_v15 = vmul.f32 %v3368_v59, %v3304_v43  ;;  %6457 = vpow2.f32 %v4335_v62  ;;  %v8564_v8 = vpop.f32.mrb[101].mxu0  ;;  %v3403_v52 = vmul.f32 %v3372_v18, %v3305_v10  ;;  %v3404_v5 = vmul.f32 %v3376_v20, %v3306_v3 }
 0x270   : > { %v3405_v23 = vmul.f32 %v3380_v51, %v3307_v16  ;;  %6459 = vpow2.f32 %v4337_v61  ;;  %v8566_v6 = vpop.f32.mrb[102].mxu0  ;;  %v3406_v33 = vmul.f32 %v3384_v2, %v3308_v56  ;;  %v3407_v13 = vmul.f32 %v3388_v54, %v3309_v37 }
 0x271   : > { %v3408_v55 = vmul.f32 %v3392_v24, %v3310_v60  ;;  %6461 = vpow2.f32 %v4339_v39  ;;  %v4345_v57 = vmul.f32 1.442695, %v4331_v25  ;;  %v8568_v31 = vpop.f32.mrb[103].mxu0  ;;  %v3409_v27 = vsel %vm499_vm0, %v3401_v19, 0.0 }
 0x272   : > { %9423 = vst [vmem:[#allocation16_spill] sm:$0xff] %v8568_v31  ;;  %v3410_v59 = vsel %vm499_vm0, %v3402_v15, 0.0  ;;  %6463 = vpow2.f32 %v4341_v26  ;;  %v4347_v18 = vmul.f32 1.442695, %v4332_v42  ;;  %v3412_v51 = vsel %vm499_vm0, %v3403_v52, 0.0 }
 0x273   : > { %v3411_v43 = vadd.f32 %v3410_v59, %v3409_v27  ;;  %6465 = vpow2.f32 %v4343_v63  ;;  %v3414_v2 = vsel %vm499_vm0, %v3404_v5, 0.0  ;;  %v3416_v56 = vsel %vm499_vm0, %v3405_v23, 0.0  ;;  %v9424_v23 = vld [vmem:[#allocation12_spill] sm:$0xff] }
 0x274   : > { %6467 = vpow2.f32 %v4345_v57  ;;  %v3418_v15 = vsel %vm499_vm0, %v3406_v33, 0.0  ;;  %v3420_v61 = vsel %vm499_vm0, %v3407_v13, 0.0  ;;  %v3422_v26 = vsel %vm499_vm0, %v3408_v55, 0.0 }
 0x275   : > { %v3413_v10 = vadd.f32 %v3412_v51, %v3411_v43  ;;  %6469 = vpow2.f32 %v4347_v18  ;;  %v4374_v33 = vcombine.high %v9424_v23, %v9424_v23  ;;  %v4381_v18 = vrot.slane %v9424_v23, %v6921_v28 }
 0x277   : > { %v3415_v54 = vadd.f32 %v3414_v2, %v3413_v10  ;;  %v4388_v55 = vrot.slane %v4374_v33, %v6921_v28 }
 0x278   : > { %v6456_v3 = vpop.eup %6455 }
 0x279   : > { %v3417_v16 = vadd.f32 %v3416_v56, %v3415_v54  ;;  %v6458_v37 = vpop.eup %6457  ;;  %v4349_v17 = vsel %vm499_vm0, %v6456_v3, 0.0  ;;  %v4389_v54 = vcombine.high %v4381_v18, %v4381_v18  ;;  %v4390_v56 = vcombine.high %v4388_v55, %v4388_v55 }
 0x27a   : > { %v6460_v36 = vpop.eup %6459  ;;  %v4350_v44 = vsel %vm499_vm0, %v6458_v37, 0.0 }
 0x27b   : > { %v3419_v25 = vadd.f32 %v3418_v15, %v3417_v16  ;;  %v6462_v42 = vpop.eup %6461  ;;  %v4351_v34 = vadd.f32 %v4350_v44, %v4349_v17  ;;  %v4352_v62 = vsel %vm499_vm0, %v6460_v36, 0.0  ;;  %v4397_v17 = vrot.slane %v4381_v18, %v6921_v28 }
 0x27c   : > { %v6464_v60 = vpop.eup %6463  ;;  %v4354_v20 = vsel %vm499_vm0, %v6462_v42, 0.0  ;;  %v4404_v15 = vrot.slane %v4388_v55, %v6921_v28  ;;  %v4411_v44 = vrot.slane %v4389_v54, %v6921_v28 }
 0x27d   : > { %v3421_v24 = vadd.f32 %v3420_v61, %v3419_v25  ;;  %v6466_v39 = vpop.eup %6465  ;;  %v4353_v19 = vadd.f32 %v4352_v62, %v4351_v34  ;;  %v4356_v63 = vsel %vm499_vm0, %v6464_v60, 0.0  ;;  %v4418_v25 = vrot.slane %v4390_v56, %v6921_v28  ;;  %v5679_v34 = vld [vmem:[%s9285_s7 + $0x70] sm:$0xff]  ;;  %v5680_v62 = vld [vmem:[%s9285_s7 + $0x78] sm:$0xff] }
 0x27e   : > { %v6468_v5 = vpop.eup %6467  ;;  %v4358_v27 = vsel %vm499_vm0, %v6466_v39, 0.0  ;;  %v2631_v61 = vpack.c.bf16 %v5680_v62, %v5679_v34  ;;  %v4430_v23 = vrot.slane %v4411_v44, %v6937_v46 }
 0x27f   : > { %v8583_v52 = vadd.f32 %v3422_v26, %v3421_v24  ;;  %v4355_v57 = vadd.f32 %v4354_v20, %v4353_v19  ;;  %v6470_v13 = vpop.eup %6469  ;;  %v4360_v43 = vsel %vm499_vm0, %v6468_v5, 0.0  ;;  %v4419_v20 = vcombine.high %v4397_v17, %v4397_v17 }
 0x280   : > { %v4362_v10 = vsel %vm499_vm0, %v6470_v13, 0.0  ;;  %6119 = vmatprep.subr.bf16.mxu1 %v2631_v61  ;;  %v4420_v24 = vcombine.high %v4404_v15, %v4404_v15  ;;  %v4421_v19 = vcombine.high %v4411_v44, %v4411_v44  ;;  %v4422_v26 = vcombine.high %v4418_v25, %v4418_v25 }
 0x281   : > { %v4357_v59 = vadd.f32 %v4356_v63, %v4355_v57  ;;  %6120 = vmatpush3.bf16.msra.mxu1 %v2631_v61  ;;  %v4426_v63 = vrot.slane %v4397_v17, %v6937_v46  ;;  %v4434_v33 = vrot.slane %v4419_v20, %v6937_v46  ;;  %v4442_v57 = vrot.slane %v4404_v15, %v6937_v46 }
 0x282   : > { %v4450_v18 = vrot.slane %v4420_v24, %v6937_v46  ;;  %v4454_v55 = vrot.slane %v4422_v26, %v6937_v46 }
 0x283   : > { %v4359_v51 = vadd.f32 %v4358_v27, %v4357_v59  ;;  %v4438_v59 = vrot.slane %v4421_v19, %v6937_v46 }
 0x285   : > { %v4361_v2 = vadd.f32 %v4360_v43, %v4359_v51  ;;  %v4446_v43 = vrot.slane %v4418_v25, %v6937_v46 }
 0x287   : > { %v4363_v16 = vadd.f32 %v4362_v10, %v4361_v2  ;;  %v5697_v10 = vld [vmem:[%s9285_s7 + $0x80] sm:$0xff]  ;;  %v5698_v2 = vld [vmem:[%s9285_s7 + $0x88] sm:$0xff] }
 0x288   : > { %v3161_v17 = vpack.c.bf16 %v5698_v2, %v5697_v10  ;;  %v5596_v10 = vld [vmem:[%s9283_s5 + $0x78] sm:$0xff] }
 0x289   : > { %6471 = vrcp.f32 %v4363_v16 }
 0x28a   : > { %6153 = vmatprep.subr.bf16.mxu1 %v3161_v17 }
 0x293   : > { %v6472_v27 = vpop.eup %6471 }
 0x294   : > { %v4370_v51 = vmul.f32 %v6472_v27, %v6466_v39  ;;  %v4365_v54 = vmul.f32 %v6472_v27, %v6456_v3  ;;  %v4366_v56 = vmul.f32 %v6472_v27, %v6458_v37  ;;  %v4367_v16 = vmul.f32 %v6472_v27, %v6460_v36 }
 0x295   : > { %v4368_v15 = vmul.f32 %v6472_v27, %v6462_v42  ;;  %v4369_v44 = vmul.f32 %v6472_v27, %v6464_v60  ;;  %v4371_v25 = vmul.f32 %v6472_v27, %v6468_v5  ;;  %v4372_v34 = vmul.f32 %v6472_v27, %v6470_v13 }
 0x296   : > { %v4463_v62 = vmul.f32 %v4426_v63, %v4365_v54  ;;  %v4464_v61 = vmul.f32 %v4430_v23, %v4366_v56  ;;  %v4465_v20 = vmul.f32 %v4434_v33, %v4367_v16  ;;  %v4468_v19 = vmul.f32 %v4446_v43, %v4370_v51  ;;  %v9425_v54 = vld [vmem:[#allocation17_spill] sm:$0xff] }
 0x297   : > { %v4466_v39 = vmul.f32 %v4438_v59, %v4368_v15  ;;  %v4467_v24 = vmul.f32 %v4442_v57, %v4369_v44  ;;  %v4469_v26 = vmul.f32 %v4450_v18, %v4371_v25  ;;  %v4470_v58 = vmul.f32 %v4454_v55, %v4372_v34  ;;  %v5594_v18 = vld [vmem:[%s9283_s5 + $0x68] sm:$0xff]  ;;  %v5595_v55 = vld [vmem:[%s9283_s5 + $0x70] sm:$0xff] }
 0x298   : > { %v4471_v31 = vsel %vm499_vm0, %v4463_v62, 0.0  ;;  %v4472_v3 = vsel %vm499_vm0, %v4464_v61, 0.0  ;;  %v4474_v36 = vsel %vm499_vm0, %v4465_v20, 0.0  ;;  %v4480_v23 = vsel %vm499_vm0, %v4468_v19, 0.0  ;;  %v9426_v15 = vld [vmem:[#allocation18_spill] sm:$0xff]  ;;  %v9427_v34 = vld [vmem:[#allocation19_spill] sm:$0xff] }
 0x299   : > { %v4473_v37 = vadd.f32 %v4472_v3, %v4471_v31  ;;  %v4476_v60 = vsel %vm499_vm0, %v4466_v39, 0.0  ;;  %v4478_v13 = vsel %vm499_vm0, %v4467_v24, 0.0  ;;  %v4482_v57 = vsel %vm499_vm0, %v4469_v26, 0.0  ;;  %v5593_v31 = vld [vmem:[%s9283_s5 + $0x60] sm:$0xff]  ;;  %v9428_v20 = vld [vmem:[#allocation20_spill] sm:$0xff]  ;;  %v5699_v24 = vld [vmem:[%s9285_s7 + $0x90] sm:$0xff] }
 0x29a   : > { %v4484_v59 = vsel %vm499_vm0, %v4470_v58, 0.0  ;;  %v478_v51 = vpack.c.bf16 %v5594_v18, %v5593_v31  ;;  %v479_v58 = vpack.c.bf16 %v5596_v10, %v5595_v55  ;;  %v5700_v19 = vld [vmem:[%s9285_s7 + $0x98] sm:$0xff] }
 0x29b   : > { %v4475_v42 = vadd.f32 %v4474_v36, %v4473_v37  ;;  %v3162_v37 = vpack.c.bf16 %v5700_v19, %v5699_v24  ;;  %v9431_v31 = vld [vmem:[#allocation28_spill] sm:$0xff] }
 0x29c   : > { %6273 = vmatprep.subr.bf16.mxu0 %v478_v51 }
 0x29d   : > { %v4477_v5 = vadd.f32 %v4476_v60, %v4475_v42  ;;  %6274 = vmatpush3.bf16.msra.mxu0 %v478_v51  ;;  %v5709_v42 = vld [vmem:[%s9284_s6 + $0xa0] sm:$0xff]  ;;  %v5710_v60 = vld [vmem:[%s9284_s6 + $0xa8] sm:$0xff] }
 0x29e   : > { %6275 = vmatprep.subr.bf16.mxu0 %v479_v58  ;;  %v3608_v51 = vpack.c.bf16 %v5710_v60, %v5709_v42  ;;  %v9433_v42 = vpack.c.bf16 %v8173_v12, %v8149_v38 }
 0x29f   : > { %v4479_v63 = vadd.f32 %v4478_v13, %v4477_v5  ;;  %v9429_v5 = vld [vmem:[#allocation21_spill] sm:$0xff] }
 0x2a1   : > { %v4481_v33 = vadd.f32 %v4480_v23, %v4479_v63  ;;  %6276 = vmatpush3.bf16.msra.mxu0 %v479_v58  ;;  %v9430_v23 = vld [vmem:[#allocation11_spill] sm:$0xff] }
 0x2a3   : > { %v4483_v27 = vadd.f32 %v4482_v57, %v4481_v33 }
 0x2a5   : > { %v8625_v43 = vadd.f32 %v4484_v59, %v4483_v27 }
 0x30a   : > { %v6111_v2 = vpop.f32.mrb[32].mxu1 }
 0x30b   : > { %v2615_v56 = vmul.f32 %v6111_v2, %v9425_v54  ;;  %v2582_v16 = vpop.f32.mrb[33].mxu1  ;;  %v9432_v54 = vld [vmem:[#allocation29_spill] sm:$0xff] }
 0x30c   : > { %v2613_v44 = vmul.f32 %v2582_v16, %v9426_v15  ;;  %v6112_v25 = vpop.f32.mrb[34].mxu1 }
 0x30d   : > { %v2616_v62 = vmul.f32 %v6112_v25, %v9427_v34  ;;  %v2585_v61 = vpop.f32.mrb[35].mxu1  ;;  %v2719_v27 = vsel %vm499_vm0, %v2615_v56, -inf }
 0x30e   : > { %v2614_v39 = vmul.f32 %v2585_v61, %v9428_v20  ;;  %v2717_v10 = vsel %vm499_vm0, %v2613_v44, -inf }
 0x30f   : > { %v2622_v26 = vpack.c.bf16 %v2616_v62, %v2615_v56  ;;  %v2720_v15 = vsel %vm499_vm0, %v2616_v62, -inf }
 0x310   : > { %v2621_v3 = vpack.c.bf16 %v2614_v39, %v2613_v44  ;;  %v2718_v61 = vsel %vm499_vm0, %v2614_v39, -inf }
 0x312   : > { %v6115_v36 = vpop.f32.mrb[36].mxu1  ;;  %6121 = vmatprep.mubr.msk.bf16.mxu1 %vm499_vm0, %v2621_v3 }
 0x313   : > { %v2619_v13 = vmul.f32 %v6115_v36, %v9429_v5  ;;  %v2598_v63 = vpop.f32.mrb[37].mxu1  ;;  %6122 = vmatmul.mubr.msk.bf16.vlgmr.msra.gmra.mrb[24].mxu1 %vm499_vm0, %v2622_v26  ;;  %v5711_v5 = vld [vmem:[%s9284_s6 + $0xb0] sm:$0xff] }
 0x314   : > { %v2617_v33 = vmul.f32 %v2598_v63, %v9430_v23  ;;  %6154 = vmatpush3.bf16.msra.mxu1 %v3161_v17  ;;  %v6116_v57 = vpop.f32.mrb[38].mxu1 }
 0x315   : > { %v2725_v59 = vsel %vm499_vm0, %v2619_v13, -inf  ;;  %v2620_v18 = vmul.f32 %v6116_v57, %v9431_v31  ;;  %v2601_v55 = vpop.f32.mrb[39].mxu1  ;;  %6155 = vmatprep.subr.bf16.mxu1 %v3162_v37 }
 0x316   : > { %v2726_v58 = vmax.f32 %v2719_v27, %v2725_v59  ;;  %v2721_v2 = vsel %vm499_vm0, %v2617_v33, -inf  ;;  %v2618_v16 = vmul.f32 %v2601_v55, %v9432_v54 }
 0x317   : > { %v2722_v17 = vmax.f32 %v2717_v10, %v2721_v2  ;;  %v2624_v25 = vpack.c.bf16 %v2620_v18, %v2619_v13  ;;  %v2727_v34 = vsel %vm499_vm0, %v2620_v18, -inf }
 0x318   : > { %v2728_v20 = vmax.f32 %v2720_v15, %v2727_v34  ;;  %v2623_v24 = vpack.c.bf16 %v2618_v16, %v2617_v33  ;;  %v2723_v19 = vsel %vm499_vm0, %v2618_v16, -inf  ;;  %6156 = vmatpush3.bf16.msra.mxu1 %v3162_v37  ;;  %v5712_v37 = vld [vmem:[%s9284_s6 + $0xb8] sm:$0xff]  ;;  %v5717_v15 = vld [vmem:[%s9285_s7 + $0xa0] sm:$0xff] }
 0x319   : > { %v2724_v26 = vmax.f32 %v2718_v61, %v2723_v19  ;;  %6177 = vmatprep.subr.bf16.mxu1 %v3608_v51  ;;  %v3609_v2 = vpack.c.bf16 %v5712_v37, %v5711_v5  ;;  %v9438_v19 = vld [vmem:[#allocation6_spill] sm:$0xff] }
 0x31a   : > { %v2730_v3 = vmax.f32 %v2726_v58, %v2728_v20  ;;  %6125 = vmatprep.mubr.msk.bf16.mxu1 %vm499_vm0, %v2623_v24 }
 0x31b   : > { %v2729_v36 = vmax.f32 %v2722_v17, %v2724_v26  ;;  %6126 = vmatmul.mubr.msk.bf16.gmra.mrb[28].mxu1 %vm499_vm0, %v2624_v25 }
 0x31c   : > { %6157 = vmatprep.mubr.msk.bf16.mxu1 %vm499_vm0, %v9433_v42 }
 0x31d   : > { %v2731_v60 = vmax.f32 %v2729_v36, %v2730_v3  ;;  %v9439_v3 = vld [vmem:[#allocation10_spill] sm:$0xff] }
 0x31e   : > { %v2781_v36 = vcombine.high %v9439_v3, %v9439_v3 }
 0x31f   : > { %v2732_v63 = vsub.f32 %v2613_v44, %v2731_v60  ;;  %v2733_v23 = vsub.f32 %v2614_v39, %v2731_v60  ;;  %v2734_v57 = vsub.f32 %v2615_v56, %v2731_v60  ;;  %v2735_v27 = vsub.f32 %v2616_v62, %v2731_v60  ;;  %v5718_v44 = vld [vmem:[%s9285_s7 + $0xa8] sm:$0xff] }
 0x320   : > { %v2736_v59 = vsub.f32 %v2617_v33, %v2731_v60  ;;  %v2737_v31 = vsub.f32 %v2618_v16, %v2731_v60  ;;  %v2738_v55 = vsub.f32 %v2619_v13, %v2731_v60  ;;  %v2739_v10 = vsub.f32 %v2620_v18, %v2731_v60  ;;  %v9440_v60 = vld [vmem:[#allocation7_spill] sm:$0xff] }
 0x321   : > { %v2740_v38 = vmul.f32 1.442695, %v2732_v63  ;;  %v2742_v12 = vmul.f32 1.442695, %v2733_v23  ;;  %v2744_v58 = vmul.f32 1.442695, %v2734_v57  ;;  %v9434_v56 = vpack.c.bf16 %v8159_v53, %v8140_v0 }
 0x322   : > { %v2746_v54 = vmul.f32 1.442695, %v2735_v27  ;;  %v2748_v62 = vmul.f32 1.442695, %v2736_v59  ;;  %v9435_v39 = vpack.c.bf16 %v8243_v7, %v8228_v9  ;;  %v3692_v13 = vpack.c.bf16 %v5718_v44, %v5717_v15  ;;  %v9437_v9 = vld [vmem:[#allocation5_spill] sm:$0xff] }
 0x323   : > { %6473 = vpow2.f32 %v2740_v38  ;;  %6158 = vmatmul.mubr.msk.bf16.vlgmr.msra.gmra.mrb[24].mxu1 %vm499_vm0, %v9434_v56  ;;  %v2750_v33 = vmul.f32 1.442695, %v2737_v31  ;;  %v2752_v18 = vmul.f32 1.442695, %v2738_v55  ;;  %v2754_v0 = vmul.f32 1.442695, %v2739_v10 }
 0x324   : > { %6475 = vpow2.f32 %v2742_v12  ;;  %6178 = vmatpush3.bf16.msra.mxu1 %v3608_v51  ;;  %6161 = vmatprep.mubr.msk.bf16.mxu1 %vm499_vm0, %v9435_v39  ;;  %v9436_v53 = vpack.c.bf16 %v8234_v41, %v8215_v49  ;;  %v2788_v27 = vrot.slane %v9439_v3, %v6921_v28  ;;  %v2795_v59 = vrot.slane %v2781_v36, %v6921_v28  ;;  %v9441_v12 = vld [vmem:[#allocation8_spill] sm:$0xff] }
 0x325   : > { %6477 = vpow2.f32 %v2744_v58  ;;  %6179 = vmatprep.subr.bf16.mxu1 %v3609_v2 }
 0x326   : > { %6479 = vpow2.f32 %v2746_v54  ;;  %v2796_v58 = vcombine.high %v2788_v27, %v2788_v27  ;;  %v2804_v15 = vrot.slane %v2788_v27, %v6921_v28  ;;  %v2811_v44 = vrot.slane %v2795_v59, %v6921_v28 }
 0x327   : > { %6481 = vpow2.f32 %v2748_v62 }
 0x328   : > { %6180 = vmatpush3.bf16.msra.mxu1 %v3609_v2  ;;  %6483 = vpow2.f32 %v2750_v33  ;;  %v2797_v2 = vcombine.high %v2795_v59, %v2795_v59  ;;  %v2818_v56 = vrot.slane %v2796_v58, %v6921_v28  ;;  %v2826_v39 = vcombine.high %v2804_v15, %v2804_v15 }
 0x329   : > { %6189 = vmatprep.subr.bf16.mxu1 %v3692_v13  ;;  %6485 = vpow2.f32 %v2752_v18 }
 0x32a   : > { %6487 = vpow2.f32 %v2754_v0  ;;  %v2825_v62 = vrot.slane %v2797_v2, %v6921_v28  ;;  %v2828_v33 = vcombine.high %v2818_v56, %v2818_v56  ;;  %v2833_v0 = vrot.slane %v2804_v15, %v6937_v46 }
 0x32b   : > { %6162 = vmatmul.mubr.msk.bf16.gmra.mrb[28].mxu1 %vm499_vm0, %v9436_v53  ;;  %v2837_v53 = vrot.slane %v2818_v56, %v6937_v46 }
 0x32c   : > { %6181 = vmatprep.mubr.msk.bf16.mxu1 %vm499_vm0, %v9437_v9  ;;  %v2829_v18 = vcombine.high %v2825_v62, %v2825_v62 }
 0x32d   : > { %v6474_v7 = vpop.eup %6473 }
 0x32e   : > { %v6476_v51 = vpop.eup %6475  ;;  %v2756_v16 = vsel %vm499_vm0, %v6474_v7, 0.0  ;;  %v2861_v3 = vrot.slane %v2829_v18, %v6937_v46 }
 0x32f   : > { %v6478_v17 = vpop.eup %6477  ;;  %v2757_v25 = vsel %vm499_vm0, %v6476_v51, 0.0 }
 0x330   : > { %v6480_v34 = vpop.eup %6479  ;;  %v2758_v61 = vadd.f32 %v2757_v25, %v2756_v16  ;;  %v2759_v20 = vsel %vm499_vm0, %v6478_v17, 0.0  ;;  %v2841_v16 = vrot.slane %v2826_v39, %v6937_v46  ;;  %v2849_v25 = vrot.slane %v2811_v44, %v6937_v46 }
 0x331   : > { %v6482_v24 = vpop.eup %6481  ;;  %v2761_v41 = vsel %vm499_vm0, %v6480_v34, 0.0 }
 0x332   : > { %v2760_v49 = vadd.f32 %v2759_v20, %v2758_v61  ;;  %v6484_v26 = vpop.eup %6483  ;;  %v2763_v5 = vsel %vm499_vm0, %v6482_v24, 0.0  ;;  %v2845_v20 = vrot.slane %v2828_v33, %v6937_v46 }
 0x333   : > { %6182 = vmatmul.mubr.msk.bf16.vlgmr.msra.gmra.mrb[40].mxu1 %vm499_vm0, %v9438_v19  ;;  %v6486_v37 = vpop.eup %6485  ;;  %v2765_v23 = vsel %vm499_vm0, %v6484_v26, 0.0 }
 0x334   : > { %v2762_v42 = vadd.f32 %v2761_v41, %v2760_v49  ;;  %6185 = vmatprep.mubr.msk.bf16.mxu1 %vm499_vm0, %v9440_v60  ;;  %6190 = vmatpush3.bf16.msra.mxu1 %v3692_v13  ;;  %v6488_v57 = vpop.eup %6487  ;;  %v2767_v55 = vsel %vm499_vm0, %v6486_v37, 0.0  ;;  %v2827_v13 = vcombine.high %v2811_v44, %v2811_v44  ;;  %v2853_v49 = vrot.slane %v2825_v62, %v6937_v46 }
 0x335   : > { %v2769_v38 = vsel %vm499_vm0, %v6488_v57, 0.0 }
 0x336   : > { %v2764_v63 = vadd.f32 %v2763_v5, %v2762_v42  ;;  %v2857_v41 = vrot.slane %v2827_v13, %v6937_v46 }
 0x338   : > { %v2766_v31 = vadd.f32 %v2765_v23, %v2764_v63 }
 0x33a   : > { %v2768_v10 = vadd.f32 %v2767_v55, %v2766_v31 }
 0x33b   : > { %6186 = vmatmul.mubr.msk.bf16.gmra.mrb[44].mxu1 %vm499_vm0, %v9441_v12 }
 0x33c   : > { %v2770_v54 = vadd.f32 %v2769_v38, %v2768_v10 }
 0x33e   : > { %6489 = vrcp.f32 %v2770_v54 }
 0x348   : > { %v6490_v61 = vpop.eup %6489 }
 0x349   : > { %v2772_v36 = vmul.f32 %v6490_v61, %v6474_v7  ;;  %v2773_v42 = vmul.f32 %v6490_v61, %v6476_v51  ;;  %v2774_v5 = vmul.f32 %v6490_v61, %v6478_v17  ;;  %v2775_v63 = vmul.f32 %v6490_v61, %v6480_v34 }
 0x34a   : > { %v2776_v23 = vmul.f32 %v6490_v61, %v6482_v24  ;;  %v2777_v27 = vmul.f32 %v6490_v61, %v6484_v26  ;;  %v2778_v59 = vmul.f32 %v6490_v61, %v6486_v37  ;;  %v2779_v31 = vmul.f32 %v6490_v61, %v6488_v57 }
 0x34b   : > { %v2870_v55 = vmul.f32 %v2833_v0, %v2772_v36  ;;  %v2871_v10 = vmul.f32 %v2837_v53, %v2773_v42  ;;  %v2872_v38 = vmul.f32 %v2841_v16, %v2774_v5  ;;  %v2873_v58 = vmul.f32 %v2845_v20, %v2775_v63  ;;  %v5719_v16 = vld [vmem:[%s9285_s7 + $0xb0] sm:$0xff]  ;;  %v5737_v20 = vld [vmem:[%s9285_s7 + $0xc0] sm:$0xff]  ;;  %v9443_v5 = vld [vmem:[#allocation30_spill] sm:$0xff] }
 0x34c   : > { %v2874_v2 = vmul.f32 %v2849_v25, %v2776_v23  ;;  %v2875_v54 = vmul.f32 %v2853_v49, %v2777_v27  ;;  %v2876_v15 = vmul.f32 %v2857_v41, %v2778_v59  ;;  %v2877_v44 = vmul.f32 %v2861_v3, %v2779_v31  ;;  %v5720_v25 = vld [vmem:[%s9285_s7 + $0xb8] sm:$0xff]  ;;  %v9442_v3 = vld [vmem:[#allocation22_spill] sm:$0xff]  ;;  %v9444_v27 = vld [vmem:[#allocation31_spill] sm:$0xff] }
 0x34d   : > { %v2878_v56 = vsel %vm499_vm0, %v2870_v55, 0.0  ;;  %v2879_v62 = vsel %vm499_vm0, %v2871_v10, 0.0  ;;  %v2881_v51 = vsel %vm499_vm0, %v2872_v38, 0.0  ;;  %v2883_v34 = vsel %vm499_vm0, %v2873_v58, 0.0  ;;  %v9445_v55 = vld [vmem:[#allocation32_spill] sm:$0xff]  ;;  %v5739_v38 = vld [vmem:[%s9285_s7 + $0xd0] sm:$0xff] }
 0x34e   : > { %v2880_v7 = vadd.f32 %v2879_v62, %v2878_v56  ;;  %v2885_v26 = vsel %vm499_vm0, %v2874_v2, 0.0  ;;  %v2887_v57 = vsel %vm499_vm0, %v2875_v54, 0.0  ;;  %v2889_v13 = vsel %vm499_vm0, %v2876_v15, 0.0  ;;  %v5740_v58 = vld [vmem:[%s9285_s7 + $0xd8] sm:$0xff]  ;;  %v5749_v56 = vld [vmem:[%s9284_s6 + $0xe0] sm:$0xff]  ;;  %v5750_v62 = vld [vmem:[%s9284_s6 + $0xe8] sm:$0xff] }
 0x34f   : > { %v2891_v18 = vsel %vm499_vm0, %v2877_v44, 0.0  ;;  %v3693_v61 = vpack.c.bf16 %v5720_v25, %v5719_v16  ;;  %v4224_v15 = vpack.c.bf16 %v5740_v58, %v5739_v38  ;;  %v5751_v38 = vld [vmem:[%s9284_s6 + $0xf0] sm:$0xff]  ;;  %v5752_v58 = vld [vmem:[%s9284_s6 + $0xf8] sm:$0xff] }
 0x350   : > { %v2882_v17 = vadd.f32 %v2881_v51, %v2880_v7  ;;  %v9446_v7 = vld [vmem:[#allocation23_spill] sm:$0xff] }
 0x351   : > { %6191 = vmatprep.subr.bf16.mxu1 %v3693_v61 }
 0x352   : > { %v2884_v24 = vadd.f32 %v2883_v34, %v2882_v17  ;;  %6192 = vmatpush3.bf16.msra.mxu1 %v3693_v61  ;;  %v9447_v34 = vld [vmem:[#allocation24_spill] sm:$0xff] }
 0x354   : > { %v2886_v37 = vadd.f32 %v2885_v26, %v2884_v24 }
 0x356   : > { %v2888_v39 = vadd.f32 %v2887_v57, %v2886_v37 }
 0x358   : > { %v2890_v33 = vadd.f32 %v2889_v13, %v2888_v39  ;;  %v9448_v39 = vld [vmem:[#allocation27_spill] sm:$0xff] }
 0x35a   : > { %v2892_v0 = vadd.f32 %v2891_v18, %v2890_v33  ;;  %v4670_v18 = vpack.c.bf16 %v5750_v62, %v5749_v56 }
 0x35c   : > { %v5018_v53 = vpack.c.bf16 %v2892_v0, %v8445_v1  ;;  %v5738_v1 = vld [vmem:[%s9285_s7 + $0xc8] sm:$0xff] }
 0x35d   : > { %v4223_v49 = vpack.c.bf16 %v5738_v1, %v5737_v20 }
 0x35e   : > { %6278 = vmatmul.mubr.msk.bf16.vlgmr.msra.gmra.mrb[104].mxu0 %vm499_vm0, %v5018_v53 }
 0x35f   : > { %6225 = vmatprep.subr.bf16.mxu1 %v4223_v49 }
 0x406   : > { %v6183_v41 = vpop.f32.mrb[40].mxu1 }
 0x407   : > { %v3677_v36 = vmul.f32 %v6183_v41, %v9442_v3  ;;  %v3644_v42 = vpop.f32.mrb[41].mxu1 }
 0x408   : > { %v3675_v63 = vmul.f32 %v3644_v42, %v9443_v5  ;;  %v6184_v23 = vpop.f32.mrb[42].mxu1 }
 0x409   : > { %v3678_v59 = vmul.f32 %v6184_v23, %v9444_v27  ;;  %v3647_v31 = vpop.f32.mrb[43].mxu1  ;;  %v3781_v37 = vsel %vm499_vm0, %v3677_v36, -inf }
 0x40a   : > { %v3676_v10 = vmul.f32 %v3647_v31, %v9445_v55  ;;  %v3779_v0 = vsel %vm499_vm0, %v3675_v63, -inf }
 0x40b   : > { %v3684_v2 = vpack.c.bf16 %v3678_v59, %v3677_v36  ;;  %v3782_v61 = vsel %vm499_vm0, %v3678_v59, -inf }
 0x40c   : > { %v3683_v54 = vpack.c.bf16 %v3676_v10, %v3675_v63  ;;  %v3780_v41 = vsel %vm499_vm0, %v3676_v10, -inf }
 0x40e   : > { %v6187_v44 = vpop.f32.mrb[44].mxu1  ;;  %6193 = vmatprep.mubr.msk.bf16.mxu1 %vm499_vm0, %v3683_v54 }
 0x40f   : > { %v3681_v51 = vmul.f32 %v6187_v44, %v9446_v7  ;;  %v3660_v17 = vpop.f32.mrb[45].mxu1  ;;  %6194 = vmatmul.mubr.msk.bf16.vlgmr.msra.gmra.mrb[24].mxu1 %vm499_vm0, %v3684_v2 }
 0x410   : > { %v3679_v24 = vmul.f32 %v3660_v17, %v9447_v34  ;;  %6226 = vmatpush3.bf16.msra.mxu1 %v4223_v49  ;;  %v6188_v26 = vpop.f32.mrb[46].mxu1 }
 0x411   : > { %v3787_v57 = vsel %vm499_vm0, %v3681_v51, -inf  ;;  %v3682_v13 = vmul.f32 %v6188_v26, %v9448_v39  ;;  %v3663_v33 = vpop.f32.mrb[47].mxu1  ;;  %6227 = vmatprep.subr.bf16.mxu1 %v4224_v15  ;;  %v4671_v26 = vpack.c.bf16 %v5752_v58, %v5751_v38 }
 0x412   : > { %v3788_v53 = vmax.f32 %v3781_v37, %v3787_v57  ;;  %v3783_v16 = vsel %vm499_vm0, %v3679_v24, -inf  ;;  %v3680_v25 = vmul.f32 %v3663_v33, %v8354_v30  ;;  %v9449_v30 = vpack.c.bf16 %v8468_v35, %v8459_v21 }
 0x413   : > { %v3784_v20 = vmax.f32 %v3779_v0, %v3783_v16  ;;  %v3686_v1 = vpack.c.bf16 %v3682_v13, %v3681_v51  ;;  %v3789_v49 = vsel %vm499_vm0, %v3682_v13, -inf  ;;  %v9450_v57 = vpack.c.bf16 %v8465_v48, %v8453_v22 }
 0x414   : > { %v3790_v3 = vmax.f32 %v3782_v61, %v3789_v49  ;;  %v3685_v42 = vpack.c.bf16 %v3680_v25, %v3679_v24  ;;  %v3785_v5 = vsel %vm499_vm0, %v3680_v25, -inf  ;;  %6228 = vmatpush3.bf16.msra.mxu1 %v4224_v15  ;;  %v9452_v22 = vpack.c.bf16 %v8502_v47, %v8482_v50  ;;  %v8823_v50 = vld [vmem:[%s9286_s8] sm:$0xff] }
 0x415   : > { %v3786_v23 = vmax.f32 %v3780_v41, %v3785_v5  ;;  %6249 = vmatprep.subr.bf16.mxu1 %v4670_v18  ;;  %v8833_v0 = vrot.slane %v8823_v50, %v6937_v46 }
 0x416   : > { %v3792_v27 = vmax.f32 %v3788_v53, %v3790_v3  ;;  %6197 = vmatprep.mubr.msk.bf16.mxu1 %vm499_vm0, %v3685_v42 }
 0x417   : > { %v3791_v31 = vmax.f32 %v3784_v20, %v3786_v23  ;;  %6198 = vmatmul.mubr.msk.bf16.gmra.mrb[28].mxu1 %vm499_vm0, %v3686_v1 }
 0x418   : > { %6229 = vmatprep.mubr.msk.bf16.mxu1 %vm499_vm0, %v9449_v30 }
 0x419   : > { %v3793_v55 = vmax.f32 %v3791_v31, %v3792_v27 }
 0x41b   : > { %v3794_v2 = vsub.f32 %v3675_v63, %v3793_v55  ;;  %v3795_v54 = vsub.f32 %v3676_v10, %v3793_v55  ;;  %v3796_v15 = vsub.f32 %v3677_v36, %v3793_v55  ;;  %v3797_v44 = vsub.f32 %v3678_v59, %v3793_v55 }
 0x41c   : > { %v3798_v56 = vsub.f32 %v3679_v24, %v3793_v55  ;;  %v3799_v62 = vsub.f32 %v3680_v25, %v3793_v55  ;;  %v3800_v7 = vsub.f32 %v3681_v51, %v3793_v55  ;;  %v3801_v17 = vsub.f32 %v3682_v13, %v3793_v55  ;;  %v9453_v25 = vld [vmem:[#allocation15_spill] sm:$0xff] }
 0x41d   : > { %v3802_v21 = vmul.f32 1.442695, %v3794_v2  ;;  %v3804_v35 = vmul.f32 1.442695, %v3795_v54  ;;  %v3806_v34 = vmul.f32 1.442695, %v3796_v15  ;;  %v9451_v36 = vpack.c.bf16 %v8508_v4, %v8492_v14 }
 0x41e   : > { %v3808_v37 = vmul.f32 1.442695, %v3797_v44  ;;  %v3810_v63 = vmul.f32 1.442695, %v3798_v56  ;;  %v3812_v59 = vmul.f32 1.442695, %v3799_v62  ;;  %v3843_v61 = vcombine.high %v9453_v25, %v9453_v25 }
 0x41f   : > { %6491 = vpow2.f32 %v3802_v21  ;;  %6230 = vmatmul.mubr.msk.bf16.vlgmr.msra.gmra.mrb[24].mxu1 %vm499_vm0, %v9450_v57  ;;  %v3814_v10 = vmul.f32 1.442695, %v3800_v7  ;;  %v3816_v51 = vmul.f32 1.442695, %v3801_v17  ;;  %v6559_v2 = vld [vmem:[%s6791_s20 + $0x10] sm:$0xff]  ;;  %v6560_v7 = vld [vmem:[%s6791_s20 + $0x18] sm:$0xff] }
 0x420   : > { %6493 = vpow2.f32 %v3804_v35  ;;  %6250 = vmatpush3.bf16.msra.mxu1 %v4670_v18  ;;  %6233 = vmatprep.mubr.msk.bf16.mxu1 %vm499_vm0, %v9451_v36  ;;  %v3857_v30 = vrot.slane %v3843_v61, %v6921_v28  ;;  %v6561_v21 = vld [vmem:[%s6791_s20] sm:$0xff]  ;;  %v6562_v36 = vld [vmem:[%s6791_s20 + $0x8] sm:$0xff] }
 0x421   : > { %6495 = vpow2.f32 %v3806_v34  ;;  %6251 = vmatprep.subr.bf16.mxu1 %v4671_v26 }
 0x422   : > { %6497 = vpow2.f32 %v3808_v37  ;;  %v3859_v37 = vcombine.high %v3857_v30, %v3857_v30 }
 0x423   : > { %6499 = vpow2.f32 %v3810_v63 }
 0x424   : > { %6252 = vmatpush3.bf16.msra.mxu1 %v4671_v26  ;;  %6501 = vpow2.f32 %v3812_v59 }
 0x425   : > { %6503 = vpow2.f32 %v3814_v10 }
 0x426   : > { %6505 = vpow2.f32 %v3816_v51 }
 0x427   : > { %6234 = vmatmul.mubr.msk.bf16.gmra.mrb[28].mxu1 %vm499_vm0, %v9452_v22  ;;  %v3873_v22 = vrot.slane %v3857_v30, %v6921_v28 }
 0x428   : > { %6253 = vmatprep.mubr.msk.bf16.mxu1 %vm499_vm0, %v9437_v9 }
 0x429   : > { %v8810_v48 = vpop.eup %6491 }
 0x42a   : > { %v8812_v14 = vpop.eup %6493  ;;  %v3818_v4 = vsel %vm499_vm0, %v8810_v48, 0.0 }
 0x42b   : > { %v8816_v24 = vpop.eup %6495  ;;  %v3819_v39 = vsel %vm499_vm0, %v8812_v14, 0.0 }
 0x42c   : > { %v8825_v47 = vpop.eup %6497  ;;  %v3820_v9 = vadd.f32 %v3819_v39, %v3818_v4  ;;  %v3821_v13 = vsel %vm499_vm0, %v8816_v24, 0.0  ;;  %v3887_v4 = vrot.slane %v3859_v37, %v6921_v28 }
 0x42d   : > { %v8829_v33 = vpop.eup %6499  ;;  %v3823_v53 = vsel %vm499_vm0, %v8825_v47, 0.0 }
 0x42e   : > { %v3822_v18 = vadd.f32 %v3821_v13, %v3820_v9  ;;  %v6502_v16 = vpop.eup %6501  ;;  %v3825_v1 = vsel %vm499_vm0, %v8829_v33, 0.0  ;;  %v3889_v13 = vcombine.high %v3873_v22, %v3873_v22 }
 0x42f   : > { %6254 = vmatmul.mubr.msk.bf16.vlgmr.msra.gmra.mrb[48].mxu1 %vm499_vm0, %v9438_v19  ;;  %v6504_v41 = vpop.eup %6503  ;;  %v3850_v19 = vrot.slane %v9453_v25, %v6921_v28  ;;  %v3827_v23 = vsel %vm499_vm0, %v6502_v16, 0.0 }
 0x430   : > { %v3824_v20 = vadd.f32 %v3823_v53, %v3822_v18  ;;  %6257 = vmatprep.mubr.msk.bf16.mxu1 %vm499_vm0, %v9440_v60  ;;  %v6506_v31 = vpop.eup %6505  ;;  %v3829_v15 = vsel %vm499_vm0, %v6504_v41, 0.0  ;;  %v3891_v53 = vcombine.high %v3887_v4, %v3887_v4 }
 0x431   : > { %v6279_v49 = vpop.f32.mrb[104].mxu0  ;;  %v3858_v34 = vcombine.high %v3850_v19, %v3850_v19  ;;  %v3831_v26 = vsel %vm499_vm0, %v6506_v31, 0.0  ;;  %v3866_v51 = vrot.slane %v3850_v19, %v6921_v28 }
 0x432   : > { %v3826_v3 = vadd.f32 %v3825_v1, %v3824_v20  ;;  %v5080_v42 = vadd.f32 %v6279_v49, %v8833_v0  ;;  %v5071_v5 = vpop.f32.mrb[105].mxu0  ;;  %v3911_v1 = vrot.slane %v3873_v22, %v6937_v46  ;;  %v3923_v19 = vrot.slane %v3891_v53, %v6937_v46 }
 0x433   : > { %v5072_v27 = vadd.f32 %v5071_v5, %v8833_v0  ;;  %v6280_v60 = vpop.f32.mrb[106].mxu0  ;;  %v3888_v9 = vcombine.high %v3866_v51, %v3866_v51  ;;  %v3895_v25 = vrot.slane %v3866_v51, %v6937_v46  ;;  %v3919_v5 = vrot.slane %v3889_v13, %v6937_v46  ;;  %v5759_v13 = vld [vmem:[%s9285_s7 + $0xf0] sm:$0xff] }
 0x434   : > { %v3828_v55 = vadd.f32 %v3827_v23, %v3826_v3  ;;  %v5083_v38 = vadd.f32 %v6280_v60, %v8833_v0  ;;  %v5074_v58 = vpop.f32.mrb[107].mxu0  ;;  %v8853_v54 = vadd.f32 %v6559_v2, %v5080_v42  ;;  %v3915_v42 = vrot.slane %v3887_v4, %v6937_v46  ;;  %v5757_v4 = vld [vmem:[%s9285_s7 + $0xe0] sm:$0xff] }
 0x435   : > { %v5075_v44 = vadd.f32 %v5074_v58, %v8833_v0  ;;  %v8863_v35 = vadd.f32 %v6561_v21, %v5072_v27  ;;  %v3903_v20 = vrot.slane %v3888_v9, %v6937_v46 }
 0x436   : > { %v3830_v56 = vadd.f32 %v3829_v15, %v3828_v55  ;;  %v5116_v62 = vsel %vm499_vm0, %v8853_v54, 0.0  ;;  %v8860_v17 = vadd.f32 %v6560_v7, %v5083_v38 }
 0x437   : > { %5117 = vadd.xlane.f32.xlu0 %v5116_v62  ;;  %6258 = vmatmul.mubr.msk.bf16.gmra.mrb[52].mxu1 %vm499_vm0, %v9441_v12  ;;  %v8871_v59 = vadd.f32 %v6562_v36, %v5075_v44  ;;  %v5110_v10 = vsel %vm499_vm0, %v8863_v35, 0.0  ;;  %v3880_v12 = vrot.slane %v3858_v34, %v6921_v28 }
 0x438   : > { %v3832_v57 = vadd.f32 %v3831_v26, %v3830_v56  ;;  %v5119_v63 = vsel %vm499_vm0, %v8860_v17, 0.0 }
 0x439   : > { %5120 = vadd.xlane.f32.xlu1 %v5119_v63  ;;  %v5113_v39 = vsel %vm499_vm0, %v8871_v59, 0.0  ;;  %v3890_v18 = vcombine.high %v3880_v12, %v3880_v12  ;;  %v3899_v61 = vrot.slane %v3880_v12, %v6937_v46 }
 0x43a   : > { %6507 = vrcp.f32 %v3832_v57 }
 0x43b   : > { %5111 = vadd.xlane.f32.xlu0 %v5110_v10  ;;  %v3907_v3 = vrot.slane %v3890_v18, %v6937_v46  ;;  %v5760_v18 = vld [vmem:[%s9285_s7 + $0xf8] sm:$0xff] }
 0x43d   : > { %5114 = vadd.xlane.f32.xlu1 %v5113_v39  ;;  %v5758_v39 = vld [vmem:[%s9285_s7 + $0xe8] sm:$0xff] }
 0x43e   : > { %v4754_v9 = vpack.c.bf16 %v5758_v39, %v5757_v4 }
 0x440   : > { %6261 = vmatprep.subr.bf16.mxu1 %v4754_v9 }
 0x441   : > { %6262 = vmatpush3.bf16.msra.mxu1 %v4754_v9 }
 0x444   : > { %v6508_v49 = vpop.eup %6507 }
 0x445   : > { %v3839_v23 = vmul.f32 %v6508_v49, %v6502_v16  ;;  %v3834_v27 = vmul.f32 %v6508_v49, %v8810_v48  ;;  %v3835_v60 = vmul.f32 %v6508_v49, %v8812_v14  ;;  %v3836_v30 = vmul.f32 %v6508_v49, %v8816_v24 }
 0x446   : > { %v3837_v55 = vmul.f32 %v6508_v49, %v8825_v47  ;;  %v3838_v38 = vmul.f32 %v6508_v49, %v8829_v33  ;;  %v3840_v58 = vmul.f32 %v6508_v49, %v6504_v41  ;;  %v3841_v2 = vmul.f32 %v6508_v49, %v6506_v31 }
 0x447   : > { %v3932_v15 = vmul.f32 %v3895_v25, %v3834_v27  ;;  %v3933_v44 = vmul.f32 %v3899_v61, %v3835_v60  ;;  %v3934_v56 = vmul.f32 %v3903_v20, %v3836_v30  ;;  %v3937_v62 = vmul.f32 %v3915_v42, %v3839_v23 }
 0x448   : > { %v3935_v7 = vmul.f32 %v3907_v3, %v3837_v55  ;;  %v3936_v21 = vmul.f32 %v3911_v1, %v3838_v38  ;;  %v3938_v34 = vmul.f32 %v3919_v5, %v3840_v58  ;;  %v3939_v16 = vmul.f32 %v3923_v19, %v3841_v2 }
 0x449   : > { %v3940_v48 = vsel %vm499_vm0, %v3932_v15, 0.0  ;;  %v3941_v14 = vsel %vm499_vm0, %v3933_v44, 0.0  ;;  %v3943_v24 = vsel %vm499_vm0, %v3934_v56, 0.0  ;;  %v3949_v57 = vsel %vm499_vm0, %v3937_v62, 0.0  ;;  %v9454_v15 = vld [vmem:[#allocation16_spill] sm:$0xff] }
 0x44a   : > { %v3942_v26 = vadd.f32 %v3941_v14, %v3940_v48  ;;  %v3945_v33 = vsel %vm499_vm0, %v3935_v7, 0.0  ;;  %v3947_v31 = vsel %vm499_vm0, %v3936_v21, 0.0  ;;  %v3951_v36 = vsel %vm499_vm0, %v3938_v34, 0.0 }
 0x44b   : > { %v3953_v51 = vsel %vm499_vm0, %v3939_v16, 0.0 }
 0x44c   : > { %v3944_v47 = vadd.f32 %v3943_v24, %v3942_v26 }
 0x44e   : > { %v3946_v41 = vadd.f32 %v3945_v33, %v3944_v47 }
 0x450   : > { %v3948_v37 = vadd.f32 %v3947_v31, %v3946_v41 }
 0x452   : > { %v3950_v63 = vadd.f32 %v3949_v57, %v3948_v37 }
 0x454   : > { %v3952_v10 = vadd.f32 %v3951_v36, %v3950_v63 }
 0x456   : > { %v3954_v22 = vadd.f32 %v3953_v51, %v3952_v10 }
 0x458   : > { %v5019_v12 = vpack.c.bf16 %v3954_v22, %v8583_v52  ;;  %v4755_v52 = vpack.c.bf16 %v5760_v18, %v5759_v13 }
 0x45a   : > { %6281 = vmatprep.mubr.msk.bf16.mxu0 %vm499_vm0, %v5019_v12  ;;  %6263 = vmatprep.subr.bf16.mxu1 %v4755_v52 }
 0x45b   : > { %6264 = vmatpush3.bf16.msra.mxu1 %v4755_v52 }
 0x502   : > { %v6255_v53 = vpop.f32.mrb[48].mxu1 }
 0x503   : > { %v4739_v25 = vmul.f32 %v6255_v53, %v8524_v40  ;;  %v4706_v61 = vpop.f32.mrb[49].mxu1 }
 0x504   : > { %v4737_v20 = vmul.f32 %v4706_v61, %v8532_v11  ;;  %v6256_v1 = vpop.f32.mrb[50].mxu1 }
 0x505   : > { %v4740_v49 = vmul.f32 %v6256_v1, %v8540_v45  ;;  %v4709_v3 = vpop.f32.mrb[51].mxu1  ;;  %v4843_v11 = vsel %vm499_vm0, %v4739_v25, -inf }
 0x506   : > { %v4738_v42 = vmul.f32 %v4709_v3, %v8543_v29  ;;  %v4841_v38 = vsel %vm499_vm0, %v4737_v20, -inf }
 0x507   : > { %v4746_v5 = vpack.c.bf16 %v4740_v49, %v4739_v25  ;;  %v4844_v44 = vsel %vm499_vm0, %v4740_v49, -inf }
 0x508   : > { %v4745_v19 = vpack.c.bf16 %v4738_v42, %v4737_v20  ;;  %v4842_v7 = vsel %vm499_vm0, %v4738_v42, -inf }
 0x50a   : > { %v6259_v23 = vpop.f32.mrb[52].mxu1  ;;  %6265 = vmatprep.mubr.msk.bf16.mxu1 %vm499_vm0, %v4745_v19  ;;  %v9455_v19 = vld [vmem:[#allocation14_spill] sm:$0xff] }
 0x50b   : > { %v4743_v27 = vmul.f32 %v6259_v23, %v8562_v32  ;;  %v4722_v60 = vpop.f32.mrb[53].mxu1  ;;  %6266 = vmatmul.mubr.msk.bf16.vlgmr.msra.gmra.mrb[24].mxu1 %vm499_vm0, %v4746_v5  ;;  %v4905_v23 = vcombine.high %v9455_v19, %v9455_v19 }
 0x50c   : > { %v4741_v40 = vmul.f32 %v4722_v60, %v8564_v8  ;;  %v6260_v30 = vpop.f32.mrb[54].mxu1 }
 0x50d   : > { %v4849_v45 = vsel %vm499_vm0, %v4743_v27, -inf  ;;  %v4744_v55 = vmul.f32 %v6260_v30, %v8566_v6  ;;  %v4725_v29 = vpop.f32.mrb[55].mxu1 }
 0x50e   : > { %v4850_v58 = vmax.f32 %v4843_v11, %v4849_v45  ;;  %v4845_v2 = vsel %vm499_vm0, %v4741_v40, -inf  ;;  %v4742_v32 = vmul.f32 %v4725_v29, %v9454_v15  ;;  %v4919_v29 = vrot.slane %v4905_v23, %v6921_v28 }
 0x50f   : > { %v4846_v56 = vmax.f32 %v4841_v38, %v4845_v2  ;;  %v4748_v62 = vpack.c.bf16 %v4744_v55, %v4743_v27  ;;  %v4851_v8 = vsel %vm499_vm0, %v4744_v55, -inf }
 0x510   : > { %v4852_v21 = vmax.f32 %v4844_v44, %v4851_v8  ;;  %v4747_v34 = vpack.c.bf16 %v4742_v32, %v4741_v40  ;;  %v4847_v6 = vsel %vm499_vm0, %v4742_v32, -inf  ;;  %v4921_v44 = vcombine.high %v4919_v29, %v4919_v29 }
 0x511   : > { %v4848_v16 = vmax.f32 %v4842_v7, %v4847_v6  ;;  %v4935_v8 = vrot.slane %v4919_v29, %v6921_v28  ;;  %v9456_v29 = vld [vmem:[#allocation9_spill] sm:$0xff] }
 0x512   : > { %v4854_v48 = vmax.f32 %v4850_v58, %v4852_v21  ;;  %6269 = vmatprep.mubr.msk.bf16.mxu1 %vm499_vm0, %v4747_v34  ;;  %v4949_v21 = vrot.slane %v4921_v44, %v6921_v28 }
 0x513   : > { %v4853_v14 = vmax.f32 %v4846_v56, %v4848_v16  ;;  %6270 = vmatmul.mubr.msk.bf16.gmra.mrb[28].mxu1 %vm499_vm0, %v4748_v62  ;;  %v4951_v6 = vcombine.high %v4935_v8, %v4935_v8 }
 0x515   : > { %v4855_v26 = vmax.f32 %v4853_v14, %v4854_v48  ;;  %v4953_v48 = vcombine.high %v4949_v21, %v4949_v21 }
 0x517   : > { %v4856_v24 = vsub.f32 %v4737_v20, %v4855_v26  ;;  %v4857_v47 = vsub.f32 %v4738_v42, %v4855_v26  ;;  %v4858_v33 = vsub.f32 %v4739_v25, %v4855_v26  ;;  %v4859_v41 = vsub.f32 %v4740_v49, %v4855_v26 }
 0x518   : > { %v4860_v31 = vsub.f32 %v4741_v40, %v4855_v26  ;;  %v4861_v37 = vsub.f32 %v4742_v32, %v4855_v26  ;;  %v4862_v57 = vsub.f32 %v4743_v27, %v4855_v26  ;;  %v4863_v63 = vsub.f32 %v4744_v55, %v4855_v26 }
 0x519   : > { %v4864_v36 = vmul.f32 1.442695, %v4856_v24  ;;  %v4866_v10 = vmul.f32 1.442695, %v4857_v47  ;;  %v4868_v51 = vmul.f32 1.442695, %v4858_v33  ;;  %v4912_v55 = vrot.slane %v9455_v19, %v6921_v28 }
 0x51a   : > { %v4870_v22 = vmul.f32 1.442695, %v4859_v41  ;;  %v4872_v12 = vmul.f32 1.442695, %v4860_v31  ;;  %v4874_v4 = vmul.f32 1.442695, %v4861_v37  ;;  %v4973_v47 = vrot.slane %v4935_v8, %v6937_v46 }
 0x51b   : > { %6509 = vpow2.f32 %v4864_v36  ;;  %v4876_v39 = vmul.f32 1.442695, %v4862_v57  ;;  %v4878_v9 = vmul.f32 1.442695, %v4863_v63  ;;  %v4920_v32 = vcombine.high %v4912_v55, %v4912_v55  ;;  %v5262_v8 = vld [vmem:[%s8977_s0 + $0x18] sm:$0xff] }
 0x51c   : > { %6511 = vpow2.f32 %v4866_v10  ;;  %v4928_v62 = vrot.slane %v4912_v55, %v6921_v28  ;;  %v4977_v31 = vrot.slane %v4949_v21, %v6937_v46  ;;  %v4981_v37 = vrot.slane %v4951_v6, %v6937_v46  ;;  %v5260_v6 = vld [vmem:[%s8977_s0 + $0x8] sm:$0xff] }
 0x51d   : > { %6513 = vpow2.f32 %v4868_v51  ;;  %v4942_v7 = vrot.slane %v4920_v32, %v6921_v28  ;;  %v4985_v28 = vrot.slane %v4953_v48, %v6937_v46 }
 0x51e   : > { %6515 = vpow2.f32 %v4870_v22  ;;  %v4950_v34 = vcombine.high %v4928_v62, %v4928_v62  ;;  %v4957_v14 = vrot.slane %v4928_v62, %v6937_v46 }
 0x51f   : > { %6517 = vpow2.f32 %v4872_v12  ;;  %v4952_v16 = vcombine.high %v4942_v7, %v4942_v7  ;;  %v4961_v26 = vrot.slane %v4942_v7, %v6937_v46 }
 0x520   : > { %6519 = vpow2.f32 %v4874_v4  ;;  %v4965_v24 = vrot.slane %v4950_v34, %v6937_v46 }
 0x521   : > { %6521 = vpow2.f32 %v4876_v39  ;;  %v4969_v41 = vrot.slane %v4952_v16, %v6937_v46 }
 0x522   : > { %6523 = vpow2.f32 %v4878_v9 }
 0x525   : > { %v6510_v13 = vpop.eup %6509 }
 0x526   : > { %v6512_v18 = vpop.eup %6511  ;;  %v4880_v52 = vsel %vm499_vm0, %v6510_v13, 0.0 }
 0x527   : > { %v6514_v53 = vpop.eup %6513  ;;  %v4881_v25 = vsel %vm499_vm0, %v6512_v18, 0.0 }
 0x528   : > { %v6516_v61 = vpop.eup %6515  ;;  %v4882_v20 = vadd.f32 %v4881_v25, %v4880_v52  ;;  %v4883_v1 = vsel %vm499_vm0, %v6514_v53, 0.0 }
 0x529   : > { %v6518_v49 = vpop.eup %6517  ;;  %v4885_v42 = vsel %vm499_vm0, %v6516_v61, 0.0 }
 0x52a   : > { %v4884_v3 = vadd.f32 %v4883_v1, %v4882_v20  ;;  %v6520_v5 = vpop.eup %6519  ;;  %v4887_v60 = vsel %vm499_vm0, %v6518_v49, 0.0 }
 0x52b   : > { %v6522_v40 = vpop.eup %6521  ;;  %v4889_v11 = vsel %vm499_vm0, %v6520_v5, 0.0 }
 0x52c   : > { %v4886_v27 = vadd.f32 %v4885_v42, %v4884_v3  ;;  %v6524_v45 = vpop.eup %6523  ;;  %v4891_v58 = vsel %vm499_vm0, %v6522_v40, 0.0 }
 0x52d   : > { %v4893_v15 = vsel %vm499_vm0, %v6524_v45, 0.0 }
 0x52e   : > { %v4888_v30 = vadd.f32 %v4887_v60, %v4886_v27 }
 0x530   : > { %v4890_v38 = vadd.f32 %v4889_v11, %v4888_v30 }
 0x532   : > { %v4892_v2 = vadd.f32 %v4891_v58, %v4890_v38  ;;  %v5249_v38 = vsub.s32 1, %v9456_v29 }
 0x534   : > { %v4894_v56 = vadd.f32 %v4893_v15, %v4892_v2  ;;  %v5250_v58 = vrot.slane %v8823_v50, %v5249_v38  ;;  %v5261_v15 = vld [vmem:[%s8977_s0 + $0x10] sm:$0xff] }
 0x536   : > { %6525 = vrcp.f32 %v4894_v56 }
 0x540   : > { %v6526_v33 = vpop.eup %6525 }
 0x541   : > { %v4901_v57 = vmul.f32 %v6526_v33, %v6520_v5  ;;  %v4896_v63 = vmul.f32 %v6526_v33, %v6510_v13  ;;  %v4897_v36 = vmul.f32 %v6526_v33, %v6512_v18  ;;  %v4898_v10 = vmul.f32 %v6526_v33, %v6514_v53 }
 0x542   : > { %v4899_v51 = vmul.f32 %v6526_v33, %v6516_v61  ;;  %v4900_v22 = vmul.f32 %v6526_v33, %v6518_v49  ;;  %v4902_v12 = vmul.f32 %v6526_v33, %v6522_v40  ;;  %v4903_v4 = vmul.f32 %v6526_v33, %v6524_v45 }
 0x543   : > { %v4994_v39 = vmul.f32 %v4957_v14, %v4896_v63  ;;  %v4995_v9 = vmul.f32 %v4961_v26, %v4897_v36  ;;  %v4996_v52 = vmul.f32 %v4965_v24, %v4898_v10  ;;  %v4999_v25 = vmul.f32 %v4977_v31, %v4901_v57  ;;  %v5266_v10 = vld [vmem:[%s8977_s0 + $0x38] sm:$0xff] }
 0x544   : > { %v4997_v20 = vmul.f32 %v4969_v41, %v4899_v51  ;;  %v4998_v1 = vmul.f32 %v4973_v47, %v4900_v22  ;;  %v5000_v3 = vmul.f32 %v4981_v37, %v4902_v12  ;;  %v5001_v42 = vmul.f32 %v4985_v28, %v4903_v4  ;;  %v5265_v41 = vld [vmem:[%s8977_s0 + $0x30] sm:$0xff]  ;;  %v5263_v4 = vld [vmem:[%s8977_s0 + $0x20] sm:$0xff] }
 0x545   : > { %v5002_v19 = vsel %vm499_vm0, %v4994_v39, 0.0  ;;  %v5003_v46 = vsel %vm499_vm0, %v4995_v9, 0.0  ;;  %v5005_v13 = vsel %vm499_vm0, %v4996_v52, 0.0  ;;  %v5011_v27 = vsel %vm499_vm0, %v4999_v25, 0.0  ;;  %v5264_v9 = vld [vmem:[%s8977_s0 + $0x28] sm:$0xff] }
 0x546   : > { %v5004_v5 = vadd.f32 %v5003_v46, %v5002_v19  ;;  %v5007_v53 = vsel %vm499_vm0, %v4997_v20, 0.0  ;;  %v5009_v49 = vsel %vm499_vm0, %v4998_v1, 0.0  ;;  %v5013_v40 = vsel %vm499_vm0, %v5000_v3, 0.0  ;;  %v5118_v46 = vpop.xlane.xlu0 %5117 }
 0x547   : > { %v5015_v11 = vsel %vm499_vm0, %v5001_v42, 0.0 }
 0x548   : > { %v5006_v18 = vadd.f32 %v5005_v13, %v5004_v5  ;;  %v5121_v5 = vpop.xlane.xlu1 %5120 }
 0x54a   : > { %v5008_v61 = vadd.f32 %v5007_v53, %v5006_v18  ;;  %v5112_v13 = vpop.xlane.xlu0 %5111 }
 0x54c   : > { %v5010_v23 = vadd.f32 %v5009_v49, %v5008_v61  ;;  %v5115_v53 = vpop.xlane.xlu1 %5114  ;;  %v5135_v49 = vmul.f32 0.03125, %v5112_v13 }
 0x54e   : > { %v5012_v60 = vadd.f32 %v5011_v27, %v5010_v23 }
 0x550   : > { %v5014_v30 = vadd.f32 %v5013_v40, %v5012_v60 }
 0x552   : > { %v5016_v45 = vadd.f32 %v5015_v11, %v5014_v30  ;;  %v5136_v30 = vmul.f32 0.03125, %v5115_v53 }
 0x554   : > { %v5020_v55 = vpack.c.bf16 %v5016_v45, %v8625_v43  ;;  %v5259_v43 = vld [vmem:[%s8977_s0] sm:$0xff]  ;;  %s6571_s0 = sshll.u32 %s6632_s27, 4  ;;  %s6572_s0 = int_to_ptr.vmem [resolvable:$false] %s6571_s0 }
 0x555   : > { %p6574_p0 = scmp.lt.s32.totalorder %s9211_s26, %s6572_s0 }
 0x556   : > { %6282 = vmatmul.mubr.msk.bf16.gmra.mrb[108].mxu0 %vm499_vm0, %v5020_v55  ;;  %v6563_v55 = vld [vmem:[%s6791_s20 + $0x20] sm:$0xff] }
 0x5de   : > { %v6267_v2 = vpop.f32.mrb[24].mxu1 }
 0x5df   : > { %v5253_v32 = vadd.f32 %v6267_v2, %v5250_v58  ;;  %v4802_v44 = vpop.f32.mrb[25].mxu1  ;;  %v9027_v2 = vsub.f32 %v8863_v35, %v5135_v49 }
 0x5e0   : > { %v5251_v56 = vadd.f32 %v5250_v58, %v4802_v44  ;;  %v6268_v62 = vpop.f32.mrb[26].mxu1 }
 0x5e1   : > { %v5254_v7 = vadd.f32 %v6268_v62, %v5250_v58  ;;  %v4805_v21 = vpop.f32.mrb[27].mxu1  ;;  %v8982_v34 = vadd.f32 %v5261_v15, %v5253_v32  ;;  %v6564_v32 = vld [vmem:[%s6791_s20 + $0x28] sm:$0xff]  ;;  %v5138_v62 = vmul.f32 0.03125, %v5121_v5 }
 0x5e2   : > { %v5252_v16 = vadd.f32 %v5250_v58, %v4805_v21  ;;  %v8985_v48 = vadd.f32 %v5259_v43, %v5251_v56  ;;  %v6565_v43 = vld [vmem:[%s6791_s20 + $0x30] sm:$0xff] }
 0x5e3   : > { %v5281_v14 = vsel %vm499_vm0, %v8982_v34, 0.0  ;;  %v8989_v26 = vadd.f32 %v5262_v8, %v5254_v7  ;;  %v6566_v7 = vld [vmem:[%s6791_s20 + $0x38] sm:$0xff]  ;;  %s6573_s20 = scalar_lea.vmem %s6572_s0, 2048 }
 0x5e4   : > { %5282 = vadd.xlane.f32.xlu1 %v5281_v14  ;;  %v5275_v24 = vsel %vm499_vm0, %v8985_v48, 0.0  ;;  %v8993_v47 = vadd.f32 %v5260_v6, %v5252_v16  ;;  %v5151_v16 = vmul.f32 %v9027_v2, %v9027_v2  ;;  %p6575_p1 = scmp.lt.s32.totalorder %s6573_s20, %s6567_s28 }
 0x5e5   : > { %5276 = vadd.xlane.f32.xlu0 %v5275_v24  ;;  %v5284_v28 = vsel %vm499_vm0, %v8989_v26, 0.0 }
 0x5e6   : > { %v6271_v33 = vpop.f32.mrb[28].mxu1  ;;  %v5278_v36 = vsel %vm499_vm0, %v8993_v47, 0.0  ;;  %p6576_p2 = por %p6575_p1, %p6574_p0 }
 0x5e7   : > { %v5257_v31 = vadd.f32 %v6271_v33, %v5250_v58  ;;  %v4818_v37 = vpop.f32.mrb[29].mxu1 }
 0x5e8   : > { %v5255_v57 = vadd.f32 %v5250_v58, %v4818_v37  ;;  %5285 = vadd.xlane.f32.xlu1 %v5284_v28  ;;  %v6272_v63 = vpop.f32.mrb[30].mxu1  ;;  %p6577_p3 = pnand %p6576_p2, %p6570_p13 }
 0x5e9   : > { %v5258_v51 = vadd.f32 %v6272_v63, %v5250_v58  ;;  %5279 = vadd.xlane.f32.xlu0 %v5278_v36  ;;  %v4821_v22 = vpop.f32.mrb[31].mxu1  ;;  %v9001_v12 = vadd.f32 %v5265_v41, %v5257_v31 }
 0x5ea   : > { %v5256_v39 = vadd.f32 %v5250_v58, %v4821_v22  ;;  %v9009_v20 = vadd.f32 %v5263_v4, %v5255_v57  ;;  %v5137_v58 = vmul.f32 0.03125, %v5118_v46 }
 0x5eb   : > { %v5293_v52 = vsel %vm499_vm0, %v9001_v12, 0.0  ;;  %v9007_v25 = vadd.f32 %v5266_v10, %v5258_v51 }
 0x5ec   : > { %v9013_v3 = vadd.f32 %v5264_v9, %v5256_v39  ;;  %v5287_v42 = vsel %vm499_vm0, %v9009_v20, 0.0  ;;  %v9046_v21 = vsub.f32 %v8853_v54, %v5137_v58  ;;  %v5159_v54 = vsel %vm499_vm0, %v5151_v16, 0.0 }
 0x5ed   : > { %5294 = vadd.xlane.f32.xlu0 %v5293_v52  ;;  %v5296_v1 = vsel %vm499_vm0, %v9007_v25, 0.0 }
 0x5ee   : > { %5297 = vadd.xlane.f32.xlu1 %v5296_v1  ;;  %v5290_v19 = vsel %vm499_vm0, %v9013_v3, 0.0  ;;  %v5153_v33 = vmul.f32 %v9046_v21, %v9046_v21 }
 0x5f1   : > { %5288 = vadd.xlane.f32.xlu0 %v5287_v42 }
 0x5f2   : > { %5291 = vadd.xlane.f32.xlu1 %v5290_v19 }
 0x629   : > { %v6283_v18 = vpop.f32.mrb[108].mxu0 }
 0x62a   : > { %v5087_v61 = vpop.f32.mrb[109].mxu0  ;;  %v5096_v23 = vadd.f32 %v6283_v18, %v8833_v0 }
 0x62b   : > { %v5088_v27 = vadd.f32 %v5087_v61, %v8833_v0  ;;  %v6284_v60 = vpop.f32.mrb[110].mxu0 }
 0x62c   : > { %v5090_v40 = vpop.f32.mrb[111].mxu0  ;;  %v5099_v11 = vadd.f32 %v6284_v60, %v8833_v0  ;;  %v9035_v56 = vadd.f32 %v6565_v43, %v5096_v23 }
 0x62d   : > { %v5091_v45 = vadd.f32 %v5090_v40, %v8833_v0  ;;  %v9024_v38 = vadd.f32 %v6563_v55, %v5088_v27  ;;  %v9038_v0 = vsub.f32 %v8871_v59, %v5136_v30  ;;  %v9053_v59 = vsub.f32 %v8860_v17, %v5138_v62 }
 0x62e   : > { %v9043_v35 = vadd.f32 %v6566_v7, %v5099_v11  ;;  %v5128_v6 = vsel %vm499_vm0, %v9035_v56, 0.0  ;;  %v5165_v17 = vsel %vm499_vm0, %v5153_v33, 0.0 }
 0x62f   : > { %v5122_v15 = vsel %vm499_vm0, %v9024_v38, 0.0  ;;  %v9032_v44 = vadd.f32 %v6564_v32, %v5091_v45  ;;  %v5152_v24 = vmul.f32 %v9038_v0, %v9038_v0  ;;  %v5154_v31 = vmul.f32 %v9053_v59, %v9053_v59 }
 0x630   : > { %5123 = vadd.xlane.f32.xlu0 %v5122_v15  ;;  %v5131_v14 = vsel %vm499_vm0, %v9043_v35, 0.0 }
 0x631   : > { %v5125_v8 = vsel %vm499_vm0, %v9032_v44, 0.0  ;;  %v5162_v41 = vsel %vm499_vm0, %v5152_v24, 0.0  ;;  %v5168_v37 = vsel %vm499_vm0, %v5154_v31, 0.0 }
 0x632   : > { %5126 = vadd.xlane.f32.xlu1 %v5125_v8 }
 0x634   : > { %5129 = vadd.xlane.f32.xlu0 %v5128_v6 }
 0x636   : > { %5132 = vadd.xlane.f32.xlu1 %v5131_v14 }
 0x638   : > { %5160 = vadd.xlane.f32.xlu0 %v5159_v54 }
 0x63a   : > { %5163 = vadd.xlane.f32.xlu1 %v5162_v41 }
 0x63c   : > { %5166 = vadd.xlane.f32.xlu0 %v5165_v17 }
 0x63e   : > { %5169 = vadd.xlane.f32.xlu1 %v5168_v37 }
 0x671   : > { %v5283_v28 = vpop.xlane.xlu1 %5282 }
 0x672   : > { %v5301_v57 = vmul.f32 0.03125, %v5283_v28  ;;  %v5277_v63 = vpop.xlane.xlu0 %5276 }
 0x673   : > { %v5299_v36 = vmul.f32 0.03125, %v5277_v63 }
 0x674   : > { %v9068_v10 = vsub.f32 %v8982_v34, %v5301_v57 }
 0x675   : > { %v9071_v51 = vsub.f32 %v8985_v48, %v5299_v36  ;;  %v5286_v22 = vpop.xlane.xlu1 %5285 }
 0x676   : > { %v5302_v4 = vmul.f32 0.03125, %v5286_v22  ;;  %v5280_v39 = vpop.xlane.xlu0 %5279  ;;  %v5317_v9 = vmul.f32 %v9068_v10, %v9068_v10 }
 0x677   : > { %v5300_v52 = vmul.f32 0.03125, %v5280_v39  ;;  %v5315_v19 = vmul.f32 %v9071_v51, %v9071_v51 }
 0x678   : > { %v9076_v1 = vsub.f32 %v8989_v26, %v5302_v4  ;;  %v5329_v42 = vsel %vm499_vm0, %v5317_v9, 0.0 }
 0x679   : > { %v9082_v34 = vsub.f32 %v8993_v47, %v5300_v52  ;;  %5330 = vadd.xlane.f32.xlu0 %v5329_v42  ;;  %v5323_v53 = vsel %vm499_vm0, %v5315_v19, 0.0 }
 0x67a   : > { %v5295_v48 = vpop.xlane.xlu0 %5294  ;;  %v5318_v46 = vmul.f32 %v9076_v1, %v9076_v1 }
 0x67b   : > { %v5305_v5 = vmul.f32 0.03125, %v5295_v48  ;;  %v5298_v13 = vpop.xlane.xlu1 %5297  ;;  %v5316_v61 = vmul.f32 %v9082_v34, %v9082_v34 }
 0x67c   : > { %v5306_v18 = vmul.f32 0.03125, %v5298_v13  ;;  %v5332_v26 = vsel %vm499_vm0, %v5318_v46, 0.0  ;;  %v5217_v13 = vsub.s32 2, %v9456_v29 }
 0x67d   : > { %v9091_v49 = vsub.f32 %v9001_v12, %v5305_v5  ;;  %5324 = vadd.xlane.f32.xlu0 %v5323_v53  ;;  %5333 = vadd.xlane.f32.xlu1 %v5332_v26  ;;  %v5326_v11 = vsel %vm499_vm0, %v5316_v61, 0.0 }
 0x67e   : > { %v9094_v47 = vsub.f32 %v9007_v25, %v5306_v18  ;;  %v5289_v23 = vpop.xlane.xlu0 %5288  ;;  %v5229_v18 = vsub.s32 3, %v9456_v29  ;;  %v9142_v53 = vrot.slane %v8823_v50, %v5217_v13 }
 0x67f   : > { %v5303_v27 = vmul.f32 0.03125, %v5289_v23  ;;  %v5292_v60 = vpop.xlane.xlu1 %5291  ;;  %v5321_v40 = vmul.f32 %v9091_v49, %v9091_v49 }
 0x680   : > { %v5304_v30 = vmul.f32 0.03125, %v5292_v60  ;;  %v5322_v45 = vmul.f32 %v9094_v47, %v9094_v47  ;;  %v9145_v61 = vrot.slane %v8823_v50, %v5229_v18 }
 0x681   : > { %v9102_v12 = vsub.f32 %v9009_v20, %v5303_v27  ;;  %5327 = vadd.xlane.f32.xlu1 %v5326_v11  ;;  %v5341_v55 = vsel %vm499_vm0, %v5321_v40, 0.0 }
 0x682   : > { %v9106_v25 = vsub.f32 %v9013_v3, %v5304_v30  ;;  %5342 = vadd.xlane.f32.xlu0 %v5341_v55  ;;  %v5344_v15 = vsel %vm499_vm0, %v5322_v45, 0.0 }
 0x683   : > { %v5319_v58 = vmul.f32 %v9102_v12, %v9102_v12 }
 0x684   : > { %v5320_v32 = vmul.f32 %v9106_v25, %v9106_v25 }
 0x685   : > { %5345 = vadd.xlane.f32.xlu1 %v5344_v15  ;;  %v5335_v43 = vsel %vm499_vm0, %v5319_v58, 0.0 }
 0x686   : > { %5336 = vadd.xlane.f32.xlu0 %v5335_v43  ;;  %v5338_v20 = vsel %vm499_vm0, %v5320_v32, 0.0 }
 0x689   : > { %5339 = vadd.xlane.f32.xlu1 %v5338_v20 }
 0x6bd   : > { %v5124_v62 = vpop.xlane.xlu0 %5123 }
 0x6be   : > { %v5139_v8 = vmul.f32 0.03125, %v5124_v62 }
 0x6bf   : > { %v5127_v3 = vpop.xlane.xlu1 %5126 }
 0x6c0   : > { %v9116_v7 = vsub.f32 %v9024_v38, %v5139_v8  ;;  %v5140_v6 = vmul.f32 0.03125, %v5127_v3 }
 0x6c1   : > { %v5130_v16 = vpop.xlane.xlu0 %5129 }
 0x6c2   : > { %v9119_v14 = vsub.f32 %v9032_v44, %v5140_v6  ;;  %v5141_v24 = vmul.f32 0.03125, %v5130_v16  ;;  %v5155_v54 = vmul.f32 %v9116_v7, %v9116_v7 }
 0x6c3   : > { %v5133_v33 = vpop.xlane.xlu1 %5132 }
 0x6c4   : > { %v9124_v41 = vsub.f32 %v9035_v56, %v5141_v24  ;;  %v5142_v31 = vmul.f32 0.03125, %v5133_v33  ;;  %v5171_v17 = vsel %vm499_vm0, %v5155_v54, 0.0  ;;  %v5156_v38 = vmul.f32 %v9119_v14, %v9119_v14 }
 0x6c5   : > { %5172 = vadd.xlane.f32.xlu0 %v5171_v17  ;;  %v5161_v37 = vpop.xlane.xlu0 %5160 }
 0x6c6   : > { %v9130_v28 = vsub.f32 %v9043_v35, %v5142_v31  ;;  %v5183_v44 = vmul.f32 0.03125, %v5161_v37  ;;  %v5174_v57 = vsel %vm499_vm0, %v5156_v38, 0.0  ;;  %v5157_v63 = vmul.f32 %v9124_v41, %v9124_v41 }
 0x6c7   : > { %5175 = vadd.xlane.f32.xlu1 %v5174_v57  ;;  %v5164_v56 = vpop.xlane.xlu1 %5163  ;;  %v5381_v38 = vsub.s32 4, %v9456_v29  ;;  %v5393_v57 = vsub.s32 5, %v9456_v29 }
 0x6c8   : > { %v5191_v36 = vadd.f32 1e-05, %v5183_v44  ;;  %v5184_v22 = vmul.f32 0.03125, %v5164_v56  ;;  %v5177_v4 = vsel %vm499_vm0, %v5157_v63, 0.0  ;;  %v5158_v39 = vmul.f32 %v9130_v28, %v9130_v28 }
 0x6c9   : > { %5178 = vadd.xlane.f32.xlu0 %v5177_v4  ;;  %v5167_v9 = vpop.xlane.xlu0 %5166  ;;  %v5382_v4 = vrot.slane %v8823_v50, %v5381_v38 }
 0x6ca   : > { %6527 = vrsqrt.f32 %v5191_v36  ;;  %v5192_v35 = vadd.f32 1e-05, %v5184_v22  ;;  %v5185_v52 = vmul.f32 0.03125, %v5167_v9  ;;  %v5180_v42 = vsel %vm499_vm0, %v5158_v39, 0.0 }
 0x6cb   : > { %5181 = vadd.xlane.f32.xlu1 %v5180_v42  ;;  %v5170_v19 = vpop.xlane.xlu1 %5169 }
 0x6cc   : > { %6529 = vrsqrt.f32 %v5192_v35  ;;  %v5193_v48 = vadd.f32 1e-05, %v5185_v52  ;;  %v5186_v46 = vmul.f32 0.03125, %v5170_v19  ;;  %v5394_v52 = vrot.slane %v8823_v50, %v5393_v57 }
 0x6ce   : > { %6531 = vrsqrt.f32 %v5193_v48  ;;  %v5194_v5 = vadd.f32 1e-05, %v5186_v46 }
 0x6d0   : > { %6533 = vrsqrt.f32 %v5194_v5 }
 0x6d4   : > { %v6528_v26 = vpop.eup %6527 }
 0x6d5   : > { %v5207_v23 = vmul.f32 %v6528_v26, %v9027_v2 }
 0x6d6   : > { %v6530_v27 = vpop.eup %6529 }
 0x6d7   : > { %v5219_v60 = vmul.f32 %v9142_v53, %v5207_v23  ;;  %v5208_v40 = vmul.f32 %v6530_v27, %v9038_v0 }
 0x6d8   : > { %v6532_v30 = vpop.eup %6531 }
 0x6d9   : > { %v5231_v11 = vadd.f32 %v9145_v61, %v5219_v60  ;;  %v5220_v45 = vmul.f32 %v9142_v53, %v5208_v40  ;;  %v5209_v2 = vmul.f32 %v6532_v30, %v9046_v21 }
 0x6da   : > { %v6534_v55 = vpop.eup %6533 }
 0x6db   : > { %5239 = vst.msk [vmem:[%s9154_s2] sm:$0xff] %vm499_vm0, %v5231_v11  ;;  %v5232_v0 = vadd.f32 %v9145_v61, %v5220_v45  ;;  %v5221_v58 = vmul.f32 %v9142_v53, %v5209_v2  ;;  %v5210_v15 = vmul.f32 %v6534_v55, %v9053_v59 }
 0x6dd   : > { %5240 = vst.msk [vmem:[%s9154_s2 + $0x8] sm:$0xff] %vm499_vm0, %v5232_v0  ;;  %v5233_v32 = vadd.f32 %v9145_v61, %v5221_v58  ;;  %v5222_v43 = vmul.f32 %v9142_v53, %v5210_v15 }
 0x6df   : > { %5241 = vst.msk [vmem:[%s9154_s2 + $0x10] sm:$0xff] %vm499_vm0, %v5233_v32  ;;  %v5234_v20 = vadd.f32 %v9145_v61, %v5222_v43 }
 0x6e1   : > { %5242 = vst.msk [vmem:[%s9154_s2 + $0x18] sm:$0xff] %vm499_vm0, %v5234_v20 }
 0x706   : > { %v5331_v21 = vpop.xlane.xlu0 %5330 }
 0x707   : > { %v5349_v62 = vmul.f32 0.03125, %v5331_v21 }
 0x709   : > { %v5357_v8 = vadd.f32 1e-05, %v5349_v62 }
 0x70a   : > { %v5325_v3 = vpop.xlane.xlu0 %5324  ;;  %v5334_v6 = vpop.xlane.xlu1 %5333 }
 0x70b   : > { %6535 = vrsqrt.f32 %v5357_v8  ;;  %v5347_v59 = vmul.f32 0.03125, %v5325_v3  ;;  %v5350_v16 = vmul.f32 0.03125, %v5334_v6 }
 0x70d   : > { %v5355_v24 = vadd.f32 1e-05, %v5347_v59  ;;  %v5358_v54 = vadd.f32 1e-05, %v5350_v16 }
 0x70e   : > { %v5328_v33 = vpop.xlane.xlu1 %5327 }
 0x70f   : > { %6537 = vrsqrt.f32 %v5355_v24  ;;  %v5348_v31 = vmul.f32 0.03125, %v5328_v33  ;;  %v5343_v17 = vpop.xlane.xlu0 %5342 }
 0x710   : > { %6539 = vrsqrt.f32 %v5358_v54  ;;  %v5353_v37 = vmul.f32 0.03125, %v5343_v17 }
 0x711   : > { %v5356_v44 = vadd.f32 1e-05, %v5348_v31 }
 0x712   : > { %v5361_v63 = vadd.f32 1e-05, %v5353_v37  ;;  %v5346_v56 = vpop.xlane.xlu1 %5345 }
 0x713   : > { %6541 = vrsqrt.f32 %v5356_v44  ;;  %v5354_v36 = vmul.f32 0.03125, %v5346_v56  ;;  %v5337_v22 = vpop.xlane.xlu0 %5336 }
 0x714   : > { %6543 = vrsqrt.f32 %v5361_v63  ;;  %v5351_v39 = vmul.f32 0.03125, %v5337_v22 }
 0x715   : > { %v6536_v9 = vpop.eup %6535  ;;  %v5362_v35 = vadd.f32 1e-05, %v5354_v36 }
 0x716   : > { %v5373_v42 = vmul.f32 %v6536_v9, %v9068_v10  ;;  %v5359_v19 = vadd.f32 1e-05, %v5351_v39  ;;  %v5340_v29 = vpop.xlane.xlu1 %5339 }
 0x717   : > { %6545 = vrsqrt.f32 %v5362_v35  ;;  %v5352_v48 = vmul.f32 0.03125, %v5340_v29 }
 0x718   : > { %v5385_v46 = vmul.f32 %v5382_v4, %v5373_v42  ;;  %6547 = vrsqrt.f32 %v5359_v19 }
 0x719   : > { %v6538_v5 = vpop.eup %6537  ;;  %v5360_v13 = vadd.f32 1e-05, %v5352_v48 }
 0x71a   : > { %v6540_v18 = vpop.eup %6539  ;;  %v5397_v26 = vadd.f32 %v5394_v52, %v5385_v46  ;;  %v5371_v23 = vmul.f32 %v6538_v5, %v9071_v51 }
 0x71b   : > { %v5374_v27 = vmul.f32 %v6540_v18, %v9076_v1  ;;  %6549 = vrsqrt.f32 %v5360_v13 }
 0x71c   : > { %5405 = vst.msk [vmem:[%s9183_s30 + $0x10] sm:$0xff] %vm499_vm0, %v5397_v26  ;;  %v5383_v50 = vmul.f32 %v5382_v4, %v5371_v23 }
 0x71d   : > { %v6542_v10 = vpop.eup %6541  ;;  %v5386_v60 = vmul.f32 %v5382_v4, %v5374_v27 }
 0x71e   : > { %v6544_v40 = vpop.eup %6543  ;;  %v5395_v30 = vadd.f32 %v5394_v52, %v5383_v50  ;;  %v5372_v11 = vmul.f32 %v6542_v10, %v9082_v34 }
 0x71f   : > { %v5398_v51 = vadd.f32 %v5394_v52, %v5386_v60  ;;  %v5377_v1 = vmul.f32 %v6544_v40, %v9091_v49 }
 0x720   : > { %5403 = vst.msk [vmem:[%s9183_s30] sm:$0xff] %vm499_vm0, %v5395_v30  ;;  %v5384_v45 = vmul.f32 %v5382_v4, %v5372_v11 }
 0x721   : > { %v6546_v2 = vpop.eup %6545  ;;  %5406 = vst.msk [vmem:[%s9183_s30 + $0x18] sm:$0xff] %vm499_vm0, %v5398_v51  ;;  %v5389_v55 = vmul.f32 %v5382_v4, %v5377_v1 }
 0x722   : > { %v6548_v0 = vpop.eup %6547  ;;  %v5396_v58 = vadd.f32 %v5394_v52, %v5384_v45  ;;  %v5378_v15 = vmul.f32 %v6546_v2, %v9094_v47 }
 0x723   : > { %v5401_v34 = vadd.f32 %v5394_v52, %v5389_v55  ;;  %v5375_v32 = vmul.f32 %v6548_v0, %v9102_v12 }
 0x724   : > { %5404 = vst.msk [vmem:[%s9183_s30 + $0x8] sm:$0xff] %vm499_vm0, %v5396_v58  ;;  %v5390_v49 = vmul.f32 %v5382_v4, %v5378_v15 }
 0x725   : > { %v6550_v43 = vpop.eup %6549  ;;  %5409 = vst.msk [vmem:[%s9183_s30 + $0x30] sm:$0xff] %vm499_vm0, %v5401_v34  ;;  %v5387_v20 = vmul.f32 %v5382_v4, %v5375_v32 }
 0x726   : > { %v5402_v21 = vadd.f32 %v5394_v52, %v5390_v49  ;;  %v5376_v62 = vmul.f32 %v6550_v43, %v9106_v25 }
 0x727   : > { %v5399_v8 = vadd.f32 %v5394_v52, %v5387_v20 }
 0x728   : > { %5410 = vst.msk [vmem:[%s9183_s30 + $0x38] sm:$0xff] %vm499_vm0, %v5402_v21  ;;  %v5388_v47 = vmul.f32 %v5382_v4, %v5376_v62 }
 0x729   : > { %5407 = vst.msk [vmem:[%s9183_s30 + $0x20] sm:$0xff] %vm499_vm0, %v5399_v8 }
 0x72a   : > { %v5400_v12 = vadd.f32 %v5394_v52, %v5388_v47 }
 0x72c   : > { %5408 = vst.msk [vmem:[%s9183_s30 + $0x28] sm:$0xff] %vm499_vm0, %v5400_v12 }
 0x72d   : > { %6580 = shalt.err (!%p6577_p3)
}
 0x72e   : > { %s6581_s1 = scalar_lea.hbm %s9209_s25, 1024  ;;  %s6585_s30 = scalar_lea.hbm %s9288_s10, 2048 }
 0x72f   : > { %p6582_p4 = scmp.ne.s32.totalorder %s9209_s25, %s6581_s1  ;;  %p6586_p9 = scmp.lt.u32.totalorder %s9209_s25, %s9288_s10 }
 0x730   : > { %p6587_p10 = scmp.lt.u32.totalorder %s6585_s30, %s6581_s1  ;;  %p6589_p12 = scmp.lt.u32.totalorder %s6581_s1, %s9209_s25 }
 0x731   : > { %p6583_p7 = pnand %p6582_p4, %p6728_p5 }
 0x732   : > { %p6588_p11 = por %p6587_p10, %p6586_p9 }
 0x733   : > { %p6584_p8 = pneg %p6583_p7 }
 0x734   : > { %p6590_p13 = por %p6589_p12, %p6588_p11 }
 0x736   : > { %p6591_p0 = pnand %p6590_p13, %p6584_p8 }
 0x738   : > { %6594 = shalt.err (!%p6591_p0)
}
 0x739   : > { %s6633_s18 = smov 128   ;;  %s6634_s28 = smov 8  }
 0x73a   : > { %6341 = dma.vmem_to_hbm [thread:$0]  (%p6728_p5), %s9211_s26, 1024, %s9209_s25, %s9217_s17, %s6633_s18, %s6633_s18, %s6634_s28  }
 0x752   : > { %v5173_v25 = vpop.xlane.xlu0 %5172 }
 0x753   : > { %v5187_v3 = vmul.f32 0.03125, %v5173_v25 }
 0x754   : > { %v5176_v6 = vpop.xlane.xlu1 %5175 }
 0x755   : > { %v5195_v59 = vadd.f32 1e-05, %v5187_v3  ;;  %v5188_v16 = vmul.f32 0.03125, %v5176_v6 }
 0x756   : > { %v5179_v24 = vpop.xlane.xlu0 %5178 }
 0x757   : > { %6551 = vrsqrt.f32 %v5195_v59  ;;  %v5196_v54 = vadd.f32 1e-05, %v5188_v16  ;;  %v5189_v33 = vmul.f32 0.03125, %v5179_v24 }
 0x758   : > { %v5182_v31 = vpop.xlane.xlu1 %5181 }
 0x759   : > { %6553 = vrsqrt.f32 %v5196_v54  ;;  %v5197_v17 = vadd.f32 1e-05, %v5189_v33  ;;  %v5190_v38 = vmul.f32 0.03125, %v5182_v31 }
 0x75b   : > { %6555 = vrsqrt.f32 %v5197_v17  ;;  %v5198_v37 = vadd.f32 1e-05, %v5190_v38 }
 0x75d   : > { %6557 = vrsqrt.f32 %v5198_v37 }
 0x761   : > { %v6552_v44 = vpop.eup %6551 }
 0x762   : > { %v5211_v57 = vmul.f32 %v6552_v44, %v9116_v7 }
 0x763   : > { %v6554_v63 = vpop.eup %6553 }
 0x764   : > { %v5223_v56 = vmul.f32 %v9142_v53, %v5211_v57  ;;  %v5212_v36 = vmul.f32 %v6554_v63, %v9119_v14 }
 0x765   : > { %v6556_v22 = vpop.eup %6555 }
 0x766   : > { %v5235_v4 = vadd.f32 %v9145_v61, %v5223_v56  ;;  %v5224_v39 = vmul.f32 %v9142_v53, %v5212_v36  ;;  %v5213_v9 = vmul.f32 %v6556_v22, %v9124_v41 }
 0x767   : > { %v6558_v35 = vpop.eup %6557 }
 0x768   : > { %5243 = vst.msk [vmem:[%s9154_s2 + $0x20] sm:$0xff] %vm499_vm0, %v5235_v4  ;;  %v5236_v52 = vadd.f32 %v9145_v61, %v5224_v39  ;;  %v5225_v7 = vmul.f32 %v9142_v53, %v5213_v9  ;;  %v5214_v42 = vmul.f32 %v6558_v35, %v9130_v28 }
 0x76a   : > { %5244 = vst.msk [vmem:[%s9154_s2 + $0x28] sm:$0xff] %vm499_vm0, %v5236_v52  ;;  %v5237_v14 = vadd.f32 %v9145_v61, %v5225_v7  ;;  %v5226_v19 = vmul.f32 %v9142_v53, %v5214_v42 }
 0x76c   : > { %5245 = vst.msk [vmem:[%s9154_s2 + $0x30] sm:$0xff] %vm499_vm0, %v5237_v14  ;;  %v5238_v29 = vadd.f32 %v9145_v61, %v5226_v19 }
 0x76e   : > { %5246 = vst.msk [vmem:[%s9154_s2 + $0x38] sm:$0xff] %vm499_vm0, %v5238_v29 }
 0x76f PF: > { %p6347_p5 = scmp.ge.s32.totalorder %s6629_s16, 2  ;;  %s5456_s23 = sand.u32 1, %s6617_s13  }
 0x770   : > { %s5457_s26 = scalar_lea.sflag [#allocation3], %s5456_s23 }
 0x771   : > { %p6344_p1 = pnand %p6347_p5, %p6732_p6 }
 0x773   : > { %6612 = dma.done.wait (!%p6344_p1), %s5457_s26, 1024  }
 0x774   : > { %6614 = vsyncadd (!%p6344_p1), %s5457_s26, 4294966272  ;;  %p21_p2 = scmp.ge.s32.totalorder %s6715_s19, 4   ;;  %s9457_s13 = smov %s6621_s14 }
 0x775   : > { %s9458_s14 = smov %s6625_s15  ;;  %s9459_s15 = smov %s6726_s22 }
 0x776   : > { %s9460_s16 = smov %s6715_s19  ;;  %23 = sbr.rel (!%p21_p2) target bundleno = 7 (0x7), region = 133 }
 0x77d   :  { %5462 = vsyncpa [#allocation3], 1 }
 0x77e   :  { %5464 = vsyncpa [#allocation3 + $0x1], 1 }

</bundles_post_ra>
